<compile_context>
chip_gen: v7x
topology: tpu7x:2x2x1
jax: 0.10.0
libtpu: 0.0.40
codegen_flags: <defaults>
</compile_context>

<pallas_src>
import functools

import jax
import jax.numpy as jnp
from jax import lax
from jax.experimental import pallas as pl
from jax.experimental.pallas import tpu as pltpu


# ----------------------------------------------------------------------------
# Activations
# TODO(synk): InverseSquareRootLinearUnit / ClippedTanh / LinConstr source was not
# provided; these are reconstructed (LinConstr is treated as a plain nn.Linear).
# ----------------------------------------------------------------------------
def _isrlu(x, min_value=5e-3):
    return 1.0 + min_value + jnp.where(x > 0, x, x * lax.rsqrt(1.0 + x * x))


def _ctanh(x):
    return 0.5 * (1.0 + 0.999 * jnp.tanh(x))


# ----------------------------------------------------------------------------
# Parameter packing (done once, outside the forward): pre-transpose weights,
# pre-combine biases, and pad each LSTM gate block to a 128-lane tile so in-kernel
# gate slices start on lane-tile boundaries.
# ----------------------------------------------------------------------------
_LANE = 128


def _pack_lstm(p):
    """PyTorch LSTM params -> kernel layout.

    w_ih (4H, F), w_hh (4H, H), b_ih/b_hh (4H,)  ->
      wih (F, 4*GP), whh (H, 4*GP), b (1, 4*GP)   with GP = ceil(H/128)*128.
    Gate order (i, f, g, o) is preserved; padded columns are zero and never read.
    """
    w_ih, w_hh, b_ih, b_hh = p["w_ih"], p["w_hh"], p["b_ih"], p["b_hh"]
    H = w_hh.shape[1]
    GP = pl.cdiv(H, _LANE) * _LANE

    def pad_gate_axis(w_t):  # (rows, 4H) -> (rows, 4*GP)
        rows = w_t.shape[0]
        w3 = w_t.reshape(rows, 4, H)
        w3 = jnp.pad(w3, ((0, 0), (0, 0), (0, GP - H)))
        return w3.reshape(rows, 4 * GP)

    b = (b_ih + b_hh).reshape(1, 4, H)
    b = jnp.pad(b, ((0, 0), (0, 0), (0, GP - H))).reshape(1, 4 * GP)
    return dict(wih=pad_gate_axis(w_ih.T), whh=pad_gate_axis(w_hh.T), b=b)


def pack_params(raw):
    return dict(
        enc0=_pack_lstm(raw["enc_lstm0"]),
        enc1=_pack_lstm(raw["enc_lstm1"]),
        dec0=_pack_lstm(raw["dec_lstm0"]),
        dec1=_pack_lstm(raw["dec_lstm1"]),
        # mu + log_var fused into one (E, 2L) matmul.
        w_ml=jnp.concatenate([raw["mu"]["w"].T, raw["log_var"]["w"].T], axis=1),
        b_ml=jnp.concatenate([raw["mu"]["b"], raw["log_var"]["b"]]).reshape(1, -1),
        # par1 + par2 + par3 fused into one (2E, 3O) matmul.
        w_par=jnp.concatenate(
            [raw["par1"]["w"].T, raw["par2"]["w"].T, raw["par3"]["w"].T], axis=1),
        b_par=jnp.concatenate(
            [raw["par1"]["b"], raw["par2"]["b"], raw["par3"]["b"]]).reshape(1, -1),
        seq_out=raw["seq_out"],
        output_size=raw["par1"]["w"].shape[0],
    )


# ----------------------------------------------------------------------------
# Fused Pallas kernel
# ----------------------------------------------------------------------------
def _lstm_cell(gates, c):
    """gates: (B, 4*GP) with gate k in columns [k*GP, k*GP+H); c: (B, H)."""
    H = c.shape[-1]
    G = gates.shape[-1] // 4  # per-gate lane-tile-aligned stride
    i = jax.nn.sigmoid(gates[:, 0 * G:0 * G + H])
    f = jax.nn.sigmoid(gates[:, 1 * G:1 * G + H])
    g = jnp.tanh(gates[:, 2 * G:2 * G + H])
    o = jax.nn.sigmoid(gates[:, 3 * G:3 * G + H])
    c_new = f * c + i * g
    return o * jnp.tanh(c_new), c_new


def _lstm_vaev_kernel(
    x_ref,                                   # (seq_in*B, F) time-major flattened
    wih_e0, whh_e0, b_e0,                    # encoder LSTM0 (packed)
    wih_e1, whh_e1, b_e1,                    # encoder LSTM1 (packed)
    w_ml, b_ml,                              # fused mu/log_var head
    eps_ref,                                 # (B, L) reparameterization noise
    wih_d0, whh_d0, b_d0,                    # decoder LSTM0 (packed)
    wih_d1, whh_d1, b_d1,                    # decoder LSTM1 (packed)
    w_par, b_par,                            # fused par1/par2/par3 head
    mu_ref, logvar_ref, par_ref,             # outputs
):
    f32 = jnp.float32
    B, L = eps_ref.shape
    seq_in = x_ref.shape[0] // B
    seq_out, _, threeO = par_ref.shape
    O = threeO // 3
    H_e0 = whh_e0.shape[0]
    H_e1 = whh_e1.shape[0]
    H_d0 = whh_d0.shape[0]
    H_d1 = whh_d1.shape[0]
    G_e1 = b_e1.shape[1]
    G_d1 = b_d1.shape[1]

    dot = lambda a, b: jnp.dot(a, b, preferred_element_type=f32)

    # ---------------- Encoder: two LSTM layers fused in one unrolled loop ------
    # Hoisted layer-0 input projection: one tall matmul over all timesteps with
    # the bias folded in; these rows are off the serial recurrent chain.
    gx = dot(x_ref[...], wih_e0[...]) + b_e0[...]         # (seq_in*B, 4*GP)
    b_e1_b = jnp.broadcast_to(b_e1[...], (B, G_e1))       # hoisted broadcast

    h0 = jnp.zeros((B, H_e0), f32); c0 = jnp.zeros((B, H_e0), f32)
    h1 = jnp.zeros((B, H_e1), f32); c1 = jnp.zeros((B, H_e1), f32)
    for t in range(seq_in):                               # fully unrolled (static)
        g0 = gx[t * B:(t + 1) * B, :] + dot(h0, whh_e0[...])
        h0, c0 = _lstm_cell(g0, c0)
        g1 = dot(h0, wih_e1[...]) + dot(h1, whh_e1[...]) + b_e1_b
        h1, c1 = _lstm_cell(g1, c1)

    # ---------------- mu / log_var (single fused matmul) + reparameterization --
    ml = dot(h1, w_ml[...]) + b_ml[...]                   # (B, 2L)
    mu = ml[:, 0:L]
    log_var = ml[:, L:2 * L]
    mu_ref[...] = mu
    logvar_ref[...] = log_var
    z = mu + eps_ref[...] * jnp.exp(0.5 * log_var)        # (B, L)

    # ---------------- Decoder: two LSTM layers + fused output heads ------------
    # LSTMdec input is the same z at every timestep -> project it exactly once.
    gz = dot(z, wih_d0[...]) + b_d0[...]                  # (B, 4*GP)
    b_d1_b = jnp.broadcast_to(b_d1[...], (B, G_d1))
    b_par_b = jnp.broadcast_to(b_par[...], (B, threeO))
    col = lax.broadcasted_iota(jnp.int32, (B, threeO), 1)

    h0 = jnp.zeros((B, H_d0), f32); c0 = jnp.zeros((B, H_d0), f32)
    h1 = jnp.zeros((B, H_d1), f32); c1 = jnp.zeros((B, H_d1), f32)
    for t in range(seq_out):                              # fully unrolled (static)
        g0 = gz + dot(h0, whh_d0[...])
        h0, c0 = _lstm_cell(g0, c0)
        g1 = dot(h0, wih_d1[...]) + dot(h1, whh_d1[...]) + b_d1_b
        h1, c1 = _lstm_cell(g1, c1)
        # Fused par1/par2/par3 head for this timestep (off the recurrent chain);
        # activations are selected per column to avoid tiny-lane slicing/concat.
        p = dot(h1, w_par[...]) + b_par_b                 # (B, 3*O)
        p = jnp.where(col < O, p,
                      jnp.where(col < 2 * O, _isrlu(p), _ctanh(p)))
        par_ref[t] = p


_VMEM = pl.BlockSpec(memory_space=pltpu.MemorySpace.VMEM)


def lstm_vaev_forward(packed, x, eps):
    """x: (B, seq_in, F) batch-first; eps: (B, latent) reparameterization noise."""
    B, seq_in, F = x.shape
    seq_out = packed["seq_out"]
    L = eps.shape[1]
    O = packed["output_size"]

    # Layout plumbing only: time-major + flattened so the kernel's hoisted input
    # projection is one tall matmul.
    x2d = jnp.transpose(x, (1, 0, 2)).reshape(seq_in * B, F)

    mu, log_var, par_tm = pl.pallas_call(
        _lstm_vaev_kernel,
        out_shape=(
            jax.ShapeDtypeStruct((B, L), jnp.float32),
            jax.ShapeDtypeStruct((B, L), jnp.float32),
            jax.ShapeDtypeStruct((seq_out, B, 3 * O), jnp.float32),
        ),
        in_specs=[_VMEM] * 18,
        out_specs=(_VMEM, _VMEM, _VMEM),
    )(x2d,
      packed["enc0"]["wih"], packed["enc0"]["whh"], packed["enc0"]["b"],
      packed["enc1"]["wih"], packed["enc1"]["whh"], packed["enc1"]["b"],
      packed["w_ml"], packed["b_ml"], eps,
      packed["dec0"]["wih"], packed["dec0"]["whh"], packed["dec0"]["b"],
      packed["dec1"]["wih"], packed["dec1"]["whh"], packed["dec1"]["b"],
      packed["w_par"], packed["b_par"])

    par_bf = jnp.transpose(par_tm, (1, 0, 2))             # (B, seq_out, 3*O)
    par1 = par_bf[..., 0:O]
    par2 = par_bf[..., O:2 * O]
    par3 = par_bf[..., 2 * O:3 * O]
    return x, mu, log_var, (par1, par2, par3)


# ----------------------------------------------------------------------------
# Deterministic parameter initialization (mirrors the PyTorch module's shapes)
# ----------------------------------------------------------------------------
def init_lstm_params(key, input_size, hidden_size):
    k = 1.0 / (hidden_size ** 0.5)
    k0, k1, k2, k3 = jax.random.split(key, 4)
    return dict(
        w_ih=jax.random.uniform(k0, (4 * hidden_size, input_size), jnp.float32, -k, k),
        w_hh=jax.random.uniform(k1, (4 * hidden_size, hidden_size), jnp.float32, -k, k),
        b_ih=jax.random.uniform(k2, (4 * hidden_size,), jnp.float32, -k, k),
        b_hh=jax.random.uniform(k3, (4 * hidden_size,), jnp.float32, -k, k),
    )


def init_linear_params(key, in_f, out_f):
    # kaiming_normal_ weights + zero bias, as in LSTM_VAEV.weight_init
    std = (2.0 / in_f) ** 0.5
    return dict(
        w=std * jax.random.normal(key, (out_f, in_f), dtype=jnp.float32),
        b=jnp.zeros((out_f,), dtype=jnp.float32),
    )


# ----------------------------------------------------------------------------
# Pure-JAX reference (same math, unpacked weights) for a correctness sanity check
# ----------------------------------------------------------------------------
def _lstm_ref(x_tm, p):
    H = p["w_hh"].shape[1]
    B = x_tm.shape[1]

    def step(carry, x_t):
        h, c = carry
        g = x_t @ p["w_ih"].T + h @ p["w_hh"].T + p["b_ih"] + p["b_hh"]
        i = jax.nn.sigmoid(g[:, 0:H])
        f = jax.nn.sigmoid(g[:, H:2 * H])
        gg = jnp.tanh(g[:, 2 * H:3 * H])
        o = jax.nn.sigmoid(g[:, 3 * H:4 * H])
        c = f * c + i * gg
        h = o * jnp.tanh(c)
        return (h, c), h

    init = (jnp.zeros((B, H), jnp.float32), jnp.zeros((B, H), jnp.float32))
    (h_last, _), ys = lax.scan(step, init, x_tm)
    return ys, h_last


def lstm_vaev_reference(raw, x, eps):
    B = x.shape[0]
    seq_out = raw["seq_out"]
    x_tm = jnp.transpose(x, (1, 0, 2))
    h_seq, _ = _lstm_ref(x_tm, raw["enc_lstm0"])
    _, h_enc = _lstm_ref(h_seq, raw["enc_lstm1"])
    mu = h_enc @ raw["mu"]["w"].T + raw["mu"]["b"]
    log_var = h_enc @ raw["log_var"]["w"].T + raw["log_var"]["b"]
    z = mu + eps * jnp.exp(0.5 * log_var)
    z_rep = jnp.broadcast_to(z[None], (seq_out, B, z.shape[1]))
    d0_seq, _ = _lstm_ref(z_rep, raw["dec_lstm0"])
    d1_seq, _ = _lstm_ref(d0_seq, raw["dec_lstm1"])
    d_bf = jnp.transpose(d1_seq, (1, 0, 2))
    par1 = d_bf @ raw["par1"]["w"].T + raw["par1"]["b"]
    par2 = _isrlu(d_bf @ raw["par2"]["w"].T + raw["par2"]["b"])
    par3 = _ctanh(d_bf @ raw["par3"]["w"].T + raw["par3"]["b"])
    return x, mu, log_var, (par1, par2, par3)


# ----------------------------------------------------------------------------
if __name__ == "__main__":
    # Small shapes consistent with the module's constructor.
    seq_in, seq_out = 8, 8
    no_features, output_size = 4, 4
    embedding_dim, latent_dim, n_layers = 8, 4, 1
    hidden_size = 2 * embedding_dim
    B = 2
    assert n_layers == 1, "kernel supports n_layers == 1 (as in the reference usage)"

    key = jax.random.PRNGKey(0)
    ks = jax.random.split(key, 11)
    raw = {
        "enc_lstm0": init_lstm_params(ks[0], no_features, hidden_size),
        "enc_lstm1": init_lstm_params(ks[1], hidden_size, embedding_dim),
        "mu": init_linear_params(ks[2], embedding_dim, latent_dim),
        "log_var": init_linear_params(ks[3], embedding_dim, latent_dim),
        "dec_lstm0": init_lstm_params(ks[4], latent_dim, embedding_dim),
        "dec_lstm1": init_lstm_params(ks[5], embedding_dim, hidden_size),
        "par1": init_linear_params(ks[6], hidden_size, output_size),
        "par2": init_linear_params(ks[7], hidden_size, output_size),
        "par3": init_linear_params(ks[8], hidden_size, output_size),
        "seq_out": seq_out,
    }
    packed = pack_params(raw)

    x = jax.random.normal(ks[9], (B, seq_in, no_features), dtype=jnp.float32)
    # TODO(synk): torch.manual_seed(0)/randn_like RNG stream cannot be reproduced;
    # the reparameterization noise comes from a deterministic jax.random stream.
    eps = jax.random.normal(ks[10], (B, latent_dim), dtype=jnp.float32)

    fwd = jax.jit(functools.partial(lstm_vaev_forward, packed))
    out = fwd(x, eps)
    jax.tree_util.tree_map(jax.block_until_ready, out)

    x_out, mu, log_var, (p1, p2, p3) = out
    assert x_out.shape == (B, seq_in, no_features)
    assert mu.shape == (B, latent_dim) and log_var.shape == (B, latent_dim)
    assert p1.shape == (B, seq_out, output_size)
    assert p2.shape == (B, seq_out, output_size)
    assert p3.shape == (B, seq_out, output_size)

    # Sanity check vs a pure-JAX reference (loose tolerance: f32 matmuls use MXU
    # bf16-pass decomposition at default precision, errors accumulate over S steps).
    ref = lstm_vaev_reference(raw, x, eps)
    for a, b in zip(jax.tree_util.tree_leaves(out), jax.tree_util.tree_leaves(ref)):
        assert a.shape == b.shape
        assert bool(jnp.all(jnp.isfinite(a)))
        assert float(jnp.max(jnp.abs(a - b))) < 5e-2, float(jnp.max(jnp.abs(a - b)))

    print("KERNEL_OK")
</pallas_src>

<mosaic_0001>
module attributes {stable_mosaic.version = 11 : i64} {
  func.func @_lstm_vaev_kernel(%arg0: memref<16x4xf32, #tpu.memory_space<vmem>>, %arg1: memref<4x512xf32, #tpu.memory_space<vmem>>, %arg2: memref<16x512xf32, #tpu.memory_space<vmem>>, %arg3: memref<1x512xf32, #tpu.memory_space<vmem>>, %arg4: memref<16x512xf32, #tpu.memory_space<vmem>>, %arg5: memref<8x512xf32, #tpu.memory_space<vmem>>, %arg6: memref<1x512xf32, #tpu.memory_space<vmem>>, %arg7: memref<8x8xf32, #tpu.memory_space<vmem>>, %arg8: memref<1x8xf32, #tpu.memory_space<vmem>>, %arg9: memref<2x4xf32, #tpu.memory_space<vmem>>, %arg10: memref<4x512xf32, #tpu.memory_space<vmem>>, %arg11: memref<8x512xf32, #tpu.memory_space<vmem>>, %arg12: memref<1x512xf32, #tpu.memory_space<vmem>>, %arg13: memref<8x512xf32, #tpu.memory_space<vmem>>, %arg14: memref<16x512xf32, #tpu.memory_space<vmem>>, %arg15: memref<1x512xf32, #tpu.memory_space<vmem>>, %arg16: memref<16x12xf32, #tpu.memory_space<vmem>>, %arg17: memref<1x12xf32, #tpu.memory_space<vmem>>, %arg18: memref<2x4xf32, #tpu.memory_space<vmem>>, %arg19: memref<2x4xf32, #tpu.memory_space<vmem>>, %arg20: memref<8x2x12xf32, #tpu.memory_space<vmem>>) attributes {dimension_semantics = [], scalar_prefetch = 0 : i64, scratch_operands = 0 : i64, tpu.core_type = #tpu.core_type<tc>} {
    %c0 = arith.constant 0 : index
    %c0_0 = arith.constant 0 : index
    %0 = vector.load %arg0[%c0, %c0_0] : memref<16x4xf32, #tpu.memory_space<vmem>>, vector<16x4xf32>
    %c0_1 = arith.constant 0 : index
    %c0_2 = arith.constant 0 : index
    %1 = vector.load %arg1[%c0_1, %c0_2] : memref<4x512xf32, #tpu.memory_space<vmem>>, vector<4x512xf32>
    %cst = arith.constant dense<0.000000e+00> : vector<16x512xf32>
    %2 = tpu.matmul %0, %1, %cst {dimension_numbers = #tpu.dot_dimension_numbers<[1], [0], [0], [1], [0, 0, 1, 1], [], []>} : vector<16x4xf32>, vector<4x512xf32>, vector<16x512xf32> -> vector<16x512xf32>
    %c0_3 = arith.constant 0 : index
    %c0_4 = arith.constant 0 : index
    %3 = vector.load %arg3[%c0_3, %c0_4] : memref<1x512xf32, #tpu.memory_space<vmem>>, vector<1x512xf32>
    %4 = vector.broadcast %3 : vector<1x512xf32> to vector<16x512xf32>
    %5 = arith.addf %2, %4 : vector<16x512xf32>
    %c0_5 = arith.constant 0 : index
    %c0_6 = arith.constant 0 : index
    %6 = vector.load %arg6[%c0_5, %c0_6] : memref<1x512xf32, #tpu.memory_space<vmem>>, vector<1x512xf32>
    %7 = vector.shape_cast %6 : vector<1x512xf32> to vector<1x512xf32>
    %8 = vector.broadcast %7 : vector<1x512xf32> to vector<2x512xf32>
    %cst_7 = arith.constant 0.000000e+00 : f32
    %9 = vector.broadcast %cst_7 : f32 to vector<2x16xf32>
    %cst_8 = arith.constant 0.000000e+00 : f32
    %10 = vector.broadcast %cst_8 : f32 to vector<2x16xf32>
    %cst_9 = arith.constant 0.000000e+00 : f32
    %11 = vector.broadcast %cst_9 : f32 to vector<2x8xf32>
    %cst_10 = arith.constant 0.000000e+00 : f32
    %12 = vector.broadcast %cst_10 : f32 to vector<2x8xf32>
    %13 = vector.extract_strided_slice %5 {offsets = [0, 0], sizes = [2, 512], strides = [1, 1]} : vector<16x512xf32> to vector<2x512xf32>
    %c0_11 = arith.constant 0 : index
    %c0_12 = arith.constant 0 : index
    %14 = vector.load %arg2[%c0_11, %c0_12] : memref<16x512xf32, #tpu.memory_space<vmem>>, vector<16x512xf32>
    %cst_13 = arith.constant dense<0.000000e+00> : vector<2x512xf32>
    %15 = tpu.matmul %9, %14, %cst_13 {dimension_numbers = #tpu.dot_dimension_numbers<[1], [0], [0], [1], [0, 0, 1, 1], [], []>} : vector<2x16xf32>, vector<16x512xf32>, vector<2x512xf32> -> vector<2x512xf32>
    %16 = arith.addf %13, %15 : vector<2x512xf32>
    %17 = vector.extract_strided_slice %16 {offsets = [0, 0], sizes = [2, 16], strides = [1, 1]} : vector<2x512xf32> to vector<2x16xf32>
    %18 = arith.negf %17 : vector<2x16xf32>
    %19 = math.exp %18 : vector<2x16xf32>
    %cst_14 = arith.constant 1.000000e+00 : f32
    %20 = vector.broadcast %cst_14 : f32 to vector<2x16xf32>
    %21 = arith.addf %20, %19 : vector<2x16xf32>
    %22 = arith.divf %20, %21 : vector<2x16xf32>
    %23 = vector.extract_strided_slice %16 {offsets = [0, 128], sizes = [2, 16], strides = [1, 1]} : vector<2x512xf32> to vector<2x16xf32>
    %24 = arith.negf %23 : vector<2x16xf32>
    %25 = math.exp %24 : vector<2x16xf32>
    %cst_15 = arith.constant 1.000000e+00 : f32
    %26 = vector.broadcast %cst_15 : f32 to vector<2x16xf32>
    %27 = arith.addf %26, %25 : vector<2x16xf32>
    %28 = arith.divf %26, %27 : vector<2x16xf32>
    %29 = vector.extract_strided_slice %16 {offsets = [0, 256], sizes = [2, 16], strides = [1, 1]} : vector<2x512xf32> to vector<2x16xf32>
    %30 = math.tanh %29 : vector<2x16xf32>
    %31 = vector.extract_strided_slice %16 {offsets = [0, 384], sizes = [2, 16], strides = [1, 1]} : vector<2x512xf32> to vector<2x16xf32>
    %32 = arith.negf %31 : vector<2x16xf32>
    %33 = math.exp %32 : vector<2x16xf32>
    %cst_16 = arith.constant 1.000000e+00 : f32
    %34 = vector.broadcast %cst_16 : f32 to vector<2x16xf32>
    %35 = arith.addf %34, %33 : vector<2x16xf32>
    %36 = arith.divf %34, %35 : vector<2x16xf32>
    %37 = arith.mulf %28, %10 : vector<2x16xf32>
    %38 = arith.mulf %22, %30 : vector<2x16xf32>
    %39 = arith.addf %37, %38 : vector<2x16xf32>
    %40 = math.tanh %39 : vector<2x16xf32>
    %41 = arith.mulf %36, %40 : vector<2x16xf32>
    %c0_17 = arith.constant 0 : index
    %c0_18 = arith.constant 0 : index
    %42 = vector.load %arg4[%c0_17, %c0_18] : memref<16x512xf32, #tpu.memory_space<vmem>>, vector<16x512xf32>
    %cst_19 = arith.constant dense<0.000000e+00> : vector<2x512xf32>
    %43 = tpu.matmul %41, %42, %cst_19 {dimension_numbers = #tpu.dot_dimension_numbers<[1], [0], [0], [1], [0, 0, 1, 1], [], []>} : vector<2x16xf32>, vector<16x512xf32>, vector<2x512xf32> -> vector<2x512xf32>
    %c0_20 = arith.constant 0 : index
    %c0_21 = arith.constant 0 : index
    %44 = vector.load %arg5[%c0_20, %c0_21] : memref<8x512xf32, #tpu.memory_space<vmem>>, vector<8x512xf32>
    %cst_22 = arith.constant dense<0.000000e+00> : vector<2x512xf32>
    %45 = tpu.matmul %11, %44, %cst_22 {dimension_numbers = #tpu.dot_dimension_numbers<[1], [0], [0], [1], [0, 0, 1, 1], [], []>} : vector<2x8xf32>, vector<8x512xf32>, vector<2x512xf32> -> vector<2x512xf32>
    %46 = arith.addf %43, %45 : vector<2x512xf32>
    %47 = arith.addf %46, %8 : vector<2x512xf32>
    %48 = vector.extract_strided_slice %47 {offsets = [0, 0], sizes = [2, 8], strides = [1, 1]} : vector<2x512xf32> to vector<2x8xf32>
    %49 = arith.negf %48 : vector<2x8xf32>
    %50 = math.exp %49 : vector<2x8xf32>
    %cst_23 = arith.constant 1.000000e+00 : f32
    %51 = vector.broadcast %cst_23 : f32 to vector<2x8xf32>
    %52 = arith.addf %51, %50 : vector<2x8xf32>
    %53 = arith.divf %51, %52 : vector<2x8xf32>
    %54 = vector.extract_strided_slice %47 {offsets = [0, 128], sizes = [2, 8], strides = [1, 1]} : vector<2x512xf32> to vector<2x8xf32>
    %55 = arith.negf %54 : vector<2x8xf32>
    %56 = math.exp %55 : vector<2x8xf32>
    %cst_24 = arith.constant 1.000000e+00 : f32
    %57 = vector.broadcast %cst_24 : f32 to vector<2x8xf32>
    %58 = arith.addf %57, %56 : vector<2x8xf32>
    %59 = arith.divf %57, %58 : vector<2x8xf32>
    %60 = vector.extract_strided_slice %47 {offsets = [0, 256], sizes = [2, 8], strides = [1, 1]} : vector<2x512xf32> to vector<2x8xf32>
    %61 = math.tanh %60 : vector<2x8xf32>
    %62 = vector.extract_strided_slice %47 {offsets = [0, 384], sizes = [2, 8], strides = [1, 1]} : vector<2x512xf32> to vector<2x8xf32>
    %63 = arith.negf %62 : vector<2x8xf32>
    %64 = math.exp %63 : vector<2x8xf32>
    %cst_25 = arith.constant 1.000000e+00 : f32
    %65 = vector.broadcast %cst_25 : f32 to vector<2x8xf32>
    %66 = arith.addf %65, %64 : vector<2x8xf32>
    %67 = arith.divf %65, %66 : vector<2x8xf32>
    %68 = arith.mulf %59, %12 : vector<2x8xf32>
    %69 = arith.mulf %53, %61 : vector<2x8xf32>
    %70 = arith.addf %68, %69 : vector<2x8xf32>
    %71 = math.tanh %70 : vector<2x8xf32>
    %72 = arith.mulf %67, %71 : vector<2x8xf32>
    %73 = vector.extract_strided_slice %5 {offsets = [2, 0], sizes = [2, 512], strides = [1, 1]} : vector<16x512xf32> to vector<2x512xf32>
    %c0_26 = arith.constant 0 : index
    %c0_27 = arith.constant 0 : index
    %74 = vector.load %arg2[%c0_26, %c0_27] : memref<16x512xf32, #tpu.memory_space<vmem>>, vector<16x512xf32>
    %cst_28 = arith.constant dense<0.000000e+00> : vector<2x512xf32>
    %75 = tpu.matmul %41, %74, %cst_28 {dimension_numbers = #tpu.dot_dimension_numbers<[1], [0], [0], [1], [0, 0, 1, 1], [], []>} : vector<2x16xf32>, vector<16x512xf32>, vector<2x512xf32> -> vector<2x512xf32>
    %76 = arith.addf %73, %75 : vector<2x512xf32>
    %77 = vector.extract_strided_slice %76 {offsets = [0, 0], sizes = [2, 16], strides = [1, 1]} : vector<2x512xf32> to vector<2x16xf32>
    %78 = arith.negf %77 : vector<2x16xf32>
    %79 = math.exp %78 : vector<2x16xf32>
    %cst_29 = arith.constant 1.000000e+00 : f32
    %80 = vector.broadcast %cst_29 : f32 to vector<2x16xf32>
    %81 = arith.addf %80, %79 : vector<2x16xf32>
    %82 = arith.divf %80, %81 : vector<2x16xf32>
    %83 = vector.extract_strided_slice %76 {offsets = [0, 128], sizes = [2, 16], strides = [1, 1]} : vector<2x512xf32> to vector<2x16xf32>
    %84 = arith.negf %83 : vector<2x16xf32>
    %85 = math.exp %84 : vector<2x16xf32>
    %cst_30 = arith.constant 1.000000e+00 : f32
    %86 = vector.broadcast %cst_30 : f32 to vector<2x16xf32>
    %87 = arith.addf %86, %85 : vector<2x16xf32>
    %88 = arith.divf %86, %87 : vector<2x16xf32>
    %89 = vector.extract_strided_slice %76 {offsets = [0, 256], sizes = [2, 16], strides = [1, 1]} : vector<2x512xf32> to vector<2x16xf32>
    %90 = math.tanh %89 : vector<2x16xf32>
    %91 = vector.extract_strided_slice %76 {offsets = [0, 384], sizes = [2, 16], strides = [1, 1]} : vector<2x512xf32> to vector<2x16xf32>
    %92 = arith.negf %91 : vector<2x16xf32>
    %93 = math.exp %92 : vector<2x16xf32>
    %cst_31 = arith.constant 1.000000e+00 : f32
    %94 = vector.broadcast %cst_31 : f32 to vector<2x16xf32>
    %95 = arith.addf %94, %93 : vector<2x16xf32>
    %96 = arith.divf %94, %95 : vector<2x16xf32>
    %97 = arith.mulf %88, %39 : vector<2x16xf32>
    %98 = arith.mulf %82, %90 : vector<2x16xf32>
    %99 = arith.addf %97, %98 : vector<2x16xf32>
    %100 = math.tanh %99 : vector<2x16xf32>
    %101 = arith.mulf %96, %100 : vector<2x16xf32>
    %c0_32 = arith.constant 0 : index
    %c0_33 = arith.constant 0 : index
    %102 = vector.load %arg4[%c0_32, %c0_33] : memref<16x512xf32, #tpu.memory_space<vmem>>, vector<16x512xf32>
    %cst_34 = arith.constant dense<0.000000e+00> : vector<2x512xf32>
    %103 = tpu.matmul %101, %102, %cst_34 {dimension_numbers = #tpu.dot_dimension_numbers<[1], [0], [0], [1], [0, 0, 1, 1], [], []>} : vector<2x16xf32>, vector<16x512xf32>, vector<2x512xf32> -> vector<2x512xf32>
    %c0_35 = arith.constant 0 : index
    %c0_36 = arith.constant 0 : index
    %104 = vector.load %arg5[%c0_35, %c0_36] : memref<8x512xf32, #tpu.memory_space<vmem>>, vector<8x512xf32>
    %cst_37 = arith.constant dense<0.000000e+00> : vector<2x512xf32>
    %105 = tpu.matmul %72, %104, %cst_37 {dimension_numbers = #tpu.dot_dimension_numbers<[1], [0], [0], [1], [0, 0, 1, 1], [], []>} : vector<2x8xf32>, vector<8x512xf32>, vector<2x512xf32> -> vector<2x512xf32>
    %106 = arith.addf %103, %105 : vector<2x512xf32>
    %107 = arith.addf %106, %8 : vector<2x512xf32>
    %108 = vector.extract_strided_slice %107 {offsets = [0, 0], sizes = [2, 8], strides = [1, 1]} : vector<2x512xf32> to vector<2x8xf32>
    %109 = arith.negf %108 : vector<2x8xf32>
    %110 = math.exp %109 : vector<2x8xf32>
    %cst_38 = arith.constant 1.000000e+00 : f32
    %111 = vector.broadcast %cst_38 : f32 to vector<2x8xf32>
    %112 = arith.addf %111, %110 : vector<2x8xf32>
    %113 = arith.divf %111, %112 : vector<2x8xf32>
    %114 = vector.extract_strided_slice %107 {offsets = [0, 128], sizes = [2, 8], strides = [1, 1]} : vector<2x512xf32> to vector<2x8xf32>
    %115 = arith.negf %114 : vector<2x8xf32>
    %116 = math.exp %115 : vector<2x8xf32>
    %cst_39 = arith.constant 1.000000e+00 : f32
    %117 = vector.broadcast %cst_39 : f32 to vector<2x8xf32>
    %118 = arith.addf %117, %116 : vector<2x8xf32>
    %119 = arith.divf %117, %118 : vector<2x8xf32>
    %120 = vector.extract_strided_slice %107 {offsets = [0, 256], sizes = [2, 8], strides = [1, 1]} : vector<2x512xf32> to vector<2x8xf32>
    %121 = math.tanh %120 : vector<2x8xf32>
    %122 = vector.extract_strided_slice %107 {offsets = [0, 384], sizes = [2, 8], strides = [1, 1]} : vector<2x512xf32> to vector<2x8xf32>
    %123 = arith.negf %122 : vector<2x8xf32>
    %124 = math.exp %123 : vector<2x8xf32>
    %cst_40 = arith.constant 1.000000e+00 : f32
    %125 = vector.broadcast %cst_40 : f32 to vector<2x8xf32>
    %126 = arith.addf %125, %124 : vector<2x8xf32>
    %127 = arith.divf %125, %126 : vector<2x8xf32>
    %128 = arith.mulf %119, %70 : vector<2x8xf32>
    %129 = arith.mulf %113, %121 : vector<2x8xf32>
    %130 = arith.addf %128, %129 : vector<2x8xf32>
    %131 = math.tanh %130 : vector<2x8xf32>
    %132 = arith.mulf %127, %131 : vector<2x8xf32>
    %133 = vector.extract_strided_slice %5 {offsets = [4, 0], sizes = [2, 512], strides = [1, 1]} : vector<16x512xf32> to vector<2x512xf32>
    %c0_41 = arith.constant 0 : index
    %c0_42 = arith.constant 0 : index
    %134 = vector.load %arg2[%c0_41, %c0_42] : memref<16x512xf32, #tpu.memory_space<vmem>>, vector<16x512xf32>
    %cst_43 = arith.constant dense<0.000000e+00> : vector<2x512xf32>
    %135 = tpu.matmul %101, %134, %cst_43 {dimension_numbers = #tpu.dot_dimension_numbers<[1], [0], [0], [1], [0, 0, 1, 1], [], []>} : vector<2x16xf32>, vector<16x512xf32>, vector<2x512xf32> -> vector<2x512xf32>
    %136 = arith.addf %133, %135 : vector<2x512xf32>
    %137 = vector.extract_strided_slice %136 {offsets = [0, 0], sizes = [2, 16], strides = [1, 1]} : vector<2x512xf32> to vector<2x16xf32>
    %138 = arith.negf %137 : vector<2x16xf32>
    %139 = math.exp %138 : vector<2x16xf32>
    %cst_44 = arith.constant 1.000000e+00 : f32
    %140 = vector.broadcast %cst_44 : f32 to vector<2x16xf32>
    %141 = arith.addf %140, %139 : vector<2x16xf32>
    %142 = arith.divf %140, %141 : vector<2x16xf32>
    %143 = vector.extract_strided_slice %136 {offsets = [0, 128], sizes = [2, 16], strides = [1, 1]} : vector<2x512xf32> to vector<2x16xf32>
    %144 = arith.negf %143 : vector<2x16xf32>
    %145 = math.exp %144 : vector<2x16xf32>
    %cst_45 = arith.constant 1.000000e+00 : f32
    %146 = vector.broadcast %cst_45 : f32 to vector<2x16xf32>
    %147 = arith.addf %146, %145 : vector<2x16xf32>
    %148 = arith.divf %146, %147 : vector<2x16xf32>
    %149 = vector.extract_strided_slice %136 {offsets = [0, 256], sizes = [2, 16], strides = [1, 1]} : vector<2x512xf32> to vector<2x16xf32>
    %150 = math.tanh %149 : vector<2x16xf32>
    %151 = vector.extract_strided_slice %136 {offsets = [0, 384], sizes = [2, 16], strides = [1, 1]} : vector<2x512xf32> to vector<2x16xf32>
    %152 = arith.negf %151 : vector<2x16xf32>
    %153 = math.exp %152 : vector<2x16xf32>
    %cst_46 = arith.constant 1.000000e+00 : f32
    %154 = vector.broadcast %cst_46 : f32 to vector<2x16xf32>
    %155 = arith.addf %154, %153 : vector<2x16xf32>
    %156 = arith.divf %154, %155 : vector<2x16xf32>
    %157 = arith.mulf %148, %99 : vector<2x16xf32>
    %158 = arith.mulf %142, %150 : vector<2x16xf32>
    %159 = arith.addf %157, %158 : vector<2x16xf32>
    %160 = math.tanh %159 : vector<2x16xf32>
    %161 = arith.mulf %156, %160 : vector<2x16xf32>
    %c0_47 = arith.constant 0 : index
    %c0_48 = arith.constant 0 : index
    %162 = vector.load %arg4[%c0_47, %c0_48] : memref<16x512xf32, #tpu.memory_space<vmem>>, vector<16x512xf32>
    %cst_49 = arith.constant dense<0.000000e+00> : vector<2x512xf32>
    %163 = tpu.matmul %161, %162, %cst_49 {dimension_numbers = #tpu.dot_dimension_numbers<[1], [0], [0], [1], [0, 0, 1, 1], [], []>} : vector<2x16xf32>, vector<16x512xf32>, vector<2x512xf32> -> vector<2x512xf32>
    %c0_50 = arith.constant 0 : index
    %c0_51 = arith.constant 0 : index
    %164 = vector.load %arg5[%c0_50, %c0_51] : memref<8x512xf32, #tpu.memory_space<vmem>>, vector<8x512xf32>
    %cst_52 = arith.constant dense<0.000000e+00> : vector<2x512xf32>
    %165 = tpu.matmul %132, %164, %cst_52 {dimension_numbers = #tpu.dot_dimension_numbers<[1], [0], [0], [1], [0, 0, 1, 1], [], []>} : vector<2x8xf32>, vector<8x512xf32>, vector<2x512xf32> -> vector<2x512xf32>
    %166 = arith.addf %163, %165 : vector<2x512xf32>
    %167 = arith.addf %166, %8 : vector<2x512xf32>
    %168 = vector.extract_strided_slice %167 {offsets = [0, 0], sizes = [2, 8], strides = [1, 1]} : vector<2x512xf32> to vector<2x8xf32>
    %169 = arith.negf %168 : vector<2x8xf32>
    %170 = math.exp %169 : vector<2x8xf32>
    %cst_53 = arith.constant 1.000000e+00 : f32
    %171 = vector.broadcast %cst_53 : f32 to vector<2x8xf32>
    %172 = arith.addf %171, %170 : vector<2x8xf32>
    %173 = arith.divf %171, %172 : vector<2x8xf32>
    %174 = vector.extract_strided_slice %167 {offsets = [0, 128], sizes = [2, 8], strides = [1, 1]} : vector<2x512xf32> to vector<2x8xf32>
    %175 = arith.negf %174 : vector<2x8xf32>
    %176 = math.exp %175 : vector<2x8xf32>
    %cst_54 = arith.constant 1.000000e+00 : f32
    %177 = vector.broadcast %cst_54 : f32 to vector<2x8xf32>
    %178 = arith.addf %177, %176 : vector<2x8xf32>
    %179 = arith.divf %177, %178 : vector<2x8xf32>
    %180 = vector.extract_strided_slice %167 {offsets = [0, 256], sizes = [2, 8], strides = [1, 1]} : vector<2x512xf32> to vector<2x8xf32>
    %181 = math.tanh %180 : vector<2x8xf32>
    %182 = vector.extract_strided_slice %167 {offsets = [0, 384], sizes = [2, 8], strides = [1, 1]} : vector<2x512xf32> to vector<2x8xf32>
    %183 = arith.negf %182 : vector<2x8xf32>
    %184 = math.exp %183 : vector<2x8xf32>
    %cst_55 = arith.constant 1.000000e+00 : f32
    %185 = vector.broadcast %cst_55 : f32 to vector<2x8xf32>
    %186 = arith.addf %185, %184 : vector<2x8xf32>
    %187 = arith.divf %185, %186 : vector<2x8xf32>
    %188 = arith.mulf %179, %130 : vector<2x8xf32>
    %189 = arith.mulf %173, %181 : vector<2x8xf32>
    %190 = arith.addf %188, %189 : vector<2x8xf32>
    %191 = math.tanh %190 : vector<2x8xf32>
    %192 = arith.mulf %187, %191 : vector<2x8xf32>
    %193 = vector.extract_strided_slice %5 {offsets = [6, 0], sizes = [2, 512], strides = [1, 1]} : vector<16x512xf32> to vector<2x512xf32>
    %c0_56 = arith.constant 0 : index
    %c0_57 = arith.constant 0 : index
    %194 = vector.load %arg2[%c0_56, %c0_57] : memref<16x512xf32, #tpu.memory_space<vmem>>, vector<16x512xf32>
    %cst_58 = arith.constant dense<0.000000e+00> : vector<2x512xf32>
    %195 = tpu.matmul %161, %194, %cst_58 {dimension_numbers = #tpu.dot_dimension_numbers<[1], [0], [0], [1], [0, 0, 1, 1], [], []>} : vector<2x16xf32>, vector<16x512xf32>, vector<2x512xf32> -> vector<2x512xf32>
    %196 = arith.addf %193, %195 : vector<2x512xf32>
    %197 = vector.extract_strided_slice %196 {offsets = [0, 0], sizes = [2, 16], strides = [1, 1]} : vector<2x512xf32> to vector<2x16xf32>
    %198 = arith.negf %197 : vector<2x16xf32>
    %199 = math.exp %198 : vector<2x16xf32>
    %cst_59 = arith.constant 1.000000e+00 : f32
    %200 = vector.broadcast %cst_59 : f32 to vector<2x16xf32>
    %201 = arith.addf %200, %199 : vector<2x16xf32>
    %202 = arith.divf %200, %201 : vector<2x16xf32>
    %203 = vector.extract_strided_slice %196 {offsets = [0, 128], sizes = [2, 16], strides = [1, 1]} : vector<2x512xf32> to vector<2x16xf32>
    %204 = arith.negf %203 : vector<2x16xf32>
    %205 = math.exp %204 : vector<2x16xf32>
    %cst_60 = arith.constant 1.000000e+00 : f32
    %206 = vector.broadcast %cst_60 : f32 to vector<2x16xf32>
    %207 = arith.addf %206, %205 : vector<2x16xf32>
    %208 = arith.divf %206, %207 : vector<2x16xf32>
    %209 = vector.extract_strided_slice %196 {offsets = [0, 256], sizes = [2, 16], strides = [1, 1]} : vector<2x512xf32> to vector<2x16xf32>
    %210 = math.tanh %209 : vector<2x16xf32>
    %211 = vector.extract_strided_slice %196 {offsets = [0, 384], sizes = [2, 16], strides = [1, 1]} : vector<2x512xf32> to vector<2x16xf32>
    %212 = arith.negf %211 : vector<2x16xf32>
    %213 = math.exp %212 : vector<2x16xf32>
    %cst_61 = arith.constant 1.000000e+00 : f32
    %214 = vector.broadcast %cst_61 : f32 to vector<2x16xf32>
    %215 = arith.addf %214, %213 : vector<2x16xf32>
    %216 = arith.divf %214, %215 : vector<2x16xf32>
    %217 = arith.mulf %208, %159 : vector<2x16xf32>
    %218 = arith.mulf %202, %210 : vector<2x16xf32>
    %219 = arith.addf %217, %218 : vector<2x16xf32>
    %220 = math.tanh %219 : vector<2x16xf32>
    %221 = arith.mulf %216, %220 : vector<2x16xf32>
    %c0_62 = arith.constant 0 : index
    %c0_63 = arith.constant 0 : index
    %222 = vector.load %arg4[%c0_62, %c0_63] : memref<16x512xf32, #tpu.memory_space<vmem>>, vector<16x512xf32>
    %cst_64 = arith.constant dense<0.000000e+00> : vector<2x512xf32>
    %223 = tpu.matmul %221, %222, %cst_64 {dimension_numbers = #tpu.dot_dimension_numbers<[1], [0], [0], [1], [0, 0, 1, 1], [], []>} : vector<2x16xf32>, vector<16x512xf32>, vector<2x512xf32> -> vector<2x512xf32>
    %c0_65 = arith.constant 0 : index
    %c0_66 = arith.constant 0 : index
    %224 = vector.load %arg5[%c0_65, %c0_66] : memref<8x512xf32, #tpu.memory_space<vmem>>, vector<8x512xf32>
    %cst_67 = arith.constant dense<0.000000e+00> : vector<2x512xf32>
    %225 = tpu.matmul %192, %224, %cst_67 {dimension_numbers = #tpu.dot_dimension_numbers<[1], [0], [0], [1], [0, 0, 1, 1], [], []>} : vector<2x8xf32>, vector<8x512xf32>, vector<2x512xf32> -> vector<2x512xf32>
    %226 = arith.addf %223, %225 : vector<2x512xf32>
    %227 = arith.addf %226, %8 : vector<2x512xf32>
    %228 = vector.extract_strided_slice %227 {offsets = [0, 0], sizes = [2, 8], strides = [1, 1]} : vector<2x512xf32> to vector<2x8xf32>
    %229 = arith.negf %228 : vector<2x8xf32>
    %230 = math.exp %229 : vector<2x8xf32>
    %cst_68 = arith.constant 1.000000e+00 : f32
    %231 = vector.broadcast %cst_68 : f32 to vector<2x8xf32>
    %232 = arith.addf %231, %230 : vector<2x8xf32>
    %233 = arith.divf %231, %232 : vector<2x8xf32>
    %234 = vector.extract_strided_slice %227 {offsets = [0, 128], sizes = [2, 8], strides = [1, 1]} : vector<2x512xf32> to vector<2x8xf32>
    %235 = arith.negf %234 : vector<2x8xf32>
    %236 = math.exp %235 : vector<2x8xf32>
    %cst_69 = arith.constant 1.000000e+00 : f32
    %237 = vector.broadcast %cst_69 : f32 to vector<2x8xf32>
    %238 = arith.addf %237, %236 : vector<2x8xf32>
    %239 = arith.divf %237, %238 : vector<2x8xf32>
    %240 = vector.extract_strided_slice %227 {offsets = [0, 256], sizes = [2, 8], strides = [1, 1]} : vector<2x512xf32> to vector<2x8xf32>
    %241 = math.tanh %240 : vector<2x8xf32>
    %242 = vector.extract_strided_slice %227 {offsets = [0, 384], sizes = [2, 8], strides = [1, 1]} : vector<2x512xf32> to vector<2x8xf32>
    %243 = arith.negf %242 : vector<2x8xf32>
    %244 = math.exp %243 : vector<2x8xf32>
    %cst_70 = arith.constant 1.000000e+00 : f32
    %245 = vector.broadcast %cst_70 : f32 to vector<2x8xf32>
    %246 = arith.addf %245, %244 : vector<2x8xf32>
    %247 = arith.divf %245, %246 : vector<2x8xf32>
    %248 = arith.mulf %239, %190 : vector<2x8xf32>
    %249 = arith.mulf %233, %241 : vector<2x8xf32>
    %250 = arith.addf %248, %249 : vector<2x8xf32>
    %251 = math.tanh %250 : vector<2x8xf32>
    %252 = arith.mulf %247, %251 : vector<2x8xf32>
    %253 = vector.extract_strided_slice %5 {offsets = [8, 0], sizes = [2, 512], strides = [1, 1]} : vector<16x512xf32> to vector<2x512xf32>
    %c0_71 = arith.constant 0 : index
    %c0_72 = arith.constant 0 : index
    %254 = vector.load %arg2[%c0_71, %c0_72] : memref<16x512xf32, #tpu.memory_space<vmem>>, vector<16x512xf32>
    %cst_73 = arith.constant dense<0.000000e+00> : vector<2x512xf32>
    %255 = tpu.matmul %221, %254, %cst_73 {dimension_numbers = #tpu.dot_dimension_numbers<[1], [0], [0], [1], [0, 0, 1, 1], [], []>} : vector<2x16xf32>, vector<16x512xf32>, vector<2x512xf32> -> vector<2x512xf32>
    %256 = arith.addf %253, %255 : vector<2x512xf32>
    %257 = vector.extract_strided_slice %256 {offsets = [0, 0], sizes = [2, 16], strides = [1, 1]} : vector<2x512xf32> to vector<2x16xf32>
    %258 = arith.negf %257 : vector<2x16xf32>
    %259 = math.exp %258 : vector<2x16xf32>
    %cst_74 = arith.constant 1.000000e+00 : f32
    %260 = vector.broadcast %cst_74 : f32 to vector<2x16xf32>
    %261 = arith.addf %260, %259 : vector<2x16xf32>
    %262 = arith.divf %260, %261 : vector<2x16xf32>
    %263 = vector.extract_strided_slice %256 {offsets = [0, 128], sizes = [2, 16], strides = [1, 1]} : vector<2x512xf32> to vector<2x16xf32>
    %264 = arith.negf %263 : vector<2x16xf32>
    %265 = math.exp %264 : vector<2x16xf32>
    %cst_75 = arith.constant 1.000000e+00 : f32
    %266 = vector.broadcast %cst_75 : f32 to vector<2x16xf32>
    %267 = arith.addf %266, %265 : vector<2x16xf32>
    %268 = arith.divf %266, %267 : vector<2x16xf32>
    %269 = vector.extract_strided_slice %256 {offsets = [0, 256], sizes = [2, 16], strides = [1, 1]} : vector<2x512xf32> to vector<2x16xf32>
    %270 = math.tanh %269 : vector<2x16xf32>
    %271 = vector.extract_strided_slice %256 {offsets = [0, 384], sizes = [2, 16], strides = [1, 1]} : vector<2x512xf32> to vector<2x16xf32>
    %272 = arith.negf %271 : vector<2x16xf32>
    %273 = math.exp %272 : vector<2x16xf32>
    %cst_76 = arith.constant 1.000000e+00 : f32
    %274 = vector.broadcast %cst_76 : f32 to vector<2x16xf32>
    %275 = arith.addf %274, %273 : vector<2x16xf32>
    %276 = arith.divf %274, %275 : vector<2x16xf32>
    %277 = arith.mulf %268, %219 : vector<2x16xf32>
    %278 = arith.mulf %262, %270 : vector<2x16xf32>
    %279 = arith.addf %277, %278 : vector<2x16xf32>
    %280 = math.tanh %279 : vector<2x16xf32>
    %281 = arith.mulf %276, %280 : vector<2x16xf32>
    %c0_77 = arith.constant 0 : index
    %c0_78 = arith.constant 0 : index
    %282 = vector.load %arg4[%c0_77, %c0_78] : memref<16x512xf32, #tpu.memory_space<vmem>>, vector<16x512xf32>
    %cst_79 = arith.constant dense<0.000000e+00> : vector<2x512xf32>
    %283 = tpu.matmul %281, %282, %cst_79 {dimension_numbers = #tpu.dot_dimension_numbers<[1], [0], [0], [1], [0, 0, 1, 1], [], []>} : vector<2x16xf32>, vector<16x512xf32>, vector<2x512xf32> -> vector<2x512xf32>
    %c0_80 = arith.constant 0 : index
    %c0_81 = arith.constant 0 : index
    %284 = vector.load %arg5[%c0_80, %c0_81] : memref<8x512xf32, #tpu.memory_space<vmem>>, vector<8x512xf32>
    %cst_82 = arith.constant dense<0.000000e+00> : vector<2x512xf32>
    %285 = tpu.matmul %252, %284, %cst_82 {dimension_numbers = #tpu.dot_dimension_numbers<[1], [0], [0], [1], [0, 0, 1, 1], [], []>} : vector<2x8xf32>, vector<8x512xf32>, vector<2x512xf32> -> vector<2x512xf32>
    %286 = arith.addf %283, %285 : vector<2x512xf32>
    %287 = arith.addf %286, %8 : vector<2x512xf32>
    %288 = vector.extract_strided_slice %287 {offsets = [0, 0], sizes = [2, 8], strides = [1, 1]} : vector<2x512xf32> to vector<2x8xf32>
    %289 = arith.negf %288 : vector<2x8xf32>
    %290 = math.exp %289 : vector<2x8xf32>
    %cst_83 = arith.constant 1.000000e+00 : f32
    %291 = vector.broadcast %cst_83 : f32 to vector<2x8xf32>
    %292 = arith.addf %291, %290 : vector<2x8xf32>
    %293 = arith.divf %291, %292 : vector<2x8xf32>
    %294 = vector.extract_strided_slice %287 {offsets = [0, 128], sizes = [2, 8], strides = [1, 1]} : vector<2x512xf32> to vector<2x8xf32>
    %295 = arith.negf %294 : vector<2x8xf32>
    %296 = math.exp %295 : vector<2x8xf32>
    %cst_84 = arith.constant 1.000000e+00 : f32
    %297 = vector.broadcast %cst_84 : f32 to vector<2x8xf32>
    %298 = arith.addf %297, %296 : vector<2x8xf32>
    %299 = arith.divf %297, %298 : vector<2x8xf32>
    %300 = vector.extract_strided_slice %287 {offsets = [0, 256], sizes = [2, 8], strides = [1, 1]} : vector<2x512xf32> to vector<2x8xf32>
    %301 = math.tanh %300 : vector<2x8xf32>
    %302 = vector.extract_strided_slice %287 {offsets = [0, 384], sizes = [2, 8], strides = [1, 1]} : vector<2x512xf32> to vector<2x8xf32>
    %303 = arith.negf %302 : vector<2x8xf32>
    %304 = math.exp %303 : vector<2x8xf32>
    %cst_85 = arith.constant 1.000000e+00 : f32
    %305 = vector.broadcast %cst_85 : f32 to vector<2x8xf32>
    %306 = arith.addf %305, %304 : vector<2x8xf32>
    %307 = arith.divf %305, %306 : vector<2x8xf32>
    %308 = arith.mulf %299, %250 : vector<2x8xf32>
    %309 = arith.mulf %293, %301 : vector<2x8xf32>
    %310 = arith.addf %308, %309 : vector<2x8xf32>
    %311 = math.tanh %310 : vector<2x8xf32>
    %312 = arith.mulf %307, %311 : vector<2x8xf32>
    %313 = vector.extract_strided_slice %5 {offsets = [10, 0], sizes = [2, 512], strides = [1, 1]} : vector<16x512xf32> to vector<2x512xf32>
    %c0_86 = arith.constant 0 : index
    %c0_87 = arith.constant 0 : index
    %314 = vector.load %arg2[%c0_86, %c0_87] : memref<16x512xf32, #tpu.memory_space<vmem>>, vector<16x512xf32>
    %cst_88 = arith.constant dense<0.000000e+00> : vector<2x512xf32>
    %315 = tpu.matmul %281, %314, %cst_88 {dimension_numbers = #tpu.dot_dimension_numbers<[1], [0], [0], [1], [0, 0, 1, 1], [], []>} : vector<2x16xf32>, vector<16x512xf32>, vector<2x512xf32> -> vector<2x512xf32>
    %316 = arith.addf %313, %315 : vector<2x512xf32>
    %317 = vector.extract_strided_slice %316 {offsets = [0, 0], sizes = [2, 16], strides = [1, 1]} : vector<2x512xf32> to vector<2x16xf32>
    %318 = arith.negf %317 : vector<2x16xf32>
    %319 = math.exp %318 : vector<2x16xf32>
    %cst_89 = arith.constant 1.000000e+00 : f32
    %320 = vector.broadcast %cst_89 : f32 to vector<2x16xf32>
    %321 = arith.addf %320, %319 : vector<2x16xf32>
    %322 = arith.divf %320, %321 : vector<2x16xf32>
    %323 = vector.extract_strided_slice %316 {offsets = [0, 128], sizes = [2, 16], strides = [1, 1]} : vector<2x512xf32> to vector<2x16xf32>
    %324 = arith.negf %323 : vector<2x16xf32>
    %325 = math.exp %324 : vector<2x16xf32>
    %cst_90 = arith.constant 1.000000e+00 : f32
    %326 = vector.broadcast %cst_90 : f32 to vector<2x16xf32>
    %327 = arith.addf %326, %325 : vector<2x16xf32>
    %328 = arith.divf %326, %327 : vector<2x16xf32>
    %329 = vector.extract_strided_slice %316 {offsets = [0, 256], sizes = [2, 16], strides = [1, 1]} : vector<2x512xf32> to vector<2x16xf32>
    %330 = math.tanh %329 : vector<2x16xf32>
    %331 = vector.extract_strided_slice %316 {offsets = [0, 384], sizes = [2, 16], strides = [1, 1]} : vector<2x512xf32> to vector<2x16xf32>
    %332 = arith.negf %331 : vector<2x16xf32>
    %333 = math.exp %332 : vector<2x16xf32>
    %cst_91 = arith.constant 1.000000e+00 : f32
    %334 = vector.broadcast %cst_91 : f32 to vector<2x16xf32>
    %335 = arith.addf %334, %333 : vector<2x16xf32>
    %336 = arith.divf %334, %335 : vector<2x16xf32>
    %337 = arith.mulf %328, %279 : vector<2x16xf32>
    %338 = arith.mulf %322, %330 : vector<2x16xf32>
    %339 = arith.addf %337, %338 : vector<2x16xf32>
    %340 = math.tanh %339 : vector<2x16xf32>
    %341 = arith.mulf %336, %340 : vector<2x16xf32>
    %c0_92 = arith.constant 0 : index
    %c0_93 = arith.constant 0 : index
    %342 = vector.load %arg4[%c0_92, %c0_93] : memref<16x512xf32, #tpu.memory_space<vmem>>, vector<16x512xf32>
    %cst_94 = arith.constant dense<0.000000e+00> : vector<2x512xf32>
    %343 = tpu.matmul %341, %342, %cst_94 {dimension_numbers = #tpu.dot_dimension_numbers<[1], [0], [0], [1], [0, 0, 1, 1], [], []>} : vector<2x16xf32>, vector<16x512xf32>, vector<2x512xf32> -> vector<2x512xf32>
    %c0_95 = arith.constant 0 : index
    %c0_96 = arith.constant 0 : index
    %344 = vector.load %arg5[%c0_95, %c0_96] : memref<8x512xf32, #tpu.memory_space<vmem>>, vector<8x512xf32>
    %cst_97 = arith.constant dense<0.000000e+00> : vector<2x512xf32>
    %345 = tpu.matmul %312, %344, %cst_97 {dimension_numbers = #tpu.dot_dimension_numbers<[1], [0], [0], [1], [0, 0, 1, 1], [], []>} : vector<2x8xf32>, vector<8x512xf32>, vector<2x512xf32> -> vector<2x512xf32>
    %346 = arith.addf %343, %345 : vector<2x512xf32>
    %347 = arith.addf %346, %8 : vector<2x512xf32>
    %348 = vector.extract_strided_slice %347 {offsets = [0, 0], sizes = [2, 8], strides = [1, 1]} : vector<2x512xf32> to vector<2x8xf32>
    %349 = arith.negf %348 : vector<2x8xf32>
    %350 = math.exp %349 : vector<2x8xf32>
    %cst_98 = arith.constant 1.000000e+00 : f32
    %351 = vector.broadcast %cst_98 : f32 to vector<2x8xf32>
    %352 = arith.addf %351, %350 : vector<2x8xf32>
    %353 = arith.divf %351, %352 : vector<2x8xf32>
    %354 = vector.extract_strided_slice %347 {offsets = [0, 128], sizes = [2, 8], strides = [1, 1]} : vector<2x512xf32> to vector<2x8xf32>
    %355 = arith.negf %354 : vector<2x8xf32>
    %356 = math.exp %355 : vector<2x8xf32>
    %cst_99 = arith.constant 1.000000e+00 : f32
    %357 = vector.broadcast %cst_99 : f32 to vector<2x8xf32>
    %358 = arith.addf %357, %356 : vector<2x8xf32>
    %359 = arith.divf %357, %358 : vector<2x8xf32>
    %360 = vector.extract_strided_slice %347 {offsets = [0, 256], sizes = [2, 8], strides = [1, 1]} : vector<2x512xf32> to vector<2x8xf32>
    %361 = math.tanh %360 : vector<2x8xf32>
    %362 = vector.extract_strided_slice %347 {offsets = [0, 384], sizes = [2, 8], strides = [1, 1]} : vector<2x512xf32> to vector<2x8xf32>
    %363 = arith.negf %362 : vector<2x8xf32>
    %364 = math.exp %363 : vector<2x8xf32>
    %cst_100 = arith.constant 1.000000e+00 : f32
    %365 = vector.broadcast %cst_100 : f32 to vector<2x8xf32>
    %366 = arith.addf %365, %364 : vector<2x8xf32>
    %367 = arith.divf %365, %366 : vector<2x8xf32>
    %368 = arith.mulf %359, %310 : vector<2x8xf32>
    %369 = arith.mulf %353, %361 : vector<2x8xf32>
    %370 = arith.addf %368, %369 : vector<2x8xf32>
    %371 = math.tanh %370 : vector<2x8xf32>
    %372 = arith.mulf %367, %371 : vector<2x8xf32>
    %373 = vector.extract_strided_slice %5 {offsets = [12, 0], sizes = [2, 512], strides = [1, 1]} : vector<16x512xf32> to vector<2x512xf32>
    %c0_101 = arith.constant 0 : index
    %c0_102 = arith.constant 0 : index
    %374 = vector.load %arg2[%c0_101, %c0_102] : memref<16x512xf32, #tpu.memory_space<vmem>>, vector<16x512xf32>
    %cst_103 = arith.constant dense<0.000000e+00> : vector<2x512xf32>
    %375 = tpu.matmul %341, %374, %cst_103 {dimension_numbers = #tpu.dot_dimension_numbers<[1], [0], [0], [1], [0, 0, 1, 1], [], []>} : vector<2x16xf32>, vector<16x512xf32>, vector<2x512xf32> -> vector<2x512xf32>
    %376 = arith.addf %373, %375 : vector<2x512xf32>
    %377 = vector.extract_strided_slice %376 {offsets = [0, 0], sizes = [2, 16], strides = [1, 1]} : vector<2x512xf32> to vector<2x16xf32>
    %378 = arith.negf %377 : vector<2x16xf32>
    %379 = math.exp %378 : vector<2x16xf32>
    %cst_104 = arith.constant 1.000000e+00 : f32
    %380 = vector.broadcast %cst_104 : f32 to vector<2x16xf32>
    %381 = arith.addf %380, %379 : vector<2x16xf32>
    %382 = arith.divf %380, %381 : vector<2x16xf32>
    %383 = vector.extract_strided_slice %376 {offsets = [0, 128], sizes = [2, 16], strides = [1, 1]} : vector<2x512xf32> to vector<2x16xf32>
    %384 = arith.negf %383 : vector<2x16xf32>
    %385 = math.exp %384 : vector<2x16xf32>
    %cst_105 = arith.constant 1.000000e+00 : f32
    %386 = vector.broadcast %cst_105 : f32 to vector<2x16xf32>
    %387 = arith.addf %386, %385 : vector<2x16xf32>
    %388 = arith.divf %386, %387 : vector<2x16xf32>
    %389 = vector.extract_strided_slice %376 {offsets = [0, 256], sizes = [2, 16], strides = [1, 1]} : vector<2x512xf32> to vector<2x16xf32>
    %390 = math.tanh %389 : vector<2x16xf32>
    %391 = vector.extract_strided_slice %376 {offsets = [0, 384], sizes = [2, 16], strides = [1, 1]} : vector<2x512xf32> to vector<2x16xf32>
    %392 = arith.negf %391 : vector<2x16xf32>
    %393 = math.exp %392 : vector<2x16xf32>
    %cst_106 = arith.constant 1.000000e+00 : f32
    %394 = vector.broadcast %cst_106 : f32 to vector<2x16xf32>
    %395 = arith.addf %394, %393 : vector<2x16xf32>
    %396 = arith.divf %394, %395 : vector<2x16xf32>
    %397 = arith.mulf %388, %339 : vector<2x16xf32>
    %398 = arith.mulf %382, %390 : vector<2x16xf32>
    %399 = arith.addf %397, %398 : vector<2x16xf32>
    %400 = math.tanh %399 : vector<2x16xf32>
    %401 = arith.mulf %396, %400 : vector<2x16xf32>
    %c0_107 = arith.constant 0 : index
    %c0_108 = arith.constant 0 : index
    %402 = vector.load %arg4[%c0_107, %c0_108] : memref<16x512xf32, #tpu.memory_space<vmem>>, vector<16x512xf32>
    %cst_109 = arith.constant dense<0.000000e+00> : vector<2x512xf32>
    %403 = tpu.matmul %401, %402, %cst_109 {dimension_numbers = #tpu.dot_dimension_numbers<[1], [0], [0], [1], [0, 0, 1, 1], [], []>} : vector<2x16xf32>, vector<16x512xf32>, vector<2x512xf32> -> vector<2x512xf32>
    %c0_110 = arith.constant 0 : index
    %c0_111 = arith.constant 0 : index
    %404 = vector.load %arg5[%c0_110, %c0_111] : memref<8x512xf32, #tpu.memory_space<vmem>>, vector<8x512xf32>
    %cst_112 = arith.constant dense<0.000000e+00> : vector<2x512xf32>
    %405 = tpu.matmul %372, %404, %cst_112 {dimension_numbers = #tpu.dot_dimension_numbers<[1], [0], [0], [1], [0, 0, 1, 1], [], []>} : vector<2x8xf32>, vector<8x512xf32>, vector<2x512xf32> -> vector<2x512xf32>
    %406 = arith.addf %403, %405 : vector<2x512xf32>
    %407 = arith.addf %406, %8 : vector<2x512xf32>
    %408 = vector.extract_strided_slice %407 {offsets = [0, 0], sizes = [2, 8], strides = [1, 1]} : vector<2x512xf32> to vector<2x8xf32>
    %409 = arith.negf %408 : vector<2x8xf32>
    %410 = math.exp %409 : vector<2x8xf32>
    %cst_113 = arith.constant 1.000000e+00 : f32
    %411 = vector.broadcast %cst_113 : f32 to vector<2x8xf32>
    %412 = arith.addf %411, %410 : vector<2x8xf32>
    %413 = arith.divf %411, %412 : vector<2x8xf32>
    %414 = vector.extract_strided_slice %407 {offsets = [0, 128], sizes = [2, 8], strides = [1, 1]} : vector<2x512xf32> to vector<2x8xf32>
    %415 = arith.negf %414 : vector<2x8xf32>
    %416 = math.exp %415 : vector<2x8xf32>
    %cst_114 = arith.constant 1.000000e+00 : f32
    %417 = vector.broadcast %cst_114 : f32 to vector<2x8xf32>
    %418 = arith.addf %417, %416 : vector<2x8xf32>
    %419 = arith.divf %417, %418 : vector<2x8xf32>
    %420 = vector.extract_strided_slice %407 {offsets = [0, 256], sizes = [2, 8], strides = [1, 1]} : vector<2x512xf32> to vector<2x8xf32>
    %421 = math.tanh %420 : vector<2x8xf32>
    %422 = vector.extract_strided_slice %407 {offsets = [0, 384], sizes = [2, 8], strides = [1, 1]} : vector<2x512xf32> to vector<2x8xf32>
    %423 = arith.negf %422 : vector<2x8xf32>
    %424 = math.exp %423 : vector<2x8xf32>
    %cst_115 = arith.constant 1.000000e+00 : f32
    %425 = vector.broadcast %cst_115 : f32 to vector<2x8xf32>
    %426 = arith.addf %425, %424 : vector<2x8xf32>
    %427 = arith.divf %425, %426 : vector<2x8xf32>
    %428 = arith.mulf %419, %370 : vector<2x8xf32>
    %429 = arith.mulf %413, %421 : vector<2x8xf32>
    %430 = arith.addf %428, %429 : vector<2x8xf32>
    %431 = math.tanh %430 : vector<2x8xf32>
    %432 = arith.mulf %427, %431 : vector<2x8xf32>
    %433 = vector.extract_strided_slice %5 {offsets = [14, 0], sizes = [2, 512], strides = [1, 1]} : vector<16x512xf32> to vector<2x512xf32>
    %c0_116 = arith.constant 0 : index
    %c0_117 = arith.constant 0 : index
    %434 = vector.load %arg2[%c0_116, %c0_117] : memref<16x512xf32, #tpu.memory_space<vmem>>, vector<16x512xf32>
    %cst_118 = arith.constant dense<0.000000e+00> : vector<2x512xf32>
    %435 = tpu.matmul %401, %434, %cst_118 {dimension_numbers = #tpu.dot_dimension_numbers<[1], [0], [0], [1], [0, 0, 1, 1], [], []>} : vector<2x16xf32>, vector<16x512xf32>, vector<2x512xf32> -> vector<2x512xf32>
    %436 = arith.addf %433, %435 : vector<2x512xf32>
    %437 = vector.extract_strided_slice %436 {offsets = [0, 0], sizes = [2, 16], strides = [1, 1]} : vector<2x512xf32> to vector<2x16xf32>
    %438 = arith.negf %437 : vector<2x16xf32>
    %439 = math.exp %438 : vector<2x16xf32>
    %cst_119 = arith.constant 1.000000e+00 : f32
    %440 = vector.broadcast %cst_119 : f32 to vector<2x16xf32>
    %441 = arith.addf %440, %439 : vector<2x16xf32>
    %442 = arith.divf %440, %441 : vector<2x16xf32>
    %443 = vector.extract_strided_slice %436 {offsets = [0, 128], sizes = [2, 16], strides = [1, 1]} : vector<2x512xf32> to vector<2x16xf32>
    %444 = arith.negf %443 : vector<2x16xf32>
    %445 = math.exp %444 : vector<2x16xf32>
    %cst_120 = arith.constant 1.000000e+00 : f32
    %446 = vector.broadcast %cst_120 : f32 to vector<2x16xf32>
    %447 = arith.addf %446, %445 : vector<2x16xf32>
    %448 = arith.divf %446, %447 : vector<2x16xf32>
    %449 = vector.extract_strided_slice %436 {offsets = [0, 256], sizes = [2, 16], strides = [1, 1]} : vector<2x512xf32> to vector<2x16xf32>
    %450 = math.tanh %449 : vector<2x16xf32>
    %451 = vector.extract_strided_slice %436 {offsets = [0, 384], sizes = [2, 16], strides = [1, 1]} : vector<2x512xf32> to vector<2x16xf32>
    %452 = arith.negf %451 : vector<2x16xf32>
    %453 = math.exp %452 : vector<2x16xf32>
    %cst_121 = arith.constant 1.000000e+00 : f32
    %454 = vector.broadcast %cst_121 : f32 to vector<2x16xf32>
    %455 = arith.addf %454, %453 : vector<2x16xf32>
    %456 = arith.divf %454, %455 : vector<2x16xf32>
    %457 = arith.mulf %448, %399 : vector<2x16xf32>
    %458 = arith.mulf %442, %450 : vector<2x16xf32>
    %459 = arith.addf %457, %458 : vector<2x16xf32>
    %460 = math.tanh %459 : vector<2x16xf32>
    %461 = arith.mulf %456, %460 : vector<2x16xf32>
    %c0_122 = arith.constant 0 : index
    %c0_123 = arith.constant 0 : index
    %462 = vector.load %arg4[%c0_122, %c0_123] : memref<16x512xf32, #tpu.memory_space<vmem>>, vector<16x512xf32>
    %cst_124 = arith.constant dense<0.000000e+00> : vector<2x512xf32>
    %463 = tpu.matmul %461, %462, %cst_124 {dimension_numbers = #tpu.dot_dimension_numbers<[1], [0], [0], [1], [0, 0, 1, 1], [], []>} : vector<2x16xf32>, vector<16x512xf32>, vector<2x512xf32> -> vector<2x512xf32>
    %c0_125 = arith.constant 0 : index
    %c0_126 = arith.constant 0 : index
    %464 = vector.load %arg5[%c0_125, %c0_126] : memref<8x512xf32, #tpu.memory_space<vmem>>, vector<8x512xf32>
    %cst_127 = arith.constant dense<0.000000e+00> : vector<2x512xf32>
    %465 = tpu.matmul %432, %464, %cst_127 {dimension_numbers = #tpu.dot_dimension_numbers<[1], [0], [0], [1], [0, 0, 1, 1], [], []>} : vector<2x8xf32>, vector<8x512xf32>, vector<2x512xf32> -> vector<2x512xf32>
    %466 = arith.addf %463, %465 : vector<2x512xf32>
    %467 = arith.addf %466, %8 : vector<2x512xf32>
    %468 = vector.extract_strided_slice %467 {offsets = [0, 0], sizes = [2, 8], strides = [1, 1]} : vector<2x512xf32> to vector<2x8xf32>
    %469 = arith.negf %468 : vector<2x8xf32>
    %470 = math.exp %469 : vector<2x8xf32>
    %cst_128 = arith.constant 1.000000e+00 : f32
    %471 = vector.broadcast %cst_128 : f32 to vector<2x8xf32>
    %472 = arith.addf %471, %470 : vector<2x8xf32>
    %473 = arith.divf %471, %472 : vector<2x8xf32>
    %474 = vector.extract_strided_slice %467 {offsets = [0, 128], sizes = [2, 8], strides = [1, 1]} : vector<2x512xf32> to vector<2x8xf32>
    %475 = arith.negf %474 : vector<2x8xf32>
    %476 = math.exp %475 : vector<2x8xf32>
    %cst_129 = arith.constant 1.000000e+00 : f32
    %477 = vector.broadcast %cst_129 : f32 to vector<2x8xf32>
    %478 = arith.addf %477, %476 : vector<2x8xf32>
    %479 = arith.divf %477, %478 : vector<2x8xf32>
    %480 = vector.extract_strided_slice %467 {offsets = [0, 256], sizes = [2, 8], strides = [1, 1]} : vector<2x512xf32> to vector<2x8xf32>
    %481 = math.tanh %480 : vector<2x8xf32>
    %482 = vector.extract_strided_slice %467 {offsets = [0, 384], sizes = [2, 8], strides = [1, 1]} : vector<2x512xf32> to vector<2x8xf32>
    %483 = arith.negf %482 : vector<2x8xf32>
    %484 = math.exp %483 : vector<2x8xf32>
    %cst_130 = arith.constant 1.000000e+00 : f32
    %485 = vector.broadcast %cst_130 : f32 to vector<2x8xf32>
    %486 = arith.addf %485, %484 : vector<2x8xf32>
    %487 = arith.divf %485, %486 : vector<2x8xf32>
    %488 = arith.mulf %479, %430 : vector<2x8xf32>
    %489 = arith.mulf %473, %481 : vector<2x8xf32>
    %490 = arith.addf %488, %489 : vector<2x8xf32>
    %491 = math.tanh %490 : vector<2x8xf32>
    %492 = arith.mulf %487, %491 : vector<2x8xf32>
    %c0_131 = arith.constant 0 : index
    %c0_132 = arith.constant 0 : index
    %493 = vector.load %arg7[%c0_131, %c0_132] : memref<8x8xf32, #tpu.memory_space<vmem>>, vector<8x8xf32>
    %cst_133 = arith.constant dense<0.000000e+00> : vector<2x8xf32>
    %494 = tpu.matmul %492, %493, %cst_133 {dimension_numbers = #tpu.dot_dimension_numbers<[1], [0], [0], [1], [0, 0, 1, 1], [], []>} : vector<2x8xf32>, vector<8x8xf32>, vector<2x8xf32> -> vector<2x8xf32>
    %c0_134 = arith.constant 0 : index
    %c0_135 = arith.constant 0 : index
    %495 = vector.load %arg8[%c0_134, %c0_135] : memref<1x8xf32, #tpu.memory_space<vmem>>, vector<1x8xf32>
    %496 = vector.broadcast %495 : vector<1x8xf32> to vector<2x8xf32>
    %497 = arith.addf %494, %496 : vector<2x8xf32>
    %498 = vector.extract_strided_slice %497 {offsets = [0, 0], sizes = [2, 4], strides = [1, 1]} : vector<2x8xf32> to vector<2x4xf32>
    %499 = vector.extract_strided_slice %497 {offsets = [0, 4], sizes = [2, 4], strides = [1, 1]} : vector<2x8xf32> to vector<2x4xf32>
    %c0_136 = arith.constant 0 : index
    %c0_137 = arith.constant 0 : index
    %500 = vector.load %arg18[%c0_136, %c0_137] : memref<2x4xf32, #tpu.memory_space<vmem>>, vector<2x4xf32>
    tpu.vector_store %arg18[%c0_136, %c0_137], %498 {strides = array<i32>} : memref<2x4xf32, #tpu.memory_space<vmem>>, vector<2x4xf32>,
    %c0_138 = arith.constant 0 : index
    %c0_139 = arith.constant 0 : index
    %501 = vector.load %arg19[%c0_138, %c0_139] : memref<2x4xf32, #tpu.memory_space<vmem>>, vector<2x4xf32>
    tpu.vector_store %arg19[%c0_138, %c0_139], %499 {strides = array<i32>} : memref<2x4xf32, #tpu.memory_space<vmem>>, vector<2x4xf32>,
    %c0_140 = arith.constant 0 : index
    %c0_141 = arith.constant 0 : index
    %502 = vector.load %arg9[%c0_140, %c0_141] : memref<2x4xf32, #tpu.memory_space<vmem>>, vector<2x4xf32>
    %cst_142 = arith.constant 5.000000e-01 : f32
    %503 = vector.broadcast %cst_142 : f32 to vector<2x4xf32>
    %504 = arith.mulf %503, %499 : vector<2x4xf32>
    %505 = math.exp %504 : vector<2x4xf32>
    %506 = arith.mulf %502, %505 : vector<2x4xf32>
    %507 = arith.addf %498, %506 : vector<2x4xf32>
    %c0_143 = arith.constant 0 : index
    %c0_144 = arith.constant 0 : index
    %508 = vector.load %arg10[%c0_143, %c0_144] : memref<4x512xf32, #tpu.memory_space<vmem>>, vector<4x512xf32>
    %cst_145 = arith.constant dense<0.000000e+00> : vector<2x512xf32>
    %509 = tpu.matmul %507, %508, %cst_145 {dimension_numbers = #tpu.dot_dimension_numbers<[1], [0], [0], [1], [0, 0, 1, 1], [], []>} : vector<2x4xf32>, vector<4x512xf32>, vector<2x512xf32> -> vector<2x512xf32>
    %c0_146 = arith.constant 0 : index
    %c0_147 = arith.constant 0 : index
    %510 = vector.load %arg12[%c0_146, %c0_147] : memref<1x512xf32, #tpu.memory_space<vmem>>, vector<1x512xf32>
    %511 = vector.broadcast %510 : vector<1x512xf32> to vector<2x512xf32>
    %512 = arith.addf %509, %511 : vector<2x512xf32>
    %c0_148 = arith.constant 0 : index
    %c0_149 = arith.constant 0 : index
    %513 = vector.load %arg15[%c0_148, %c0_149] : memref<1x512xf32, #tpu.memory_space<vmem>>, vector<1x512xf32>
    %514 = vector.shape_cast %513 : vector<1x512xf32> to vector<1x512xf32>
    %515 = vector.broadcast %514 : vector<1x512xf32> to vector<2x512xf32>
    %c0_150 = arith.constant 0 : index
    %c0_151 = arith.constant 0 : index
    %516 = vector.load %arg17[%c0_150, %c0_151] : memref<1x12xf32, #tpu.memory_space<vmem>>, vector<1x12xf32>
    %517 = vector.shape_cast %516 : vector<1x12xf32> to vector<1x12xf32>
    %518 = vector.broadcast %517 : vector<1x12xf32> to vector<2x12xf32>
    %519 = tpu.iota {dimensions = array<i32: 1>} : vector<2x12xi32>
    %cst_152 = arith.constant 0.000000e+00 : f32
    %520 = vector.broadcast %cst_152 : f32 to vector<2x8xf32>
    %cst_153 = arith.constant 0.000000e+00 : f32
    %521 = vector.broadcast %cst_153 : f32 to vector<2x8xf32>
    %cst_154 = arith.constant 0.000000e+00 : f32
    %522 = vector.broadcast %cst_154 : f32 to vector<2x16xf32>
    %cst_155 = arith.constant 0.000000e+00 : f32
    %523 = vector.broadcast %cst_155 : f32 to vector<2x16xf32>
    %c0_156 = arith.constant 0 : index
    %c0_157 = arith.constant 0 : index
    %524 = vector.load %arg11[%c0_156, %c0_157] : memref<8x512xf32, #tpu.memory_space<vmem>>, vector<8x512xf32>
    %cst_158 = arith.constant dense<0.000000e+00> : vector<2x512xf32>
    %525 = tpu.matmul %520, %524, %cst_158 {dimension_numbers = #tpu.dot_dimension_numbers<[1], [0], [0], [1], [0, 0, 1, 1], [], []>} : vector<2x8xf32>, vector<8x512xf32>, vector<2x512xf32> -> vector<2x512xf32>
    %526 = arith.addf %512, %525 : vector<2x512xf32>
    %527 = vector.extract_strided_slice %526 {offsets = [0, 0], sizes = [2, 8], strides = [1, 1]} : vector<2x512xf32> to vector<2x8xf32>
    %528 = arith.negf %527 : vector<2x8xf32>
    %529 = math.exp %528 : vector<2x8xf32>
    %cst_159 = arith.constant 1.000000e+00 : f32
    %530 = vector.broadcast %cst_159 : f32 to vector<2x8xf32>
    %531 = arith.addf %530, %529 : vector<2x8xf32>
    %532 = arith.divf %530, %531 : vector<2x8xf32>
    %533 = vector.extract_strided_slice %526 {offsets = [0, 128], sizes = [2, 8], strides = [1, 1]} : vector<2x512xf32> to vector<2x8xf32>
    %534 = arith.negf %533 : vector<2x8xf32>
    %535 = math.exp %534 : vector<2x8xf32>
    %cst_160 = arith.constant 1.000000e+00 : f32
    %536 = vector.broadcast %cst_160 : f32 to vector<2x8xf32>
    %537 = arith.addf %536, %535 : vector<2x8xf32>
    %538 = arith.divf %536, %537 : vector<2x8xf32>
    %539 = vector.extract_strided_slice %526 {offsets = [0, 256], sizes = [2, 8], strides = [1, 1]} : vector<2x512xf32> to vector<2x8xf32>
    %540 = math.tanh %539 : vector<2x8xf32>
    %541 = vector.extract_strided_slice %526 {offsets = [0, 384], sizes = [2, 8], strides = [1, 1]} : vector<2x512xf32> to vector<2x8xf32>
    %542 = arith.negf %541 : vector<2x8xf32>
    %543 = math.exp %542 : vector<2x8xf32>
    %cst_161 = arith.constant 1.000000e+00 : f32
    %544 = vector.broadcast %cst_161 : f32 to vector<2x8xf32>
    %545 = arith.addf %544, %543 : vector<2x8xf32>
    %546 = arith.divf %544, %545 : vector<2x8xf32>
    %547 = arith.mulf %538, %521 : vector<2x8xf32>
    %548 = arith.mulf %532, %540 : vector<2x8xf32>
    %549 = arith.addf %547, %548 : vector<2x8xf32>
    %550 = math.tanh %549 : vector<2x8xf32>
    %551 = arith.mulf %546, %550 : vector<2x8xf32>
    %c0_162 = arith.constant 0 : index
    %c0_163 = arith.constant 0 : index
    %552 = vector.load %arg13[%c0_162, %c0_163] : memref<8x512xf32, #tpu.memory_space<vmem>>, vector<8x512xf32>
    %cst_164 = arith.constant dense<0.000000e+00> : vector<2x512xf32>
    %553 = tpu.matmul %551, %552, %cst_164 {dimension_numbers = #tpu.dot_dimension_numbers<[1], [0], [0], [1], [0, 0, 1, 1], [], []>} : vector<2x8xf32>, vector<8x512xf32>, vector<2x512xf32> -> vector<2x512xf32>
    %c0_165 = arith.constant 0 : index
    %c0_166 = arith.constant 0 : index
    %554 = vector.load %arg14[%c0_165, %c0_166] : memref<16x512xf32, #tpu.memory_space<vmem>>, vector<16x512xf32>
    %cst_167 = arith.constant dense<0.000000e+00> : vector<2x512xf32>
    %555 = tpu.matmul %522, %554, %cst_167 {dimension_numbers = #tpu.dot_dimension_numbers<[1], [0], [0], [1], [0, 0, 1, 1], [], []>} : vector<2x16xf32>, vector<16x512xf32>, vector<2x512xf32> -> vector<2x512xf32>
    %556 = arith.addf %553, %555 : vector<2x512xf32>
    %557 = arith.addf %556, %515 : vector<2x512xf32>
    %558 = vector.extract_strided_slice %557 {offsets = [0, 0], sizes = [2, 16], strides = [1, 1]} : vector<2x512xf32> to vector<2x16xf32>
    %559 = arith.negf %558 : vector<2x16xf32>
    %560 = math.exp %559 : vector<2x16xf32>
    %cst_168 = arith.constant 1.000000e+00 : f32
    %561 = vector.broadcast %cst_168 : f32 to vector<2x16xf32>
    %562 = arith.addf %561, %560 : vector<2x16xf32>
    %563 = arith.divf %561, %562 : vector<2x16xf32>
    %564 = vector.extract_strided_slice %557 {offsets = [0, 128], sizes = [2, 16], strides = [1, 1]} : vector<2x512xf32> to vector<2x16xf32>
    %565 = arith.negf %564 : vector<2x16xf32>
    %566 = math.exp %565 : vector<2x16xf32>
    %cst_169 = arith.constant 1.000000e+00 : f32
    %567 = vector.broadcast %cst_169 : f32 to vector<2x16xf32>
    %568 = arith.addf %567, %566 : vector<2x16xf32>
    %569 = arith.divf %567, %568 : vector<2x16xf32>
    %570 = vector.extract_strided_slice %557 {offsets = [0, 256], sizes = [2, 16], strides = [1, 1]} : vector<2x512xf32> to vector<2x16xf32>
    %571 = math.tanh %570 : vector<2x16xf32>
    %572 = vector.extract_strided_slice %557 {offsets = [0, 384], sizes = [2, 16], strides = [1, 1]} : vector<2x512xf32> to vector<2x16xf32>
    %573 = arith.negf %572 : vector<2x16xf32>
    %574 = math.exp %573 : vector<2x16xf32>
    %cst_170 = arith.constant 1.000000e+00 : f32
    %575 = vector.broadcast %cst_170 : f32 to vector<2x16xf32>
    %576 = arith.addf %575, %574 : vector<2x16xf32>
    %577 = arith.divf %575, %576 : vector<2x16xf32>
    %578 = arith.mulf %569, %523 : vector<2x16xf32>
    %579 = arith.mulf %563, %571 : vector<2x16xf32>
    %580 = arith.addf %578, %579 : vector<2x16xf32>
    %581 = math.tanh %580 : vector<2x16xf32>
    %582 = arith.mulf %577, %581 : vector<2x16xf32>
    %c0_171 = arith.constant 0 : index
    %c0_172 = arith.constant 0 : index
    %583 = vector.load %arg16[%c0_171, %c0_172] : memref<16x12xf32, #tpu.memory_space<vmem>>, vector<16x12xf32>
    %cst_173 = arith.constant dense<0.000000e+00> : vector<2x12xf32>
    %584 = tpu.matmul %582, %583, %cst_173 {dimension_numbers = #tpu.dot_dimension_numbers<[1], [0], [0], [1], [0, 0, 1, 1], [], []>} : vector<2x16xf32>, vector<16x12xf32>, vector<2x12xf32> -> vector<2x12xf32>
    %585 = arith.addf %584, %518 : vector<2x12xf32>
    %c4_i32 = arith.constant 4 : i32
    %586 = vector.broadcast %c4_i32 : i32 to vector<2x12xi32>
    %587 = arith.cmpi slt, %519, %586 : vector<2x12xi32>
    %c8_i32 = arith.constant 8 : i32
    %588 = vector.broadcast %c8_i32 : i32 to vector<2x12xi32>
    %589 = arith.cmpi slt, %519, %588 : vector<2x12xi32>
    %cst_174 = arith.constant 0.000000e+00 : f32
    %590 = vector.broadcast %cst_174 : f32 to vector<2x12xf32>
    %591 = arith.cmpf ogt, %585, %590 : vector<2x12xf32>
    %592 = arith.mulf %585, %585 : vector<2x12xf32>
    %cst_175 = arith.constant 1.000000e+00 : f32
    %593 = vector.broadcast %cst_175 : f32 to vector<2x12xf32>
    %594 = arith.addf %593, %592 : vector<2x12xf32>
    %595 = math.rsqrt %594 : vector<2x12xf32>
    %596 = arith.mulf %585, %595 : vector<2x12xf32>
    %597 = arith.select %591, %585, %596 : vector<2x12xi1>, vector<2x12xf32>
    %cst_176 = arith.constant 1.005000e+00 : f32
    %598 = vector.broadcast %cst_176 : f32 to vector<2x12xf32>
    %599 = arith.addf %598, %597 : vector<2x12xf32>
    %600 = math.tanh %585 : vector<2x12xf32>
    %cst_177 = arith.constant 9.990000e-01 : f32
    %601 = vector.broadcast %cst_177 : f32 to vector<2x12xf32>
    %602 = arith.mulf %601, %600 : vector<2x12xf32>
    %cst_178 = arith.constant 1.000000e+00 : f32
    %603 = vector.broadcast %cst_178 : f32 to vector<2x12xf32>
    %604 = arith.addf %603, %602 : vector<2x12xf32>
    %cst_179 = arith.constant 5.000000e-01 : f32
    %605 = vector.broadcast %cst_179 : f32 to vector<2x12xf32>
    %606 = arith.mulf %605, %604 : vector<2x12xf32>
    %607 = arith.select %589, %599, %606 : vector<2x12xi1>, vector<2x12xf32>
    %608 = arith.select %587, %585, %607 : vector<2x12xi1>, vector<2x12xf32>
    %c0_180 = arith.constant 0 : index
    %c0_181 = arith.constant 0 : index
    %c0_182 = arith.constant 0 : index
    %609 = vector.load %arg20[%c0_180, %c0_181, %c0_182] : memref<8x2x12xf32, #tpu.memory_space<vmem>>, vector<1x2x12xf32>
    %610 = vector.shape_cast %609 : vector<1x2x12xf32> to vector<2x12xf32>
    %611 = vector.shape_cast %608 : vector<2x12xf32> to vector<1x2x12xf32>
    tpu.vector_store %arg20[%c0_180, %c0_181, %c0_182], %611 {strides = array<i32>} : memref<8x2x12xf32, #tpu.memory_space<vmem>>, vector<1x2x12xf32>,
    %c0_183 = arith.constant 0 : index
    %c0_184 = arith.constant 0 : index
    %612 = vector.load %arg11[%c0_183, %c0_184] : memref<8x512xf32, #tpu.memory_space<vmem>>, vector<8x512xf32>
    %cst_185 = arith.constant dense<0.000000e+00> : vector<2x512xf32>
    %613 = tpu.matmul %551, %612, %cst_185 {dimension_numbers = #tpu.dot_dimension_numbers<[1], [0], [0], [1], [0, 0, 1, 1], [], []>} : vector<2x8xf32>, vector<8x512xf32>, vector<2x512xf32> -> vector<2x512xf32>
    %614 = arith.addf %512, %613 : vector<2x512xf32>
    %615 = vector.extract_strided_slice %614 {offsets = [0, 0], sizes = [2, 8], strides = [1, 1]} : vector<2x512xf32> to vector<2x8xf32>
    %616 = arith.negf %615 : vector<2x8xf32>
    %617 = math.exp %616 : vector<2x8xf32>
    %cst_186 = arith.constant 1.000000e+00 : f32
    %618 = vector.broadcast %cst_186 : f32 to vector<2x8xf32>
    %619 = arith.addf %618, %617 : vector<2x8xf32>
    %620 = arith.divf %618, %619 : vector<2x8xf32>
    %621 = vector.extract_strided_slice %614 {offsets = [0, 128], sizes = [2, 8], strides = [1, 1]} : vector<2x512xf32> to vector<2x8xf32>
    %622 = arith.negf %621 : vector<2x8xf32>
    %623 = math.exp %622 : vector<2x8xf32>
    %cst_187 = arith.constant 1.000000e+00 : f32
    %624 = vector.broadcast %cst_187 : f32 to vector<2x8xf32>
    %625 = arith.addf %624, %623 : vector<2x8xf32>
    %626 = arith.divf %624, %625 : vector<2x8xf32>
    %627 = vector.extract_strided_slice %614 {offsets = [0, 256], sizes = [2, 8], strides = [1, 1]} : vector<2x512xf32> to vector<2x8xf32>
    %628 = math.tanh %627 : vector<2x8xf32>
    %629 = vector.extract_strided_slice %614 {offsets = [0, 384], sizes = [2, 8], strides = [1, 1]} : vector<2x512xf32> to vector<2x8xf32>
    %630 = arith.negf %629 : vector<2x8xf32>
    %631 = math.exp %630 : vector<2x8xf32>
    %cst_188 = arith.constant 1.000000e+00 : f32
    %632 = vector.broadcast %cst_188 : f32 to vector<2x8xf32>
    %633 = arith.addf %632, %631 : vector<2x8xf32>
    %634 = arith.divf %632, %633 : vector<2x8xf32>
    %635 = arith.mulf %626, %549 : vector<2x8xf32>
    %636 = arith.mulf %620, %628 : vector<2x8xf32>
    %637 = arith.addf %635, %636 : vector<2x8xf32>
    %638 = math.tanh %637 : vector<2x8xf32>
    %639 = arith.mulf %634, %638 : vector<2x8xf32>
    %c0_189 = arith.constant 0 : index
    %c0_190 = arith.constant 0 : index
    %640 = vector.load %arg13[%c0_189, %c0_190] : memref<8x512xf32, #tpu.memory_space<vmem>>, vector<8x512xf32>
    %cst_191 = arith.constant dense<0.000000e+00> : vector<2x512xf32>
    %641 = tpu.matmul %639, %640, %cst_191 {dimension_numbers = #tpu.dot_dimension_numbers<[1], [0], [0], [1], [0, 0, 1, 1], [], []>} : vector<2x8xf32>, vector<8x512xf32>, vector<2x512xf32> -> vector<2x512xf32>
    %c0_192 = arith.constant 0 : index
    %c0_193 = arith.constant 0 : index
    %642 = vector.load %arg14[%c0_192, %c0_193] : memref<16x512xf32, #tpu.memory_space<vmem>>, vector<16x512xf32>
    %cst_194 = arith.constant dense<0.000000e+00> : vector<2x512xf32>
    %643 = tpu.matmul %582, %642, %cst_194 {dimension_numbers = #tpu.dot_dimension_numbers<[1], [0], [0], [1], [0, 0, 1, 1], [], []>} : vector<2x16xf32>, vector<16x512xf32>, vector<2x512xf32> -> vector<2x512xf32>
    %644 = arith.addf %641, %643 : vector<2x512xf32>
    %645 = arith.addf %644, %515 : vector<2x512xf32>
    %646 = vector.extract_strided_slice %645 {offsets = [0, 0], sizes = [2, 16], strides = [1, 1]} : vector<2x512xf32> to vector<2x16xf32>
    %647 = arith.negf %646 : vector<2x16xf32>
    %648 = math.exp %647 : vector<2x16xf32>
    %cst_195 = arith.constant 1.000000e+00 : f32
    %649 = vector.broadcast %cst_195 : f32 to vector<2x16xf32>
    %650 = arith.addf %649, %648 : vector<2x16xf32>
    %651 = arith.divf %649, %650 : vector<2x16xf32>
    %652 = vector.extract_strided_slice %645 {offsets = [0, 128], sizes = [2, 16], strides = [1, 1]} : vector<2x512xf32> to vector<2x16xf32>
    %653 = arith.negf %652 : vector<2x16xf32>
    %654 = math.exp %653 : vector<2x16xf32>
    %cst_196 = arith.constant 1.000000e+00 : f32
    %655 = vector.broadcast %cst_196 : f32 to vector<2x16xf32>
    %656 = arith.addf %655, %654 : vector<2x16xf32>
    %657 = arith.divf %655, %656 : vector<2x16xf32>
    %658 = vector.extract_strided_slice %645 {offsets = [0, 256], sizes = [2, 16], strides = [1, 1]} : vector<2x512xf32> to vector<2x16xf32>
    %659 = math.tanh %658 : vector<2x16xf32>
    %660 = vector.extract_strided_slice %645 {offsets = [0, 384], sizes = [2, 16], strides = [1, 1]} : vector<2x512xf32> to vector<2x16xf32>
    %661 = arith.negf %660 : vector<2x16xf32>
    %662 = math.exp %661 : vector<2x16xf32>
    %cst_197 = arith.constant 1.000000e+00 : f32
    %663 = vector.broadcast %cst_197 : f32 to vector<2x16xf32>
    %664 = arith.addf %663, %662 : vector<2x16xf32>
    %665 = arith.divf %663, %664 : vector<2x16xf32>
    %666 = arith.mulf %657, %580 : vector<2x16xf32>
    %667 = arith.mulf %651, %659 : vector<2x16xf32>
    %668 = arith.addf %666, %667 : vector<2x16xf32>
    %669 = math.tanh %668 : vector<2x16xf32>
    %670 = arith.mulf %665, %669 : vector<2x16xf32>
    %c0_198 = arith.constant 0 : index
    %c0_199 = arith.constant 0 : index
    %671 = vector.load %arg16[%c0_198, %c0_199] : memref<16x12xf32, #tpu.memory_space<vmem>>, vector<16x12xf32>
    %cst_200 = arith.constant dense<0.000000e+00> : vector<2x12xf32>
    %672 = tpu.matmul %670, %671, %cst_200 {dimension_numbers = #tpu.dot_dimension_numbers<[1], [0], [0], [1], [0, 0, 1, 1], [], []>} : vector<2x16xf32>, vector<16x12xf32>, vector<2x12xf32> -> vector<2x12xf32>
    %673 = arith.addf %672, %518 : vector<2x12xf32>
    %c4_i32_201 = arith.constant 4 : i32
    %674 = vector.broadcast %c4_i32_201 : i32 to vector<2x12xi32>
    %675 = arith.cmpi slt, %519, %674 : vector<2x12xi32>
    %c8_i32_202 = arith.constant 8 : i32
    %676 = vector.broadcast %c8_i32_202 : i32 to vector<2x12xi32>
    %677 = arith.cmpi slt, %519, %676 : vector<2x12xi32>
    %cst_203 = arith.constant 0.000000e+00 : f32
    %678 = vector.broadcast %cst_203 : f32 to vector<2x12xf32>
    %679 = arith.cmpf ogt, %673, %678 : vector<2x12xf32>
    %680 = arith.mulf %673, %673 : vector<2x12xf32>
    %cst_204 = arith.constant 1.000000e+00 : f32
    %681 = vector.broadcast %cst_204 : f32 to vector<2x12xf32>
    %682 = arith.addf %681, %680 : vector<2x12xf32>
    %683 = math.rsqrt %682 : vector<2x12xf32>
    %684 = arith.mulf %673, %683 : vector<2x12xf32>
    %685 = arith.select %679, %673, %684 : vector<2x12xi1>, vector<2x12xf32>
    %cst_205 = arith.constant 1.005000e+00 : f32
    %686 = vector.broadcast %cst_205 : f32 to vector<2x12xf32>
    %687 = arith.addf %686, %685 : vector<2x12xf32>
    %688 = math.tanh %673 : vector<2x12xf32>
    %cst_206 = arith.constant 9.990000e-01 : f32
    %689 = vector.broadcast %cst_206 : f32 to vector<2x12xf32>
    %690 = arith.mulf %689, %688 : vector<2x12xf32>
    %cst_207 = arith.constant 1.000000e+00 : f32
    %691 = vector.broadcast %cst_207 : f32 to vector<2x12xf32>
    %692 = arith.addf %691, %690 : vector<2x12xf32>
    %cst_208 = arith.constant 5.000000e-01 : f32
    %693 = vector.broadcast %cst_208 : f32 to vector<2x12xf32>
    %694 = arith.mulf %693, %692 : vector<2x12xf32>
    %695 = arith.select %677, %687, %694 : vector<2x12xi1>, vector<2x12xf32>
    %696 = arith.select %675, %673, %695 : vector<2x12xi1>, vector<2x12xf32>
    %c1 = arith.constant 1 : index
    %c0_209 = arith.constant 0 : index
    %c0_210 = arith.constant 0 : index
    %697 = vector.load %arg20[%c1, %c0_209, %c0_210] : memref<8x2x12xf32, #tpu.memory_space<vmem>>, vector<1x2x12xf32>
    %698 = vector.shape_cast %697 : vector<1x2x12xf32> to vector<2x12xf32>
    %699 = vector.shape_cast %696 : vector<2x12xf32> to vector<1x2x12xf32>
    tpu.vector_store %arg20[%c1, %c0_209, %c0_210], %699 {strides = array<i32>} : memref<8x2x12xf32, #tpu.memory_space<vmem>>, vector<1x2x12xf32>,
    %c0_211 = arith.constant 0 : index
    %c0_212 = arith.constant 0 : index
    %700 = vector.load %arg11[%c0_211, %c0_212] : memref<8x512xf32, #tpu.memory_space<vmem>>, vector<8x512xf32>
    %cst_213 = arith.constant dense<0.000000e+00> : vector<2x512xf32>
    %701 = tpu.matmul %639, %700, %cst_213 {dimension_numbers = #tpu.dot_dimension_numbers<[1], [0], [0], [1], [0, 0, 1, 1], [], []>} : vector<2x8xf32>, vector<8x512xf32>, vector<2x512xf32> -> vector<2x512xf32>
    %702 = arith.addf %512, %701 : vector<2x512xf32>
    %703 = vector.extract_strided_slice %702 {offsets = [0, 0], sizes = [2, 8], strides = [1, 1]} : vector<2x512xf32> to vector<2x8xf32>
    %704 = arith.negf %703 : vector<2x8xf32>
    %705 = math.exp %704 : vector<2x8xf32>
    %cst_214 = arith.constant 1.000000e+00 : f32
    %706 = vector.broadcast %cst_214 : f32 to vector<2x8xf32>
    %707 = arith.addf %706, %705 : vector<2x8xf32>
    %708 = arith.divf %706, %707 : vector<2x8xf32>
    %709 = vector.extract_strided_slice %702 {offsets = [0, 128], sizes = [2, 8], strides = [1, 1]} : vector<2x512xf32> to vector<2x8xf32>
    %710 = arith.negf %709 : vector<2x8xf32>
    %711 = math.exp %710 : vector<2x8xf32>
    %cst_215 = arith.constant 1.000000e+00 : f32
    %712 = vector.broadcast %cst_215 : f32 to vector<2x8xf32>
    %713 = arith.addf %712, %711 : vector<2x8xf32>
    %714 = arith.divf %712, %713 : vector<2x8xf32>
    %715 = vector.extract_strided_slice %702 {offsets = [0, 256], sizes = [2, 8], strides = [1, 1]} : vector<2x512xf32> to vector<2x8xf32>
    %716 = math.tanh %715 : vector<2x8xf32>
    %717 = vector.extract_strided_slice %702 {offsets = [0, 384], sizes = [2, 8], strides = [1, 1]} : vector<2x512xf32> to vector<2x8xf32>
    %718 = arith.negf %717 : vector<2x8xf32>
    %719 = math.exp %718 : vector<2x8xf32>
    %cst_216 = arith.constant 1.000000e+00 : f32
    %720 = vector.broadcast %cst_216 : f32 to vector<2x8xf32>
    %721 = arith.addf %720, %719 : vector<2x8xf32>
    %722 = arith.divf %720, %721 : vector<2x8xf32>
    %723 = arith.mulf %714, %637 : vector<2x8xf32>
    %724 = arith.mulf %708, %716 : vector<2x8xf32>
    %725 = arith.addf %723, %724 : vector<2x8xf32>
    %726 = math.tanh %725 : vector<2x8xf32>
    %727 = arith.mulf %722, %726 : vector<2x8xf32>
    %c0_217 = arith.constant 0 : index
    %c0_218 = arith.constant 0 : index
    %728 = vector.load %arg13[%c0_217, %c0_218] : memref<8x512xf32, #tpu.memory_space<vmem>>, vector<8x512xf32>
    %cst_219 = arith.constant dense<0.000000e+00> : vector<2x512xf32>
    %729 = tpu.matmul %727, %728, %cst_219 {dimension_numbers = #tpu.dot_dimension_numbers<[1], [0], [0], [1], [0, 0, 1, 1], [], []>} : vector<2x8xf32>, vector<8x512xf32>, vector<2x512xf32> -> vector<2x512xf32>
    %c0_220 = arith.constant 0 : index
    %c0_221 = arith.constant 0 : index
    %730 = vector.load %arg14[%c0_220, %c0_221] : memref<16x512xf32, #tpu.memory_space<vmem>>, vector<16x512xf32>
    %cst_222 = arith.constant dense<0.000000e+00> : vector<2x512xf32>
    %731 = tpu.matmul %670, %730, %cst_222 {dimension_numbers = #tpu.dot_dimension_numbers<[1], [0], [0], [1], [0, 0, 1, 1], [], []>} : vector<2x16xf32>, vector<16x512xf32>, vector<2x512xf32> -> vector<2x512xf32>
    %732 = arith.addf %729, %731 : vector<2x512xf32>
    %733 = arith.addf %732, %515 : vector<2x512xf32>
    %734 = vector.extract_strided_slice %733 {offsets = [0, 0], sizes = [2, 16], strides = [1, 1]} : vector<2x512xf32> to vector<2x16xf32>
    %735 = arith.negf %734 : vector<2x16xf32>
    %736 = math.exp %735 : vector<2x16xf32>
    %cst_223 = arith.constant 1.000000e+00 : f32
    %737 = vector.broadcast %cst_223 : f32 to vector<2x16xf32>
    %738 = arith.addf %737, %736 : vector<2x16xf32>
    %739 = arith.divf %737, %738 : vector<2x16xf32>
    %740 = vector.extract_strided_slice %733 {offsets = [0, 128], sizes = [2, 16], strides = [1, 1]} : vector<2x512xf32> to vector<2x16xf32>
    %741 = arith.negf %740 : vector<2x16xf32>
    %742 = math.exp %741 : vector<2x16xf32>
    %cst_224 = arith.constant 1.000000e+00 : f32
    %743 = vector.broadcast %cst_224 : f32 to vector<2x16xf32>
    %744 = arith.addf %743, %742 : vector<2x16xf32>
    %745 = arith.divf %743, %744 : vector<2x16xf32>
    %746 = vector.extract_strided_slice %733 {offsets = [0, 256], sizes = [2, 16], strides = [1, 1]} : vector<2x512xf32> to vector<2x16xf32>
    %747 = math.tanh %746 : vector<2x16xf32>
    %748 = vector.extract_strided_slice %733 {offsets = [0, 384], sizes = [2, 16], strides = [1, 1]} : vector<2x512xf32> to vector<2x16xf32>
    %749 = arith.negf %748 : vector<2x16xf32>
    %750 = math.exp %749 : vector<2x16xf32>
    %cst_225 = arith.constant 1.000000e+00 : f32
    %751 = vector.broadcast %cst_225 : f32 to vector<2x16xf32>
    %752 = arith.addf %751, %750 : vector<2x16xf32>
    %753 = arith.divf %751, %752 : vector<2x16xf32>
    %754 = arith.mulf %745, %668 : vector<2x16xf32>
    %755 = arith.mulf %739, %747 : vector<2x16xf32>
    %756 = arith.addf %754, %755 : vector<2x16xf32>
    %757 = math.tanh %756 : vector<2x16xf32>
    %758 = arith.mulf %753, %757 : vector<2x16xf32>
    %c0_226 = arith.constant 0 : index
    %c0_227 = arith.constant 0 : index
    %759 = vector.load %arg16[%c0_226, %c0_227] : memref<16x12xf32, #tpu.memory_space<vmem>>, vector<16x12xf32>
    %cst_228 = arith.constant dense<0.000000e+00> : vector<2x12xf32>
    %760 = tpu.matmul %758, %759, %cst_228 {dimension_numbers = #tpu.dot_dimension_numbers<[1], [0], [0], [1], [0, 0, 1, 1], [], []>} : vector<2x16xf32>, vector<16x12xf32>, vector<2x12xf32> -> vector<2x12xf32>
    %761 = arith.addf %760, %518 : vector<2x12xf32>
    %c4_i32_229 = arith.constant 4 : i32
    %762 = vector.broadcast %c4_i32_229 : i32 to vector<2x12xi32>
    %763 = arith.cmpi slt, %519, %762 : vector<2x12xi32>
    %c8_i32_230 = arith.constant 8 : i32
    %764 = vector.broadcast %c8_i32_230 : i32 to vector<2x12xi32>
    %765 = arith.cmpi slt, %519, %764 : vector<2x12xi32>
    %cst_231 = arith.constant 0.000000e+00 : f32
    %766 = vector.broadcast %cst_231 : f32 to vector<2x12xf32>
    %767 = arith.cmpf ogt, %761, %766 : vector<2x12xf32>
    %768 = arith.mulf %761, %761 : vector<2x12xf32>
    %cst_232 = arith.constant 1.000000e+00 : f32
    %769 = vector.broadcast %cst_232 : f32 to vector<2x12xf32>
    %770 = arith.addf %769, %768 : vector<2x12xf32>
    %771 = math.rsqrt %770 : vector<2x12xf32>
    %772 = arith.mulf %761, %771 : vector<2x12xf32>
    %773 = arith.select %767, %761, %772 : vector<2x12xi1>, vector<2x12xf32>
    %cst_233 = arith.constant 1.005000e+00 : f32
    %774 = vector.broadcast %cst_233 : f32 to vector<2x12xf32>
    %775 = arith.addf %774, %773 : vector<2x12xf32>
    %776 = math.tanh %761 : vector<2x12xf32>
    %cst_234 = arith.constant 9.990000e-01 : f32
    %777 = vector.broadcast %cst_234 : f32 to vector<2x12xf32>
    %778 = arith.mulf %777, %776 : vector<2x12xf32>
    %cst_235 = arith.constant 1.000000e+00 : f32
    %779 = vector.broadcast %cst_235 : f32 to vector<2x12xf32>
    %780 = arith.addf %779, %778 : vector<2x12xf32>
    %cst_236 = arith.constant 5.000000e-01 : f32
    %781 = vector.broadcast %cst_236 : f32 to vector<2x12xf32>
    %782 = arith.mulf %781, %780 : vector<2x12xf32>
    %783 = arith.select %765, %775, %782 : vector<2x12xi1>, vector<2x12xf32>
    %784 = arith.select %763, %761, %783 : vector<2x12xi1>, vector<2x12xf32>
    %c2 = arith.constant 2 : index
    %c0_237 = arith.constant 0 : index
    %c0_238 = arith.constant 0 : index
    %785 = vector.load %arg20[%c2, %c0_237, %c0_238] : memref<8x2x12xf32, #tpu.memory_space<vmem>>, vector<1x2x12xf32>
    %786 = vector.shape_cast %785 : vector<1x2x12xf32> to vector<2x12xf32>
    %787 = vector.shape_cast %784 : vector<2x12xf32> to vector<1x2x12xf32>
    tpu.vector_store %arg20[%c2, %c0_237, %c0_238], %787 {strides = array<i32>} : memref<8x2x12xf32, #tpu.memory_space<vmem>>, vector<1x2x12xf32>,
    %c0_239 = arith.constant 0 : index
    %c0_240 = arith.constant 0 : index
    %788 = vector.load %arg11[%c0_239, %c0_240] : memref<8x512xf32, #tpu.memory_space<vmem>>, vector<8x512xf32>
    %cst_241 = arith.constant dense<0.000000e+00> : vector<2x512xf32>
    %789 = tpu.matmul %727, %788, %cst_241 {dimension_numbers = #tpu.dot_dimension_numbers<[1], [0], [0], [1], [0, 0, 1, 1], [], []>} : vector<2x8xf32>, vector<8x512xf32>, vector<2x512xf32> -> vector<2x512xf32>
    %790 = arith.addf %512, %789 : vector<2x512xf32>
    %791 = vector.extract_strided_slice %790 {offsets = [0, 0], sizes = [2, 8], strides = [1, 1]} : vector<2x512xf32> to vector<2x8xf32>
    %792 = arith.negf %791 : vector<2x8xf32>
    %793 = math.exp %792 : vector<2x8xf32>
    %cst_242 = arith.constant 1.000000e+00 : f32
    %794 = vector.broadcast %cst_242 : f32 to vector<2x8xf32>
    %795 = arith.addf %794, %793 : vector<2x8xf32>
    %796 = arith.divf %794, %795 : vector<2x8xf32>
    %797 = vector.extract_strided_slice %790 {offsets = [0, 128], sizes = [2, 8], strides = [1, 1]} : vector<2x512xf32> to vector<2x8xf32>
    %798 = arith.negf %797 : vector<2x8xf32>
    %799 = math.exp %798 : vector<2x8xf32>
    %cst_243 = arith.constant 1.000000e+00 : f32
    %800 = vector.broadcast %cst_243 : f32 to vector<2x8xf32>
    %801 = arith.addf %800, %799 : vector<2x8xf32>
    %802 = arith.divf %800, %801 : vector<2x8xf32>
    %803 = vector.extract_strided_slice %790 {offsets = [0, 256], sizes = [2, 8], strides = [1, 1]} : vector<2x512xf32> to vector<2x8xf32>
    %804 = math.tanh %803 : vector<2x8xf32>
    %805 = vector.extract_strided_slice %790 {offsets = [0, 384], sizes = [2, 8], strides = [1, 1]} : vector<2x512xf32> to vector<2x8xf32>
    %806 = arith.negf %805 : vector<2x8xf32>
    %807 = math.exp %806 : vector<2x8xf32>
    %cst_244 = arith.constant 1.000000e+00 : f32
    %808 = vector.broadcast %cst_244 : f32 to vector<2x8xf32>
    %809 = arith.addf %808, %807 : vector<2x8xf32>
    %810 = arith.divf %808, %809 : vector<2x8xf32>
    %811 = arith.mulf %802, %725 : vector<2x8xf32>
    %812 = arith.mulf %796, %804 : vector<2x8xf32>
    %813 = arith.addf %811, %812 : vector<2x8xf32>
    %814 = math.tanh %813 : vector<2x8xf32>
    %815 = arith.mulf %810, %814 : vector<2x8xf32>
    %c0_245 = arith.constant 0 : index
    %c0_246 = arith.constant 0 : index
    %816 = vector.load %arg13[%c0_245, %c0_246] : memref<8x512xf32, #tpu.memory_space<vmem>>, vector<8x512xf32>
    %cst_247 = arith.constant dense<0.000000e+00> : vector<2x512xf32>
    %817 = tpu.matmul %815, %816, %cst_247 {dimension_numbers = #tpu.dot_dimension_numbers<[1], [0], [0], [1], [0, 0, 1, 1], [], []>} : vector<2x8xf32>, vector<8x512xf32>, vector<2x512xf32> -> vector<2x512xf32>
    %c0_248 = arith.constant 0 : index
    %c0_249 = arith.constant 0 : index
    %818 = vector.load %arg14[%c0_248, %c0_249] : memref<16x512xf32, #tpu.memory_space<vmem>>, vector<16x512xf32>
    %cst_250 = arith.constant dense<0.000000e+00> : vector<2x512xf32>
    %819 = tpu.matmul %758, %818, %cst_250 {dimension_numbers = #tpu.dot_dimension_numbers<[1], [0], [0], [1], [0, 0, 1, 1], [], []>} : vector<2x16xf32>, vector<16x512xf32>, vector<2x512xf32> -> vector<2x512xf32>
    %820 = arith.addf %817, %819 : vector<2x512xf32>
    %821 = arith.addf %820, %515 : vector<2x512xf32>
    %822 = vector.extract_strided_slice %821 {offsets = [0, 0], sizes = [2, 16], strides = [1, 1]} : vector<2x512xf32> to vector<2x16xf32>
    %823 = arith.negf %822 : vector<2x16xf32>
    %824 = math.exp %823 : vector<2x16xf32>
    %cst_251 = arith.constant 1.000000e+00 : f32
    %825 = vector.broadcast %cst_251 : f32 to vector<2x16xf32>
    %826 = arith.addf %825, %824 : vector<2x16xf32>
    %827 = arith.divf %825, %826 : vector<2x16xf32>
    %828 = vector.extract_strided_slice %821 {offsets = [0, 128], sizes = [2, 16], strides = [1, 1]} : vector<2x512xf32> to vector<2x16xf32>
    %829 = arith.negf %828 : vector<2x16xf32>
    %830 = math.exp %829 : vector<2x16xf32>
    %cst_252 = arith.constant 1.000000e+00 : f32
    %831 = vector.broadcast %cst_252 : f32 to vector<2x16xf32>
    %832 = arith.addf %831, %830 : vector<2x16xf32>
    %833 = arith.divf %831, %832 : vector<2x16xf32>
    %834 = vector.extract_strided_slice %821 {offsets = [0, 256], sizes = [2, 16], strides = [1, 1]} : vector<2x512xf32> to vector<2x16xf32>
    %835 = math.tanh %834 : vector<2x16xf32>
    %836 = vector.extract_strided_slice %821 {offsets = [0, 384], sizes = [2, 16], strides = [1, 1]} : vector<2x512xf32> to vector<2x16xf32>
    %837 = arith.negf %836 : vector<2x16xf32>
    %838 = math.exp %837 : vector<2x16xf32>
    %cst_253 = arith.constant 1.000000e+00 : f32
    %839 = vector.broadcast %cst_253 : f32 to vector<2x16xf32>
    %840 = arith.addf %839, %838 : vector<2x16xf32>
    %841 = arith.divf %839, %840 : vector<2x16xf32>
    %842 = arith.mulf %833, %756 : vector<2x16xf32>
    %843 = arith.mulf %827, %835 : vector<2x16xf32>
    %844 = arith.addf %842, %843 : vector<2x16xf32>
    %845 = math.tanh %844 : vector<2x16xf32>
    %846 = arith.mulf %841, %845 : vector<2x16xf32>
    %c0_254 = arith.constant 0 : index
    %c0_255 = arith.constant 0 : index
    %847 = vector.load %arg16[%c0_254, %c0_255] : memref<16x12xf32, #tpu.memory_space<vmem>>, vector<16x12xf32>
    %cst_256 = arith.constant dense<0.000000e+00> : vector<2x12xf32>
    %848 = tpu.matmul %846, %847, %cst_256 {dimension_numbers = #tpu.dot_dimension_numbers<[1], [0], [0], [1], [0, 0, 1, 1], [], []>} : vector<2x16xf32>, vector<16x12xf32>, vector<2x12xf32> -> vector<2x12xf32>
    %849 = arith.addf %848, %518 : vector<2x12xf32>
    %c4_i32_257 = arith.constant 4 : i32
    %850 = vector.broadcast %c4_i32_257 : i32 to vector<2x12xi32>
    %851 = arith.cmpi slt, %519, %850 : vector<2x12xi32>
    %c8_i32_258 = arith.constant 8 : i32
    %852 = vector.broadcast %c8_i32_258 : i32 to vector<2x12xi32>
    %853 = arith.cmpi slt, %519, %852 : vector<2x12xi32>
    %cst_259 = arith.constant 0.000000e+00 : f32
    %854 = vector.broadcast %cst_259 : f32 to vector<2x12xf32>
    %855 = arith.cmpf ogt, %849, %854 : vector<2x12xf32>
    %856 = arith.mulf %849, %849 : vector<2x12xf32>
    %cst_260 = arith.constant 1.000000e+00 : f32
    %857 = vector.broadcast %cst_260 : f32 to vector<2x12xf32>
    %858 = arith.addf %857, %856 : vector<2x12xf32>
    %859 = math.rsqrt %858 : vector<2x12xf32>
    %860 = arith.mulf %849, %859 : vector<2x12xf32>
    %861 = arith.select %855, %849, %860 : vector<2x12xi1>, vector<2x12xf32>
    %cst_261 = arith.constant 1.005000e+00 : f32
    %862 = vector.broadcast %cst_261 : f32 to vector<2x12xf32>
    %863 = arith.addf %862, %861 : vector<2x12xf32>
    %864 = math.tanh %849 : vector<2x12xf32>
    %cst_262 = arith.constant 9.990000e-01 : f32
    %865 = vector.broadcast %cst_262 : f32 to vector<2x12xf32>
    %866 = arith.mulf %865, %864 : vector<2x12xf32>
    %cst_263 = arith.constant 1.000000e+00 : f32
    %867 = vector.broadcast %cst_263 : f32 to vector<2x12xf32>
    %868 = arith.addf %867, %866 : vector<2x12xf32>
    %cst_264 = arith.constant 5.000000e-01 : f32
    %869 = vector.broadcast %cst_264 : f32 to vector<2x12xf32>
    %870 = arith.mulf %869, %868 : vector<2x12xf32>
    %871 = arith.select %853, %863, %870 : vector<2x12xi1>, vector<2x12xf32>
    %872 = arith.select %851, %849, %871 : vector<2x12xi1>, vector<2x12xf32>
    %c3 = arith.constant 3 : index
    %c0_265 = arith.constant 0 : index
    %c0_266 = arith.constant 0 : index
    %873 = vector.load %arg20[%c3, %c0_265, %c0_266] : memref<8x2x12xf32, #tpu.memory_space<vmem>>, vector<1x2x12xf32>
    %874 = vector.shape_cast %873 : vector<1x2x12xf32> to vector<2x12xf32>
    %875 = vector.shape_cast %872 : vector<2x12xf32> to vector<1x2x12xf32>
    tpu.vector_store %arg20[%c3, %c0_265, %c0_266], %875 {strides = array<i32>} : memref<8x2x12xf32, #tpu.memory_space<vmem>>, vector<1x2x12xf32>,
    %c0_267 = arith.constant 0 : index
    %c0_268 = arith.constant 0 : index
    %876 = vector.load %arg11[%c0_267, %c0_268] : memref<8x512xf32, #tpu.memory_space<vmem>>, vector<8x512xf32>
    %cst_269 = arith.constant dense<0.000000e+00> : vector<2x512xf32>
    %877 = tpu.matmul %815, %876, %cst_269 {dimension_numbers = #tpu.dot_dimension_numbers<[1], [0], [0], [1], [0, 0, 1, 1], [], []>} : vector<2x8xf32>, vector<8x512xf32>, vector<2x512xf32> -> vector<2x512xf32>
    %878 = arith.addf %512, %877 : vector<2x512xf32>
    %879 = vector.extract_strided_slice %878 {offsets = [0, 0], sizes = [2, 8], strides = [1, 1]} : vector<2x512xf32> to vector<2x8xf32>
    %880 = arith.negf %879 : vector<2x8xf32>
    %881 = math.exp %880 : vector<2x8xf32>
    %cst_270 = arith.constant 1.000000e+00 : f32
    %882 = vector.broadcast %cst_270 : f32 to vector<2x8xf32>
    %883 = arith.addf %882, %881 : vector<2x8xf32>
    %884 = arith.divf %882, %883 : vector<2x8xf32>
    %885 = vector.extract_strided_slice %878 {offsets = [0, 128], sizes = [2, 8], strides = [1, 1]} : vector<2x512xf32> to vector<2x8xf32>
    %886 = arith.negf %885 : vector<2x8xf32>
    %887 = math.exp %886 : vector<2x8xf32>
    %cst_271 = arith.constant 1.000000e+00 : f32
    %888 = vector.broadcast %cst_271 : f32 to vector<2x8xf32>
    %889 = arith.addf %888, %887 : vector<2x8xf32>
    %890 = arith.divf %888, %889 : vector<2x8xf32>
    %891 = vector.extract_strided_slice %878 {offsets = [0, 256], sizes = [2, 8], strides = [1, 1]} : vector<2x512xf32> to vector<2x8xf32>
    %892 = math.tanh %891 : vector<2x8xf32>
    %893 = vector.extract_strided_slice %878 {offsets = [0, 384], sizes = [2, 8], strides = [1, 1]} : vector<2x512xf32> to vector<2x8xf32>
    %894 = arith.negf %893 : vector<2x8xf32>
    %895 = math.exp %894 : vector<2x8xf32>
    %cst_272 = arith.constant 1.000000e+00 : f32
    %896 = vector.broadcast %cst_272 : f32 to vector<2x8xf32>
    %897 = arith.addf %896, %895 : vector<2x8xf32>
    %898 = arith.divf %896, %897 : vector<2x8xf32>
    %899 = arith.mulf %890, %813 : vector<2x8xf32>
    %900 = arith.mulf %884, %892 : vector<2x8xf32>
    %901 = arith.addf %899, %900 : vector<2x8xf32>
    %902 = math.tanh %901 : vector<2x8xf32>
    %903 = arith.mulf %898, %902 : vector<2x8xf32>
    %c0_273 = arith.constant 0 : index
    %c0_274 = arith.constant 0 : index
    %904 = vector.load %arg13[%c0_273, %c0_274] : memref<8x512xf32, #tpu.memory_space<vmem>>, vector<8x512xf32>
    %cst_275 = arith.constant dense<0.000000e+00> : vector<2x512xf32>
    %905 = tpu.matmul %903, %904, %cst_275 {dimension_numbers = #tpu.dot_dimension_numbers<[1], [0], [0], [1], [0, 0, 1, 1], [], []>} : vector<2x8xf32>, vector<8x512xf32>, vector<2x512xf32> -> vector<2x512xf32>
    %c0_276 = arith.constant 0 : index
    %c0_277 = arith.constant 0 : index
    %906 = vector.load %arg14[%c0_276, %c0_277] : memref<16x512xf32, #tpu.memory_space<vmem>>, vector<16x512xf32>
    %cst_278 = arith.constant dense<0.000000e+00> : vector<2x512xf32>
    %907 = tpu.matmul %846, %906, %cst_278 {dimension_numbers = #tpu.dot_dimension_numbers<[1], [0], [0], [1], [0, 0, 1, 1], [], []>} : vector<2x16xf32>, vector<16x512xf32>, vector<2x512xf32> -> vector<2x512xf32>
    %908 = arith.addf %905, %907 : vector<2x512xf32>
    %909 = arith.addf %908, %515 : vector<2x512xf32>
    %910 = vector.extract_strided_slice %909 {offsets = [0, 0], sizes = [2, 16], strides = [1, 1]} : vector<2x512xf32> to vector<2x16xf32>
    %911 = arith.negf %910 : vector<2x16xf32>
    %912 = math.exp %911 : vector<2x16xf32>
    %cst_279 = arith.constant 1.000000e+00 : f32
    %913 = vector.broadcast %cst_279 : f32 to vector<2x16xf32>
    %914 = arith.addf %913, %912 : vector<2x16xf32>
    %915 = arith.divf %913, %914 : vector<2x16xf32>
    %916 = vector.extract_strided_slice %909 {offsets = [0, 128], sizes = [2, 16], strides = [1, 1]} : vector<2x512xf32> to vector<2x16xf32>
    %917 = arith.negf %916 : vector<2x16xf32>
    %918 = math.exp %917 : vector<2x16xf32>
    %cst_280 = arith.constant 1.000000e+00 : f32
    %919 = vector.broadcast %cst_280 : f32 to vector<2x16xf32>
    %920 = arith.addf %919, %918 : vector<2x16xf32>
    %921 = arith.divf %919, %920 : vector<2x16xf32>
    %922 = vector.extract_strided_slice %909 {offsets = [0, 256], sizes = [2, 16], strides = [1, 1]} : vector<2x512xf32> to vector<2x16xf32>
    %923 = math.tanh %922 : vector<2x16xf32>
    %924 = vector.extract_strided_slice %909 {offsets = [0, 384], sizes = [2, 16], strides = [1, 1]} : vector<2x512xf32> to vector<2x16xf32>
    %925 = arith.negf %924 : vector<2x16xf32>
    %926 = math.exp %925 : vector<2x16xf32>
    %cst_281 = arith.constant 1.000000e+00 : f32
    %927 = vector.broadcast %cst_281 : f32 to vector<2x16xf32>
    %928 = arith.addf %927, %926 : vector<2x16xf32>
    %929 = arith.divf %927, %928 : vector<2x16xf32>
    %930 = arith.mulf %921, %844 : vector<2x16xf32>
    %931 = arith.mulf %915, %923 : vector<2x16xf32>
    %932 = arith.addf %930, %931 : vector<2x16xf32>
    %933 = math.tanh %932 : vector<2x16xf32>
    %934 = arith.mulf %929, %933 : vector<2x16xf32>
    %c0_282 = arith.constant 0 : index
    %c0_283 = arith.constant 0 : index
    %935 = vector.load %arg16[%c0_282, %c0_283] : memref<16x12xf32, #tpu.memory_space<vmem>>, vector<16x12xf32>
    %cst_284 = arith.constant dense<0.000000e+00> : vector<2x12xf32>
    %936 = tpu.matmul %934, %935, %cst_284 {dimension_numbers = #tpu.dot_dimension_numbers<[1], [0], [0], [1], [0, 0, 1, 1], [], []>} : vector<2x16xf32>, vector<16x12xf32>, vector<2x12xf32> -> vector<2x12xf32>
    %937 = arith.addf %936, %518 : vector<2x12xf32>
    %c4_i32_285 = arith.constant 4 : i32
    %938 = vector.broadcast %c4_i32_285 : i32 to vector<2x12xi32>
    %939 = arith.cmpi slt, %519, %938 : vector<2x12xi32>
    %c8_i32_286 = arith.constant 8 : i32
    %940 = vector.broadcast %c8_i32_286 : i32 to vector<2x12xi32>
    %941 = arith.cmpi slt, %519, %940 : vector<2x12xi32>
    %cst_287 = arith.constant 0.000000e+00 : f32
    %942 = vector.broadcast %cst_287 : f32 to vector<2x12xf32>
    %943 = arith.cmpf ogt, %937, %942 : vector<2x12xf32>
    %944 = arith.mulf %937, %937 : vector<2x12xf32>
    %cst_288 = arith.constant 1.000000e+00 : f32
    %945 = vector.broadcast %cst_288 : f32 to vector<2x12xf32>
    %946 = arith.addf %945, %944 : vector<2x12xf32>
    %947 = math.rsqrt %946 : vector<2x12xf32>
    %948 = arith.mulf %937, %947 : vector<2x12xf32>
    %949 = arith.select %943, %937, %948 : vector<2x12xi1>, vector<2x12xf32>
    %cst_289 = arith.constant 1.005000e+00 : f32
    %950 = vector.broadcast %cst_289 : f32 to vector<2x12xf32>
    %951 = arith.addf %950, %949 : vector<2x12xf32>
    %952 = math.tanh %937 : vector<2x12xf32>
    %cst_290 = arith.constant 9.990000e-01 : f32
    %953 = vector.broadcast %cst_290 : f32 to vector<2x12xf32>
    %954 = arith.mulf %953, %952 : vector<2x12xf32>
    %cst_291 = arith.constant 1.000000e+00 : f32
    %955 = vector.broadcast %cst_291 : f32 to vector<2x12xf32>
    %956 = arith.addf %955, %954 : vector<2x12xf32>
    %cst_292 = arith.constant 5.000000e-01 : f32
    %957 = vector.broadcast %cst_292 : f32 to vector<2x12xf32>
    %958 = arith.mulf %957, %956 : vector<2x12xf32>
    %959 = arith.select %941, %951, %958 : vector<2x12xi1>, vector<2x12xf32>
    %960 = arith.select %939, %937, %959 : vector<2x12xi1>, vector<2x12xf32>
    %c4 = arith.constant 4 : index
    %c0_293 = arith.constant 0 : index
    %c0_294 = arith.constant 0 : index
    %961 = vector.load %arg20[%c4, %c0_293, %c0_294] : memref<8x2x12xf32, #tpu.memory_space<vmem>>, vector<1x2x12xf32>
    %962 = vector.shape_cast %961 : vector<1x2x12xf32> to vector<2x12xf32>
    %963 = vector.shape_cast %960 : vector<2x12xf32> to vector<1x2x12xf32>
    tpu.vector_store %arg20[%c4, %c0_293, %c0_294], %963 {strides = array<i32>} : memref<8x2x12xf32, #tpu.memory_space<vmem>>, vector<1x2x12xf32>,
    %c0_295 = arith.constant 0 : index
    %c0_296 = arith.constant 0 : index
    %964 = vector.load %arg11[%c0_295, %c0_296] : memref<8x512xf32, #tpu.memory_space<vmem>>, vector<8x512xf32>
    %cst_297 = arith.constant dense<0.000000e+00> : vector<2x512xf32>
    %965 = tpu.matmul %903, %964, %cst_297 {dimension_numbers = #tpu.dot_dimension_numbers<[1], [0], [0], [1], [0, 0, 1, 1], [], []>} : vector<2x8xf32>, vector<8x512xf32>, vector<2x512xf32> -> vector<2x512xf32>
    %966 = arith.addf %512, %965 : vector<2x512xf32>
    %967 = vector.extract_strided_slice %966 {offsets = [0, 0], sizes = [2, 8], strides = [1, 1]} : vector<2x512xf32> to vector<2x8xf32>
    %968 = arith.negf %967 : vector<2x8xf32>
    %969 = math.exp %968 : vector<2x8xf32>
    %cst_298 = arith.constant 1.000000e+00 : f32
    %970 = vector.broadcast %cst_298 : f32 to vector<2x8xf32>
    %971 = arith.addf %970, %969 : vector<2x8xf32>
    %972 = arith.divf %970, %971 : vector<2x8xf32>
    %973 = vector.extract_strided_slice %966 {offsets = [0, 128], sizes = [2, 8], strides = [1, 1]} : vector<2x512xf32> to vector<2x8xf32>
    %974 = arith.negf %973 : vector<2x8xf32>
    %975 = math.exp %974 : vector<2x8xf32>
    %cst_299 = arith.constant 1.000000e+00 : f32
    %976 = vector.broadcast %cst_299 : f32 to vector<2x8xf32>
    %977 = arith.addf %976, %975 : vector<2x8xf32>
    %978 = arith.divf %976, %977 : vector<2x8xf32>
    %979 = vector.extract_strided_slice %966 {offsets = [0, 256], sizes = [2, 8], strides = [1, 1]} : vector<2x512xf32> to vector<2x8xf32>
    %980 = math.tanh %979 : vector<2x8xf32>
    %981 = vector.extract_strided_slice %966 {offsets = [0, 384], sizes = [2, 8], strides = [1, 1]} : vector<2x512xf32> to vector<2x8xf32>
    %982 = arith.negf %981 : vector<2x8xf32>
    %983 = math.exp %982 : vector<2x8xf32>
    %cst_300 = arith.constant 1.000000e+00 : f32
    %984 = vector.broadcast %cst_300 : f32 to vector<2x8xf32>
    %985 = arith.addf %984, %983 : vector<2x8xf32>
    %986 = arith.divf %984, %985 : vector<2x8xf32>
    %987 = arith.mulf %978, %901 : vector<2x8xf32>
    %988 = arith.mulf %972, %980 : vector<2x8xf32>
    %989 = arith.addf %987, %988 : vector<2x8xf32>
    %990 = math.tanh %989 : vector<2x8xf32>
    %991 = arith.mulf %986, %990 : vector<2x8xf32>
    %c0_301 = arith.constant 0 : index
    %c0_302 = arith.constant 0 : index
    %992 = vector.load %arg13[%c0_301, %c0_302] : memref<8x512xf32, #tpu.memory_space<vmem>>, vector<8x512xf32>
    %cst_303 = arith.constant dense<0.000000e+00> : vector<2x512xf32>
    %993 = tpu.matmul %991, %992, %cst_303 {dimension_numbers = #tpu.dot_dimension_numbers<[1], [0], [0], [1], [0, 0, 1, 1], [], []>} : vector<2x8xf32>, vector<8x512xf32>, vector<2x512xf32> -> vector<2x512xf32>
    %c0_304 = arith.constant 0 : index
    %c0_305 = arith.constant 0 : index
    %994 = vector.load %arg14[%c0_304, %c0_305] : memref<16x512xf32, #tpu.memory_space<vmem>>, vector<16x512xf32>
    %cst_306 = arith.constant dense<0.000000e+00> : vector<2x512xf32>
    %995 = tpu.matmul %934, %994, %cst_306 {dimension_numbers = #tpu.dot_dimension_numbers<[1], [0], [0], [1], [0, 0, 1, 1], [], []>} : vector<2x16xf32>, vector<16x512xf32>, vector<2x512xf32> -> vector<2x512xf32>
    %996 = arith.addf %993, %995 : vector<2x512xf32>
    %997 = arith.addf %996, %515 : vector<2x512xf32>
    %998 = vector.extract_strided_slice %997 {offsets = [0, 0], sizes = [2, 16], strides = [1, 1]} : vector<2x512xf32> to vector<2x16xf32>
    %999 = arith.negf %998 : vector<2x16xf32>
    %1000 = math.exp %999 : vector<2x16xf32>
    %cst_307 = arith.constant 1.000000e+00 : f32
    %1001 = vector.broadcast %cst_307 : f32 to vector<2x16xf32>
    %1002 = arith.addf %1001, %1000 : vector<2x16xf32>
    %1003 = arith.divf %1001, %1002 : vector<2x16xf32>
    %1004 = vector.extract_strided_slice %997 {offsets = [0, 128], sizes = [2, 16], strides = [1, 1]} : vector<2x512xf32> to vector<2x16xf32>
    %1005 = arith.negf %1004 : vector<2x16xf32>
    %1006 = math.exp %1005 : vector<2x16xf32>
    %cst_308 = arith.constant 1.000000e+00 : f32
    %1007 = vector.broadcast %cst_308 : f32 to vector<2x16xf32>
    %1008 = arith.addf %1007, %1006 : vector<2x16xf32>
    %1009 = arith.divf %1007, %1008 : vector<2x16xf32>
    %1010 = vector.extract_strided_slice %997 {offsets = [0, 256], sizes = [2, 16], strides = [1, 1]} : vector<2x512xf32> to vector<2x16xf32>
    %1011 = math.tanh %1010 : vector<2x16xf32>
    %1012 = vector.extract_strided_slice %997 {offsets = [0, 384], sizes = [2, 16], strides = [1, 1]} : vector<2x512xf32> to vector<2x16xf32>
    %1013 = arith.negf %1012 : vector<2x16xf32>
    %1014 = math.exp %1013 : vector<2x16xf32>
    %cst_309 = arith.constant 1.000000e+00 : f32
    %1015 = vector.broadcast %cst_309 : f32 to vector<2x16xf32>
    %1016 = arith.addf %1015, %1014 : vector<2x16xf32>
    %1017 = arith.divf %1015, %1016 : vector<2x16xf32>
    %1018 = arith.mulf %1009, %932 : vector<2x16xf32>
    %1019 = arith.mulf %1003, %1011 : vector<2x16xf32>
    %1020 = arith.addf %1018, %1019 : vector<2x16xf32>
    %1021 = math.tanh %1020 : vector<2x16xf32>
    %1022 = arith.mulf %1017, %1021 : vector<2x16xf32>
    %c0_310 = arith.constant 0 : index
    %c0_311 = arith.constant 0 : index
    %1023 = vector.load %arg16[%c0_310, %c0_311] : memref<16x12xf32, #tpu.memory_space<vmem>>, vector<16x12xf32>
    %cst_312 = arith.constant dense<0.000000e+00> : vector<2x12xf32>
    %1024 = tpu.matmul %1022, %1023, %cst_312 {dimension_numbers = #tpu.dot_dimension_numbers<[1], [0], [0], [1], [0, 0, 1, 1], [], []>} : vector<2x16xf32>, vector<16x12xf32>, vector<2x12xf32> -> vector<2x12xf32>
    %1025 = arith.addf %1024, %518 : vector<2x12xf32>
    %c4_i32_313 = arith.constant 4 : i32
    %1026 = vector.broadcast %c4_i32_313 : i32 to vector<2x12xi32>
    %1027 = arith.cmpi slt, %519, %1026 : vector<2x12xi32>
    %c8_i32_314 = arith.constant 8 : i32
    %1028 = vector.broadcast %c8_i32_314 : i32 to vector<2x12xi32>
    %1029 = arith.cmpi slt, %519, %1028 : vector<2x12xi32>
    %cst_315 = arith.constant 0.000000e+00 : f32
    %1030 = vector.broadcast %cst_315 : f32 to vector<2x12xf32>
    %1031 = arith.cmpf ogt, %1025, %1030 : vector<2x12xf32>
    %1032 = arith.mulf %1025, %1025 : vector<2x12xf32>
    %cst_316 = arith.constant 1.000000e+00 : f32
    %1033 = vector.broadcast %cst_316 : f32 to vector<2x12xf32>
    %1034 = arith.addf %1033, %1032 : vector<2x12xf32>
    %1035 = math.rsqrt %1034 : vector<2x12xf32>
    %1036 = arith.mulf %1025, %1035 : vector<2x12xf32>
    %1037 = arith.select %1031, %1025, %1036 : vector<2x12xi1>, vector<2x12xf32>
    %cst_317 = arith.constant 1.005000e+00 : f32
    %1038 = vector.broadcast %cst_317 : f32 to vector<2x12xf32>
    %1039 = arith.addf %1038, %1037 : vector<2x12xf32>
    %1040 = math.tanh %1025 : vector<2x12xf32>
    %cst_318 = arith.constant 9.990000e-01 : f32
    %1041 = vector.broadcast %cst_318 : f32 to vector<2x12xf32>
    %1042 = arith.mulf %1041, %1040 : vector<2x12xf32>
    %cst_319 = arith.constant 1.000000e+00 : f32
    %1043 = vector.broadcast %cst_319 : f32 to vector<2x12xf32>
    %1044 = arith.addf %1043, %1042 : vector<2x12xf32>
    %cst_320 = arith.constant 5.000000e-01 : f32
    %1045 = vector.broadcast %cst_320 : f32 to vector<2x12xf32>
    %1046 = arith.mulf %1045, %1044 : vector<2x12xf32>
    %1047 = arith.select %1029, %1039, %1046 : vector<2x12xi1>, vector<2x12xf32>
    %1048 = arith.select %1027, %1025, %1047 : vector<2x12xi1>, vector<2x12xf32>
    %c5 = arith.constant 5 : index
    %c0_321 = arith.constant 0 : index
    %c0_322 = arith.constant 0 : index
    %1049 = vector.load %arg20[%c5, %c0_321, %c0_322] : memref<8x2x12xf32, #tpu.memory_space<vmem>>, vector<1x2x12xf32>
    %1050 = vector.shape_cast %1049 : vector<1x2x12xf32> to vector<2x12xf32>
    %1051 = vector.shape_cast %1048 : vector<2x12xf32> to vector<1x2x12xf32>
    tpu.vector_store %arg20[%c5, %c0_321, %c0_322], %1051 {strides = array<i32>} : memref<8x2x12xf32, #tpu.memory_space<vmem>>, vector<1x2x12xf32>,
    %c0_323 = arith.constant 0 : index
    %c0_324 = arith.constant 0 : index
    %1052 = vector.load %arg11[%c0_323, %c0_324] : memref<8x512xf32, #tpu.memory_space<vmem>>, vector<8x512xf32>
    %cst_325 = arith.constant dense<0.000000e+00> : vector<2x512xf32>
    %1053 = tpu.matmul %991, %1052, %cst_325 {dimension_numbers = #tpu.dot_dimension_numbers<[1], [0], [0], [1], [0, 0, 1, 1], [], []>} : vector<2x8xf32>, vector<8x512xf32>, vector<2x512xf32> -> vector<2x512xf32>
    %1054 = arith.addf %512, %1053 : vector<2x512xf32>
    %1055 = vector.extract_strided_slice %1054 {offsets = [0, 0], sizes = [2, 8], strides = [1, 1]} : vector<2x512xf32> to vector<2x8xf32>
    %1056 = arith.negf %1055 : vector<2x8xf32>
    %1057 = math.exp %1056 : vector<2x8xf32>
    %cst_326 = arith.constant 1.000000e+00 : f32
    %1058 = vector.broadcast %cst_326 : f32 to vector<2x8xf32>
    %1059 = arith.addf %1058, %1057 : vector<2x8xf32>
    %1060 = arith.divf %1058, %1059 : vector<2x8xf32>
    %1061 = vector.extract_strided_slice %1054 {offsets = [0, 128], sizes = [2, 8], strides = [1, 1]} : vector<2x512xf32> to vector<2x8xf32>
    %1062 = arith.negf %1061 : vector<2x8xf32>
    %1063 = math.exp %1062 : vector<2x8xf32>
    %cst_327 = arith.constant 1.000000e+00 : f32
    %1064 = vector.broadcast %cst_327 : f32 to vector<2x8xf32>
    %1065 = arith.addf %1064, %1063 : vector<2x8xf32>
    %1066 = arith.divf %1064, %1065 : vector<2x8xf32>
    %1067 = vector.extract_strided_slice %1054 {offsets = [0, 256], sizes = [2, 8], strides = [1, 1]} : vector<2x512xf32> to vector<2x8xf32>
    %1068 = math.tanh %1067 : vector<2x8xf32>
    %1069 = vector.extract_strided_slice %1054 {offsets = [0, 384], sizes = [2, 8], strides = [1, 1]} : vector<2x512xf32> to vector<2x8xf32>
    %1070 = arith.negf %1069 : vector<2x8xf32>
    %1071 = math.exp %1070 : vector<2x8xf32>
    %cst_328 = arith.constant 1.000000e+00 : f32
    %1072 = vector.broadcast %cst_328 : f32 to vector<2x8xf32>
    %1073 = arith.addf %1072, %1071 : vector<2x8xf32>
    %1074 = arith.divf %1072, %1073 : vector<2x8xf32>
    %1075 = arith.mulf %1066, %989 : vector<2x8xf32>
    %1076 = arith.mulf %1060, %1068 : vector<2x8xf32>
    %1077 = arith.addf %1075, %1076 : vector<2x8xf32>
    %1078 = math.tanh %1077 : vector<2x8xf32>
    %1079 = arith.mulf %1074, %1078 : vector<2x8xf32>
    %c0_329 = arith.constant 0 : index
    %c0_330 = arith.constant 0 : index
    %1080 = vector.load %arg13[%c0_329, %c0_330] : memref<8x512xf32, #tpu.memory_space<vmem>>, vector<8x512xf32>
    %cst_331 = arith.constant dense<0.000000e+00> : vector<2x512xf32>
    %1081 = tpu.matmul %1079, %1080, %cst_331 {dimension_numbers = #tpu.dot_dimension_numbers<[1], [0], [0], [1], [0, 0, 1, 1], [], []>} : vector<2x8xf32>, vector<8x512xf32>, vector<2x512xf32> -> vector<2x512xf32>
    %c0_332 = arith.constant 0 : index
    %c0_333 = arith.constant 0 : index
    %1082 = vector.load %arg14[%c0_332, %c0_333] : memref<16x512xf32, #tpu.memory_space<vmem>>, vector<16x512xf32>
    %cst_334 = arith.constant dense<0.000000e+00> : vector<2x512xf32>
    %1083 = tpu.matmul %1022, %1082, %cst_334 {dimension_numbers = #tpu.dot_dimension_numbers<[1], [0], [0], [1], [0, 0, 1, 1], [], []>} : vector<2x16xf32>, vector<16x512xf32>, vector<2x512xf32> -> vector<2x512xf32>
    %1084 = arith.addf %1081, %1083 : vector<2x512xf32>
    %1085 = arith.addf %1084, %515 : vector<2x512xf32>
    %1086 = vector.extract_strided_slice %1085 {offsets = [0, 0], sizes = [2, 16], strides = [1, 1]} : vector<2x512xf32> to vector<2x16xf32>
    %1087 = arith.negf %1086 : vector<2x16xf32>
    %1088 = math.exp %1087 : vector<2x16xf32>
    %cst_335 = arith.constant 1.000000e+00 : f32
    %1089 = vector.broadcast %cst_335 : f32 to vector<2x16xf32>
    %1090 = arith.addf %1089, %1088 : vector<2x16xf32>
    %1091 = arith.divf %1089, %1090 : vector<2x16xf32>
    %1092 = vector.extract_strided_slice %1085 {offsets = [0, 128], sizes = [2, 16], strides = [1, 1]} : vector<2x512xf32> to vector<2x16xf32>
    %1093 = arith.negf %1092 : vector<2x16xf32>
    %1094 = math.exp %1093 : vector<2x16xf32>
    %cst_336 = arith.constant 1.000000e+00 : f32
    %1095 = vector.broadcast %cst_336 : f32 to vector<2x16xf32>
    %1096 = arith.addf %1095, %1094 : vector<2x16xf32>
    %1097 = arith.divf %1095, %1096 : vector<2x16xf32>
    %1098 = vector.extract_strided_slice %1085 {offsets = [0, 256], sizes = [2, 16], strides = [1, 1]} : vector<2x512xf32> to vector<2x16xf32>
    %1099 = math.tanh %1098 : vector<2x16xf32>
    %1100 = vector.extract_strided_slice %1085 {offsets = [0, 384], sizes = [2, 16], strides = [1, 1]} : vector<2x512xf32> to vector<2x16xf32>
    %1101 = arith.negf %1100 : vector<2x16xf32>
    %1102 = math.exp %1101 : vector<2x16xf32>
    %cst_337 = arith.constant 1.000000e+00 : f32
    %1103 = vector.broadcast %cst_337 : f32 to vector<2x16xf32>
    %1104 = arith.addf %1103, %1102 : vector<2x16xf32>
    %1105 = arith.divf %1103, %1104 : vector<2x16xf32>
    %1106 = arith.mulf %1097, %1020 : vector<2x16xf32>
    %1107 = arith.mulf %1091, %1099 : vector<2x16xf32>
    %1108 = arith.addf %1106, %1107 : vector<2x16xf32>
    %1109 = math.tanh %1108 : vector<2x16xf32>
    %1110 = arith.mulf %1105, %1109 : vector<2x16xf32>
    %c0_338 = arith.constant 0 : index
    %c0_339 = arith.constant 0 : index
    %1111 = vector.load %arg16[%c0_338, %c0_339] : memref<16x12xf32, #tpu.memory_space<vmem>>, vector<16x12xf32>
    %cst_340 = arith.constant dense<0.000000e+00> : vector<2x12xf32>
    %1112 = tpu.matmul %1110, %1111, %cst_340 {dimension_numbers = #tpu.dot_dimension_numbers<[1], [0], [0], [1], [0, 0, 1, 1], [], []>} : vector<2x16xf32>, vector<16x12xf32>, vector<2x12xf32> -> vector<2x12xf32>
    %1113 = arith.addf %1112, %518 : vector<2x12xf32>
    %c4_i32_341 = arith.constant 4 : i32
    %1114 = vector.broadcast %c4_i32_341 : i32 to vector<2x12xi32>
    %1115 = arith.cmpi slt, %519, %1114 : vector<2x12xi32>
    %c8_i32_342 = arith.constant 8 : i32
    %1116 = vector.broadcast %c8_i32_342 : i32 to vector<2x12xi32>
    %1117 = arith.cmpi slt, %519, %1116 : vector<2x12xi32>
    %cst_343 = arith.constant 0.000000e+00 : f32
    %1118 = vector.broadcast %cst_343 : f32 to vector<2x12xf32>
    %1119 = arith.cmpf ogt, %1113, %1118 : vector<2x12xf32>
    %1120 = arith.mulf %1113, %1113 : vector<2x12xf32>
    %cst_344 = arith.constant 1.000000e+00 : f32
    %1121 = vector.broadcast %cst_344 : f32 to vector<2x12xf32>
    %1122 = arith.addf %1121, %1120 : vector<2x12xf32>
    %1123 = math.rsqrt %1122 : vector<2x12xf32>
    %1124 = arith.mulf %1113, %1123 : vector<2x12xf32>
    %1125 = arith.select %1119, %1113, %1124 : vector<2x12xi1>, vector<2x12xf32>
    %cst_345 = arith.constant 1.005000e+00 : f32
    %1126 = vector.broadcast %cst_345 : f32 to vector<2x12xf32>
    %1127 = arith.addf %1126, %1125 : vector<2x12xf32>
    %1128 = math.tanh %1113 : vector<2x12xf32>
    %cst_346 = arith.constant 9.990000e-01 : f32
    %1129 = vector.broadcast %cst_346 : f32 to vector<2x12xf32>
    %1130 = arith.mulf %1129, %1128 : vector<2x12xf32>
    %cst_347 = arith.constant 1.000000e+00 : f32
    %1131 = vector.broadcast %cst_347 : f32 to vector<2x12xf32>
    %1132 = arith.addf %1131, %1130 : vector<2x12xf32>
    %cst_348 = arith.constant 5.000000e-01 : f32
    %1133 = vector.broadcast %cst_348 : f32 to vector<2x12xf32>
    %1134 = arith.mulf %1133, %1132 : vector<2x12xf32>
    %1135 = arith.select %1117, %1127, %1134 : vector<2x12xi1>, vector<2x12xf32>
    %1136 = arith.select %1115, %1113, %1135 : vector<2x12xi1>, vector<2x12xf32>
    %c6 = arith.constant 6 : index
    %c0_349 = arith.constant 0 : index
    %c0_350 = arith.constant 0 : index
    %1137 = vector.load %arg20[%c6, %c0_349, %c0_350] : memref<8x2x12xf32, #tpu.memory_space<vmem>>, vector<1x2x12xf32>
    %1138 = vector.shape_cast %1137 : vector<1x2x12xf32> to vector<2x12xf32>
    %1139 = vector.shape_cast %1136 : vector<2x12xf32> to vector<1x2x12xf32>
    tpu.vector_store %arg20[%c6, %c0_349, %c0_350], %1139 {strides = array<i32>} : memref<8x2x12xf32, #tpu.memory_space<vmem>>, vector<1x2x12xf32>,
    %c0_351 = arith.constant 0 : index
    %c0_352 = arith.constant 0 : index
    %1140 = vector.load %arg11[%c0_351, %c0_352] : memref<8x512xf32, #tpu.memory_space<vmem>>, vector<8x512xf32>
    %cst_353 = arith.constant dense<0.000000e+00> : vector<2x512xf32>
    %1141 = tpu.matmul %1079, %1140, %cst_353 {dimension_numbers = #tpu.dot_dimension_numbers<[1], [0], [0], [1], [0, 0, 1, 1], [], []>} : vector<2x8xf32>, vector<8x512xf32>, vector<2x512xf32> -> vector<2x512xf32>
    %1142 = arith.addf %512, %1141 : vector<2x512xf32>
    %1143 = vector.extract_strided_slice %1142 {offsets = [0, 0], sizes = [2, 8], strides = [1, 1]} : vector<2x512xf32> to vector<2x8xf32>
    %1144 = arith.negf %1143 : vector<2x8xf32>
    %1145 = math.exp %1144 : vector<2x8xf32>
    %cst_354 = arith.constant 1.000000e+00 : f32
    %1146 = vector.broadcast %cst_354 : f32 to vector<2x8xf32>
    %1147 = arith.addf %1146, %1145 : vector<2x8xf32>
    %1148 = arith.divf %1146, %1147 : vector<2x8xf32>
    %1149 = vector.extract_strided_slice %1142 {offsets = [0, 128], sizes = [2, 8], strides = [1, 1]} : vector<2x512xf32> to vector<2x8xf32>
    %1150 = arith.negf %1149 : vector<2x8xf32>
    %1151 = math.exp %1150 : vector<2x8xf32>
    %cst_355 = arith.constant 1.000000e+00 : f32
    %1152 = vector.broadcast %cst_355 : f32 to vector<2x8xf32>
    %1153 = arith.addf %1152, %1151 : vector<2x8xf32>
    %1154 = arith.divf %1152, %1153 : vector<2x8xf32>
    %1155 = vector.extract_strided_slice %1142 {offsets = [0, 256], sizes = [2, 8], strides = [1, 1]} : vector<2x512xf32> to vector<2x8xf32>
    %1156 = math.tanh %1155 : vector<2x8xf32>
    %1157 = vector.extract_strided_slice %1142 {offsets = [0, 384], sizes = [2, 8], strides = [1, 1]} : vector<2x512xf32> to vector<2x8xf32>
    %1158 = arith.negf %1157 : vector<2x8xf32>
    %1159 = math.exp %1158 : vector<2x8xf32>
    %cst_356 = arith.constant 1.000000e+00 : f32
    %1160 = vector.broadcast %cst_356 : f32 to vector<2x8xf32>
    %1161 = arith.addf %1160, %1159 : vector<2x8xf32>
    %1162 = arith.divf %1160, %1161 : vector<2x8xf32>
    %1163 = arith.mulf %1154, %1077 : vector<2x8xf32>
    %1164 = arith.mulf %1148, %1156 : vector<2x8xf32>
    %1165 = arith.addf %1163, %1164 : vector<2x8xf32>
    %1166 = math.tanh %1165 : vector<2x8xf32>
    %1167 = arith.mulf %1162, %1166 : vector<2x8xf32>
    %c0_357 = arith.constant 0 : index
    %c0_358 = arith.constant 0 : index
    %1168 = vector.load %arg13[%c0_357, %c0_358] : memref<8x512xf32, #tpu.memory_space<vmem>>, vector<8x512xf32>
    %cst_359 = arith.constant dense<0.000000e+00> : vector<2x512xf32>
    %1169 = tpu.matmul %1167, %1168, %cst_359 {dimension_numbers = #tpu.dot_dimension_numbers<[1], [0], [0], [1], [0, 0, 1, 1], [], []>} : vector<2x8xf32>, vector<8x512xf32>, vector<2x512xf32> -> vector<2x512xf32>
    %c0_360 = arith.constant 0 : index
    %c0_361 = arith.constant 0 : index
    %1170 = vector.load %arg14[%c0_360, %c0_361] : memref<16x512xf32, #tpu.memory_space<vmem>>, vector<16x512xf32>
    %cst_362 = arith.constant dense<0.000000e+00> : vector<2x512xf32>
    %1171 = tpu.matmul %1110, %1170, %cst_362 {dimension_numbers = #tpu.dot_dimension_numbers<[1], [0], [0], [1], [0, 0, 1, 1], [], []>} : vector<2x16xf32>, vector<16x512xf32>, vector<2x512xf32> -> vector<2x512xf32>
    %1172 = arith.addf %1169, %1171 : vector<2x512xf32>
    %1173 = arith.addf %1172, %515 : vector<2x512xf32>
    %1174 = vector.extract_strided_slice %1173 {offsets = [0, 0], sizes = [2, 16], strides = [1, 1]} : vector<2x512xf32> to vector<2x16xf32>
    %1175 = arith.negf %1174 : vector<2x16xf32>
    %1176 = math.exp %1175 : vector<2x16xf32>
    %cst_363 = arith.constant 1.000000e+00 : f32
    %1177 = vector.broadcast %cst_363 : f32 to vector<2x16xf32>
    %1178 = arith.addf %1177, %1176 : vector<2x16xf32>
    %1179 = arith.divf %1177, %1178 : vector<2x16xf32>
    %1180 = vector.extract_strided_slice %1173 {offsets = [0, 128], sizes = [2, 16], strides = [1, 1]} : vector<2x512xf32> to vector<2x16xf32>
    %1181 = arith.negf %1180 : vector<2x16xf32>
    %1182 = math.exp %1181 : vector<2x16xf32>
    %cst_364 = arith.constant 1.000000e+00 : f32
    %1183 = vector.broadcast %cst_364 : f32 to vector<2x16xf32>
    %1184 = arith.addf %1183, %1182 : vector<2x16xf32>
    %1185 = arith.divf %1183, %1184 : vector<2x16xf32>
    %1186 = vector.extract_strided_slice %1173 {offsets = [0, 256], sizes = [2, 16], strides = [1, 1]} : vector<2x512xf32> to vector<2x16xf32>
    %1187 = math.tanh %1186 : vector<2x16xf32>
    %1188 = vector.extract_strided_slice %1173 {offsets = [0, 384], sizes = [2, 16], strides = [1, 1]} : vector<2x512xf32> to vector<2x16xf32>
    %1189 = arith.negf %1188 : vector<2x16xf32>
    %1190 = math.exp %1189 : vector<2x16xf32>
    %cst_365 = arith.constant 1.000000e+00 : f32
    %1191 = vector.broadcast %cst_365 : f32 to vector<2x16xf32>
    %1192 = arith.addf %1191, %1190 : vector<2x16xf32>
    %1193 = arith.divf %1191, %1192 : vector<2x16xf32>
    %1194 = arith.mulf %1185, %1108 : vector<2x16xf32>
    %1195 = arith.mulf %1179, %1187 : vector<2x16xf32>
    %1196 = arith.addf %1194, %1195 : vector<2x16xf32>
    %1197 = math.tanh %1196 : vector<2x16xf32>
    %1198 = arith.mulf %1193, %1197 : vector<2x16xf32>
    %c0_366 = arith.constant 0 : index
    %c0_367 = arith.constant 0 : index
    %1199 = vector.load %arg16[%c0_366, %c0_367] : memref<16x12xf32, #tpu.memory_space<vmem>>, vector<16x12xf32>
    %cst_368 = arith.constant dense<0.000000e+00> : vector<2x12xf32>
    %1200 = tpu.matmul %1198, %1199, %cst_368 {dimension_numbers = #tpu.dot_dimension_numbers<[1], [0], [0], [1], [0, 0, 1, 1], [], []>} : vector<2x16xf32>, vector<16x12xf32>, vector<2x12xf32> -> vector<2x12xf32>
    %1201 = arith.addf %1200, %518 : vector<2x12xf32>
    %c4_i32_369 = arith.constant 4 : i32
    %1202 = vector.broadcast %c4_i32_369 : i32 to vector<2x12xi32>
    %1203 = arith.cmpi slt, %519, %1202 : vector<2x12xi32>
    %c8_i32_370 = arith.constant 8 : i32
    %1204 = vector.broadcast %c8_i32_370 : i32 to vector<2x12xi32>
    %1205 = arith.cmpi slt, %519, %1204 : vector<2x12xi32>
    %cst_371 = arith.constant 0.000000e+00 : f32
    %1206 = vector.broadcast %cst_371 : f32 to vector<2x12xf32>
    %1207 = arith.cmpf ogt, %1201, %1206 : vector<2x12xf32>
    %1208 = arith.mulf %1201, %1201 : vector<2x12xf32>
    %cst_372 = arith.constant 1.000000e+00 : f32
    %1209 = vector.broadcast %cst_372 : f32 to vector<2x12xf32>
    %1210 = arith.addf %1209, %1208 : vector<2x12xf32>
    %1211 = math.rsqrt %1210 : vector<2x12xf32>
    %1212 = arith.mulf %1201, %1211 : vector<2x12xf32>
    %1213 = arith.select %1207, %1201, %1212 : vector<2x12xi1>, vector<2x12xf32>
    %cst_373 = arith.constant 1.005000e+00 : f32
    %1214 = vector.broadcast %cst_373 : f32 to vector<2x12xf32>
    %1215 = arith.addf %1214, %1213 : vector<2x12xf32>
    %1216 = math.tanh %1201 : vector<2x12xf32>
    %cst_374 = arith.constant 9.990000e-01 : f32
    %1217 = vector.broadcast %cst_374 : f32 to vector<2x12xf32>
    %1218 = arith.mulf %1217, %1216 : vector<2x12xf32>
    %cst_375 = arith.constant 1.000000e+00 : f32
    %1219 = vector.broadcast %cst_375 : f32 to vector<2x12xf32>
    %1220 = arith.addf %1219, %1218 : vector<2x12xf32>
    %cst_376 = arith.constant 5.000000e-01 : f32
    %1221 = vector.broadcast %cst_376 : f32 to vector<2x12xf32>
    %1222 = arith.mulf %1221, %1220 : vector<2x12xf32>
    %1223 = arith.select %1205, %1215, %1222 : vector<2x12xi1>, vector<2x12xf32>
    %1224 = arith.select %1203, %1201, %1223 : vector<2x12xi1>, vector<2x12xf32>
    %c7 = arith.constant 7 : index
    %c0_377 = arith.constant 0 : index
    %c0_378 = arith.constant 0 : index
    %1225 = vector.load %arg20[%c7, %c0_377, %c0_378] : memref<8x2x12xf32, #tpu.memory_space<vmem>>, vector<1x2x12xf32>
    %1226 = vector.shape_cast %1225 : vector<1x2x12xf32> to vector<2x12xf32>
    %1227 = vector.shape_cast %1224 : vector<2x12xf32> to vector<1x2x12xf32>
    tpu.vector_store %arg20[%c7, %c0_377, %c0_378], %1227 {strides = array<i32>} : memref<8x2x12xf32, #tpu.memory_space<vmem>>, vector<1x2x12xf32>,
    return
  }
}

</mosaic_0001>

<bundles_post_ra>
// kernel: lstm_vaev_forward.1
= control target key start
LH: loop header
LB: loop body
LE: loop exit
PB: predicated region body
PF: predicated region fallthrough
CT: control target
= control target key end

     0   :  { %s12266_s0 = inlined_call_operand.vmem [shape: f32[16,4], index: 0, kind: input, shape index: {}]   ;;  %s12267_s1 = inlined_call_operand.vmem [shape: f32[4,512], index: 1, kind: input, shape index: {}]   ;;  %s12268_s2 = inlined_call_operand.vmem [shape: f32[16,512], index: 2, kind: input, shape index: {}]   ;;  %s12269_s3 = inlined_call_operand.vmem [shape: f32[1,512], index: 3, kind: input, shape index: {}]   ;;  %s12270_s4 = inlined_call_operand.hbm [shape: f32[16,512], index: 4, kind: input, shape index: {}]   ;;  %s12271_s5 = inlined_call_operand.hbm [shape: f32[8,512], index: 5, kind: input, shape index: {}]   ;;  %s12272_s6 = inlined_call_operand.hbm [shape: f32[1,512], index: 6, kind: input, shape index: {}]   ;;  %s12273_s7 = inlined_call_operand.vmem [shape: f32[8,8], index: 7, kind: input, shape index: {}]   ;;  %s12274_s8 = inlined_call_operand.vmem [shape: f32[1,8], index: 8, kind: input, shape index: {}]   ;;  %s12275_s9 = inlined_call_operand.hbm [shape: f32[2,4], index: 9, kind: input, shape index: {}]   ;;  %s12276_s10 = inlined_call_operand.hbm [shape: f32[4,512], index: 10, kind: input, shape index: {}]   ;;  %s12277_s11 = inlined_call_operand.hbm [shape: f32[8,512], index: 11, kind: input, shape index: {}]   ;;  %s12278_s12 = inlined_call_operand.hbm [shape: f32[1,512], index: 12, kind: input, shape index: {}]   ;;  %s12279_s13 = inlined_call_operand.hbm [shape: f32[8,512], index: 13, kind: input, shape index: {}]   ;;  %s12280_s14 = inlined_call_operand.hbm [shape: f32[16,512], index: 14, kind: input, shape index: {}]   ;;  %s12281_s15 = inlined_call_operand.hbm [shape: f32[1,512], index: 15, kind: input, shape index: {}]   ;;  %s12282_s16 = inlined_call_operand.hbm [shape: f32[16,12], index: 16, kind: input, shape index: {}]   ;;  %s12283_s17 = inlined_call_operand.vmem [shape: f32[1,12], index: 17, kind: input, shape index: {}]   ;;  %s12284_s18 = inlined_call_operand.hbm [shape: f32[2,4], index: 18, kind: output, shape index: {0}]   ;;  %s12285_s19 = inlined_call_operand.hbm [shape: f32[2,4], index: 19, kind: output, shape index: {1}]   ;;  %s12286_s20 = inlined_call_operand.vmem [shape: f32[8,2,12], index: 20, kind: output, shape index: {2}]  }
   0x1   :  { %12291 = sst [smem:[#allocation31_spill]] %s12266_s0 }
   0x2   :  { %12292 = sst [smem:[#allocation32_spill]] %s12267_s1 }
   0x3   :  { %12293 = sst [smem:[#allocation33_spill]] %s12268_s2 }
   0x4   :  { %12294 = sst [smem:[#allocation34_spill]] %s12269_s3 }
   0x5   :  { %12295 = sst [smem:[#allocation35_spill]] %s12270_s4 }
   0x6   :  { %26 = vsyncpa [#allocation3], 0 }
   0x7   :  { %27 = vsyncpa [#allocation6], 0 }
   0x8   :  { %28 = vsyncpa [#allocation9], 0 }
   0x9   :  { %29 = vsyncpa [#allocation12], 0 }
   0xa   :  { %30 = vsyncpa [#allocation15], 0 }
   0xb   :  { %31 = vsyncpa [#allocation18], 0 }
   0xc   :  { %32 = vsyncpa [#allocation4], 0 }
   0xd   :  { %33 = vsyncpa [#allocation22], 0  ;;  %s10985_s1 = smov [#allocation5]   ;;  %s10986_s23 = smov [#allocation8]  }
   0xe   :  { %s60_s22 = sshll.u32 %s10985_s1, 4  ;;  %s84_s24 = sshll.u32 %s10986_s23, 4  ;;  %s61_s22 = int_to_ptr.vmem [resolvable:$true] %s60_s22  ;;  %s85_s24 = int_to_ptr.vmem [resolvable:$true] %s84_s24 }
   0xf   :  { %s10683_s3 = scalar_lea.hbm %s12271_s5, 512 }
  0x10   :  { %p10684_p0 = scmp.ne.s32.totalorder %s12271_s5, %s10683_s3  ;;  %p10687_p1 = scmp.lt.u32.totalorder %s10683_s3, %s12271_s5 }
  0x12   :  { %p10689_p2 = pnand %p10687_p1, %p10684_p0 }
  0x14   :  { %10692 = shalt.err (!%p10689_p2)
}
  0x15   :  { %s10693_s29 = scalar_lea.vmem %s61_s22, 512  ;;  %p10698_p4 = scmp.lt.s32.totalorder %s61_s22, %s61_s22 }
  0x16   :  { %p10694_p3 = scmp.ne.s32.totalorder %s61_s22, %s10693_s29  ;;  %p10699_p5 = scmp.lt.s32.totalorder %s10693_s29, %s10693_s29 }
  0x18   :  { %p10700_p6 = por %p10699_p5, %p10698_p4 }
  0x1a   :  { %p10701_p7 = pnand %p10700_p6, %p10694_p3 }
  0x1c   :  { %10704 = shalt.err (!%p10701_p7)
}
  0x1d   :  { %63 = dma.hbm_to_vmem [thread:$0]  %s12271_s5, 512, %s61_s22, [#allocation6]  }
  0x1e   :  { %s10705_s23 = scalar_lea.hbm %s12275_s9, 32 }
  0x1f   :  { %p10706_p8 = scmp.ne.s32.totalorder %s12275_s9, %s10705_s23  ;;  %p10709_p9 = scmp.lt.u32.totalorder %s10705_s23, %s12275_s9 }
  0x21   :  { %p10711_p10 = pnand %p10709_p9, %p10706_p8 }
  0x23   :  { %10714 = shalt.err (!%p10711_p10)
}
  0x24   :  { %s10715_s27 = scalar_lea.vmem %s85_s24, 32  ;;  %p10720_p12 = scmp.lt.s32.totalorder %s85_s24, %s85_s24 }
  0x25   :  { %p10716_p11 = scmp.ne.s32.totalorder %s85_s24, %s10715_s27  ;;  %p10721_p13 = scmp.lt.s32.totalorder %s10715_s27, %s10715_s27 }
  0x27   :  { %p10722_p0 = por %p10721_p13, %p10720_p12 }
  0x29   :  { %p10723_p1 = pnand %p10722_p0, %p10716_p11 }
  0x2b   :  { %10726 = shalt.err (!%p10723_p1)
}
  0x2c   :  { %87 = dma.hbm_to_vmem [thread:$0]  %s12275_s9, 32, %s85_s24, [#allocation9]  }
  0x2d   :  { %s10987_s28 = smov [#allocation11]   ;;  %s10988_s29 = smov [#allocation14]  }
  0x2e   :  { %s104_s4 = sshll.u32 %s10987_s28, 4  ;;  %s124_s30 = sshll.u32 %s10988_s29, 4  ;;  %s105_s4 = int_to_ptr.vmem [resolvable:$true] %s104_s4  ;;  %s125_s30 = int_to_ptr.vmem [resolvable:$true] %s124_s30 }
  0x2f   :  { %s10727_s1 = scalar_lea.hbm %s12277_s11, 512 }
  0x30   :  { %p10728_p2 = scmp.ne.s32.totalorder %s12277_s11, %s10727_s1  ;;  %p10731_p3 = scmp.lt.u32.totalorder %s10727_s1, %s12277_s11 }
  0x32   :  { %p10733_p4 = pnand %p10731_p3, %p10728_p2 }
  0x34   :  { %10736 = shalt.err (!%p10733_p4)
}
  0x35   :  { %s10737_s9 = scalar_lea.vmem %s105_s4, 512  ;;  %p10742_p6 = scmp.lt.s32.totalorder %s105_s4, %s105_s4 }
  0x36   :  { %p10738_p5 = scmp.ne.s32.totalorder %s105_s4, %s10737_s9  ;;  %p10743_p7 = scmp.lt.s32.totalorder %s10737_s9, %s10737_s9 }
  0x38   :  { %p10744_p8 = por %p10743_p7, %p10742_p6 }
  0x3a   :  { %p10745_p9 = pnand %p10744_p8, %p10738_p5 }
  0x3c   :  { %10748 = shalt.err (!%p10745_p9)
}
  0x3d   :  { %107 = dma.hbm_to_vmem [thread:$0]  %s12277_s11, 512, %s105_s4, [#allocation12]  }
  0x3e   :  { %s10749_s22 = scalar_lea.hbm %s12279_s13, 512 }
  0x3f   :  { %p10750_p10 = scmp.ne.s32.totalorder %s12279_s13, %s10749_s22  ;;  %p10753_p11 = scmp.lt.u32.totalorder %s10749_s22, %s12279_s13 }
  0x41   :  { %p10755_p12 = pnand %p10753_p11, %p10750_p10 }
  0x43   :  { %10758 = shalt.err (!%p10755_p12)
}
  0x44   :  { %s10759_s1 = scalar_lea.vmem %s125_s30, 512  ;;  %p10764_p0 = scmp.lt.s32.totalorder %s125_s30, %s125_s30 }
  0x45   :  { %p10760_p13 = scmp.ne.s32.totalorder %s125_s30, %s10759_s1  ;;  %p10765_p1 = scmp.lt.s32.totalorder %s10759_s1, %s10759_s1 }
  0x47   :  { %p10766_p2 = por %p10765_p1, %p10764_p0 }
  0x49   :  { %p10767_p3 = pnand %p10766_p2, %p10760_p13 }
  0x4b   :  { %10770 = shalt.err (!%p10767_p3)
}
  0x4c   :  { %127 = dma.hbm_to_vmem [thread:$0]  %s12279_s13, 512, %s125_s30, [#allocation15]  }
  0x4d   :  { %s10989_s23 = smov [#allocation17]   ;;  %s10990_s25 = smov [#allocation2]  }
  0x4e   :  { %s146_s2 = sshll.u32 %s10989_s23, 4  ;;  %s47_s3 = sshll.u32 %s10990_s25, 4  ;;  %s147_s2 = int_to_ptr.vmem [resolvable:$true] %s146_s2  ;;  %s11159_s3 = int_to_ptr.vmem [resolvable:$true] %s47_s3 }
  0x4f   :  { %s10771_s26 = scalar_lea.hbm %s12281_s15, 64 }
  0x50   :  { %p10772_p4 = scmp.ne.s32.totalorder %s12281_s15, %s10771_s26  ;;  %p10775_p5 = scmp.lt.u32.totalorder %s10771_s26, %s12281_s15 }
  0x52   :  { %p10777_p6 = pnand %p10775_p5, %p10772_p4 }
  0x54   :  { %10780 = shalt.err (!%p10777_p6)
}
  0x55   :  { %s10781_s13 = scalar_lea.vmem %s147_s2, 64  ;;  %p10786_p8 = scmp.lt.s32.totalorder %s147_s2, %s147_s2 }
  0x56   :  { %p10782_p7 = scmp.ne.s32.totalorder %s147_s2, %s10781_s13  ;;  %p10787_p9 = scmp.lt.s32.totalorder %s10781_s13, %s10781_s13 }
  0x58   :  { %p10788_p10 = por %p10787_p9, %p10786_p8 }
  0x5a   :  { %p10789_p11 = pnand %p10788_p10, %p10782_p7 }
  0x5c   :  { %10792 = shalt.err (!%p10789_p11)
}
  0x5d   :  { %149 = dma.hbm_to_vmem [thread:$0]  %s12281_s15, 64, %s147_s2, [#allocation18]  }
  0x5e   :  { %s12296_s1 = sld [smem:[#allocation35_spill]] }
  0x64   :  { %s10793_s11 = scalar_lea.hbm %s12296_s1, 1024 }
  0x65   :  { %p10794_p12 = scmp.ne.s32.totalorder %s12296_s1, %s10793_s11  ;;  %p10797_p13 = scmp.lt.u32.totalorder %s10793_s11, %s12296_s1 }
  0x67   :  { %p10799_p0 = pnand %p10797_p13, %p10794_p12 }
  0x69   :  { %10802 = shalt.err (!%p10799_p0)
}
  0x6a   :  { %s10803_s24 = scalar_lea.vmem %s11159_s3, 1024  ;;  %p10808_p2 = scmp.lt.s32.totalorder %s11159_s3, %s11159_s3 }
  0x6b   :  { %p10804_p1 = scmp.ne.s32.totalorder %s11159_s3, %s10803_s24  ;;  %p10809_p3 = scmp.lt.s32.totalorder %s10803_s24, %s10803_s24 }
  0x6d   :  { %p10810_p4 = por %p10809_p3, %p10808_p2 }
  0x6f   :  { %p10811_p5 = pnand %p10810_p4, %p10804_p1 }
  0x71   :  { %10814 = shalt.err (!%p10811_p5)
}
  0x72   :  { %s10991_s15 = smov 512   ;;  %s10992_s2 = smov 32  }
  0x73   :  { %53 = dma.hbm_to_vmem [thread:$0]  %s12296_s1, 1024, %s11159_s3, [#allocation3], %s10991_s15, %s10991_s15, %s10992_s2  }
  0x74   :  { %s10993_s5 = smov [#allocation7]   ;;  %s10994_s28 = smov [#allocation10]  }
  0x75   :  { %s70_s22 = sshll.u32 %s10993_s5, 4  ;;  %s94_s13 = sshll.u32 %s10994_s28, 4  ;;  %s71_s22 = int_to_ptr.vmem [resolvable:$true] %s70_s22  ;;  %s95_s13 = int_to_ptr.vmem [resolvable:$true] %s94_s13 }
  0x76   :  { %s10815_s0 = scalar_lea.hbm %s12272_s6, 64 }
  0x77   :  { %p10816_p6 = scmp.ne.s32.totalorder %s12272_s6, %s10815_s0  ;;  %p10819_p7 = scmp.lt.u32.totalorder %s10815_s0, %s12272_s6 }
  0x79   :  { %p10821_p8 = pnand %p10819_p7, %p10816_p6 }
  0x7b   :  { %10824 = shalt.err (!%p10821_p8)
}
  0x7c   :  { %s10825_s3 = scalar_lea.vmem %s71_s22, 64  ;;  %p10830_p10 = scmp.lt.s32.totalorder %s71_s22, %s71_s22 }
  0x7d   :  { %p10826_p9 = scmp.ne.s32.totalorder %s71_s22, %s10825_s3  ;;  %p10831_p11 = scmp.lt.s32.totalorder %s10825_s3, %s10825_s3 }
  0x7f   :  { %p10832_p12 = por %p10831_p11, %p10830_p10 }
  0x81   :  { %p10833_p13 = pnand %p10832_p12, %p10826_p9 }
  0x83   :  { %10836 = shalt.err (!%p10833_p13)
}
  0x84   :  { %73 = dma.hbm_to_vmem [thread:$0]  %s12272_s6, 64, %s71_s22, [#allocation6]  }
  0x85   :  { %s10837_s26 = scalar_lea.hbm %s12276_s10, 256 }
  0x86   :  { %p10838_p0 = scmp.ne.s32.totalorder %s12276_s10, %s10837_s26  ;;  %p10841_p1 = scmp.lt.u32.totalorder %s10837_s26, %s12276_s10 }
  0x88   :  { %p10843_p2 = pnand %p10841_p1, %p10838_p0 }
  0x8a   :  { %10846 = shalt.err (!%p10843_p2)
}
  0x8b   :  { %s10847_s29 = scalar_lea.vmem %s95_s13, 256  ;;  %p10852_p4 = scmp.lt.s32.totalorder %s95_s13, %s95_s13 }
  0x8c   :  { %p10848_p3 = scmp.ne.s32.totalorder %s95_s13, %s10847_s29  ;;  %p10853_p5 = scmp.lt.s32.totalorder %s10847_s29, %s10847_s29 }
  0x8e   :  { %p10854_p6 = por %p10853_p5, %p10852_p4 }
  0x90   :  { %p10855_p7 = pnand %p10854_p6, %p10848_p3 }
  0x92   :  { %10858 = shalt.err (!%p10855_p7)
}
  0x93   :  { %97 = dma.hbm_to_vmem [thread:$0]  %s12276_s10, 256, %s95_s13, [#allocation9]  }
  0x94   :  { %s10995_s0 = smov [#allocation13]   ;;  %s10996_s11 = smov [#allocation16]  }
  0x95   :  { %s114_s21 = sshll.u32 %s10995_s0, 4  ;;  %s133_s4 = sshll.u32 %s10996_s11, 4  ;;  %s115_s21 = int_to_ptr.vmem [resolvable:$true] %s114_s21  ;;  %s11217_s4 = int_to_ptr.vmem [resolvable:$true] %s133_s4 }
  0x96   :  { %s10859_s1 = scalar_lea.hbm %s12278_s12, 64 }
  0x97   :  { %p10860_p8 = scmp.ne.s32.totalorder %s12278_s12, %s10859_s1  ;;  %p10863_p9 = scmp.lt.u32.totalorder %s10859_s1, %s12278_s12 }
  0x99   :  { %p10865_p10 = pnand %p10863_p9, %p10860_p8 }
  0x9b   :  { %10868 = shalt.err (!%p10865_p10)
}
  0x9c   :  { %s10869_s10 = scalar_lea.vmem %s115_s21, 64  ;;  %p10874_p12 = scmp.lt.s32.totalorder %s115_s21, %s115_s21 }
  0x9d   :  { %p10870_p11 = scmp.ne.s32.totalorder %s115_s21, %s10869_s10  ;;  %p10875_p13 = scmp.lt.s32.totalorder %s10869_s10, %s10869_s10 }
  0x9f   :  { %p10876_p0 = por %p10875_p13, %p10874_p12 }
  0xa1   :  { %p10877_p1 = pnand %p10876_p0, %p10870_p11 }
  0xa3   :  { %10880 = shalt.err (!%p10877_p1)
}
  0xa4   :  { %117 = dma.hbm_to_vmem [thread:$0]  %s12278_s12, 64, %s115_s21, [#allocation12]  }
  0xa5   :  { %s10881_s30 = scalar_lea.hbm %s12280_s14, 1024 }
  0xa6   :  { %p10882_p2 = scmp.ne.s32.totalorder %s12280_s14, %s10881_s30  ;;  %p10885_p3 = scmp.lt.u32.totalorder %s10881_s30, %s12280_s14 }
  0xa8   :  { %p10887_p4 = pnand %p10885_p3, %p10882_p2 }
  0xaa   :  { %10890 = shalt.err (!%p10887_p4)
}
  0xab   :  { %s10891_s11 = scalar_lea.vmem %s11217_s4, 1024  ;;  %p10896_p6 = scmp.lt.s32.totalorder %s11217_s4, %s11217_s4 }
  0xac   :  { %p10892_p5 = scmp.ne.s32.totalorder %s11217_s4, %s10891_s11  ;;  %p10897_p7 = scmp.lt.s32.totalorder %s10891_s11, %s10891_s11 }
  0xae   :  { %p10898_p8 = por %p10897_p7, %p10896_p6 }
  0xb0   :  { %p10899_p9 = pnand %p10898_p8, %p10892_p5 }
  0xb2   :  { %10902 = shalt.err (!%p10899_p9)
}
  0xb3   :  { %139 = dma.hbm_to_vmem [thread:$0]  %s12280_s14, 1024, %s11217_s4, [#allocation15], %s10991_s15, %s10991_s15, %s10992_s2  }
  0xb4   :  { %s10997_s23 = smov [#allocation19]   ;;  %s10903_s9 = scalar_lea.hbm %s12282_s16, 256 }
  0xb5   :  { %s155_s3 = sshll.u32 %s10997_s23, 4  ;;  %p10904_p10 = scmp.ne.s32.totalorder %s12282_s16, %s10903_s9  ;;  %s156_s3 = int_to_ptr.vmem [resolvable:$true] %s155_s3 }
  0xb6   :  { %p10907_p11 = scmp.lt.u32.totalorder %s10903_s9, %s12282_s16 }
  0xb8   :  { %p10909_p12 = pnand %p10907_p11, %p10904_p10 }
  0xba   :  { %10912 = shalt.err (!%p10909_p12)
}
  0xbb   :  { %s10913_s27 = scalar_lea.vmem %s156_s3, 256  ;;  %p10918_p0 = scmp.lt.s32.totalorder %s156_s3, %s156_s3 }
  0xbc   :  { %p10914_p13 = scmp.ne.s32.totalorder %s156_s3, %s10913_s27  ;;  %p10919_p1 = scmp.lt.s32.totalorder %s10913_s27, %s10913_s27 }
  0xbe   :  { %p10920_p2 = por %p10919_p1, %p10918_p0 }
  0xc0   :  { %p10921_p3 = pnand %p10920_p2, %p10914_p13 }
  0xc2   :  { %10924 = shalt.err (!%p10921_p3)
}
  0xc3   :  { %s10998_s14 = smov 128   ;;  %s10999_s15 = smov 8  }
  0xc4   :  { %161 = dma.hbm_to_vmem [thread:$0]  %s12282_s16, 256, %s156_s3, [#allocation18], %s10998_s14, %s10998_s14, %s10999_s15  }
  0xc5   :  { %10969 = dma.done.wait [#allocation3], 1024  }
  0xc6   :  { %10970 = vsyncadd [#allocation3], 4294966272 }
  0xc7   :  { %10971 = dma.done.wait [#allocation6], 576  }
  0xc8   :  { %10972 = vsyncadd [#allocation6], 4294966720 }
  0xc9   :  { %10973 = dma.done.wait [#allocation9], 288  }
  0xca   :  { %10974 = vsyncadd [#allocation9], 4294967008 }
  0xcb   :  { %10975 = dma.done.wait [#allocation12], 576  }
  0xcc   :  { %10976 = vsyncadd [#allocation12], 4294966720 }
  0xcd   :  { %10977 = dma.done.wait [#allocation15], 1536  }
  0xce   :  { %10978 = vsyncadd [#allocation15], 4294965760 }
  0xcf   :  { %10979 = dma.done.wait [#allocation18], 320  }
  0xd0   :  { %10980 = vsyncadd [#allocation18], 4294966976  ;;  %v11000_v0 = vmov 0.0   ;;  %s12297_s16 = sld [smem:[#allocation32_spill]]  ;;  %vm234_vm0 = vcmask 1043456   ;;  %s12298_s6 = sld [smem:[#allocation33_spill]]  ;;  %v203_v35 = vlaneseq }
  0xd1   :  { %307 = vmatprep.mubr.f32.mxu0 %v11000_v0  ;;  %384 = vmatprep.mubr.f32.mxu1 %v11000_v0  ;;  %s12299_s25 = sld [smem:[#allocation31_spill]]  ;;  %vm227_vm1 = vcmask 31744   ;;  %v11329_v19 = vld [vmem:[#allocation5 + $0x8] sm:$0xff]  ;;  %v11331_v20 = vld [vmem:[#allocation5] sm:$0xff]  ;;  %v11333_v21 = vld [vmem:[#allocation5 + $0x18] sm:$0xff]  ;;  %s12300_s29 = sld [smem:[#allocation34_spill]] }
  0xd2   :  { %v11337_v22 = vld [vmem:[#allocation5 + $0x10] sm:$0xff]  ;;  %v602_v23 = vld [vmem:[#allocation2 + $0x8] sm:$0xff]  ;;  %v601_v26 = vld [vmem:[#allocation2] sm:$0xff]  ;;  %v204_v36 = vshrl.u32 %v203_v35, 7  ;;  %vm427_vm2 = vcmask 130048   ;;  %vm613_vm3 = vcmask 64512  }
  0xd3   :  { %v606_v24 = vld [vmem:[#allocation2 + $0x28] sm:$0xff]  ;;  %v605_v27 = vld [vmem:[#allocation2 + $0x20] sm:$0xff]  ;;  %v604_v28 = vld [vmem:[#allocation2 + $0x18] sm:$0xff]  ;;  %vm11001_vm4 = vmmov 0   ;;  %vm4527_vm5 = vcmask 25600   ;;  %vm5347_vm9 = vcmask 91136  }
  0xd4   :  { %v11341_v25 = vpack.c.bf16 %v606_v24, %v602_v23  ;;  %v11345_v29 = vpack.c.bf16 %v605_v27, %v601_v26  ;;  %v608_v30 = vld [vmem:[#allocation2 + $0x38] sm:$0xff]  ;;  %v603_v31 = vld [vmem:[#allocation2 + $0x10] sm:$0xff]  ;;  %v11360_v37 = vsub.s32 0, %v204_v36  ;;  %v11365_v40 = vsub.s32 1, %v204_v36  ;;  %s11004_s5 = smov [#allocation20]  }
  0xd5   :  { %v607_v32 = vld [vmem:[#allocation2 + $0x30] sm:$0xff]  ;;  %v11348_v33 = vpack.c.bf16 %v608_v30, %v604_v28  ;;  %v11368_v43 = vsub.s32 2, %v204_v36  ;;  %v11371_v47 = vsub.s32 3, %v204_v36  ;;  %s9492_s28 = sshll.u32 %s11004_s5, 4  ;;  %s9493_s28 = int_to_ptr.vmem [resolvable:$true] %s9492_s28 }
  0xd6   :  { %v199_v1 = vld [vmem:[%s12297_s16] sm:$0xff]  ;;  %v420_v2 = vld [vmem:[%s12298_s6 + $0x8] sm:$0xff]  ;;  %v422_v12 = vld [vmem:[%s12298_s6 + $0x18] sm:$0xff]  ;;  %v11350_v34 = vpack.c.bf16 %v607_v32, %v603_v31  ;;  %p10930_p5 = scmp.lt.s32.totalorder %s9493_s28, %s9493_s28 }
  0xd7   :  { %v225_v3 = vcombine.high %v199_v1, %v199_v1  ;;  %v424_v4 = vld [vmem:[%s12298_s6 + $0x28] sm:$0xff]  ;;  %v419_v5 = vld [vmem:[%s12298_s6] sm:$0xff]  ;;  %v426_v13 = vld [vmem:[%s12298_s6 + $0x38] sm:$0xff] }
  0xd8   :  { %v423_v6 = vld [vmem:[%s12298_s6 + $0x20] sm:$0xff]  ;;  %v11283_v8 = vpack.c.bf16 %v424_v4, %v420_v2  ;;  %v200_v10 = vld [vmem:[%s12297_s16 + $0x8] sm:$0xff]  ;;  %v421_v14 = vld [vmem:[%s12298_s6 + $0x10] sm:$0xff]  ;;  %v11312_v17 = vpack.c.bf16 %v426_v13, %v422_v12  ;;  %s11005_s16 = smov [#allocation21]  }
  0xd9   :  { %v197_v7 = vld [vmem:[%s12299_s25] sm:$0xff]  ;;  %v11285_v9 = vpack.c.bf16 %v423_v6, %v419_v5  ;;  %9524 = vmatprep.subr.msk.mxu0 %vm234_vm0, %v225_v3  ;;  %v226_v11 = vcombine.high %v200_v10, %v200_v10  ;;  %v425_v15 = vld [vmem:[%s12298_s6 + $0x30] sm:$0xff]  ;;  %v198_v16 = vld [vmem:[%s12299_s25 + $0x8] sm:$0xff]  ;;  %s9502_s30 = sshll.u32 %s11005_s16, 4  ;;  %s9503_s30 = int_to_ptr.vmem [resolvable:$true] %s9502_s30 }
  0xda   :  { %9525 = vmatpush1.msk.msra.mxu0 %vm234_vm0, %v199_v1  ;;  %v11315_v18 = vpack.c.bf16 %v425_v15, %v421_v14  ;;  %v201_v38 = vld [vmem:[%s12300_s29] sm:$0xf]  ;;  %s10925_s29 = scalar_lea.vmem %s9493_s28, 32 }
  0xdb   :  { %9526 = vmatmul.mubr.msk.f32.vlgmr.msra.gmra.mrb[0].mxu0 %vm227_vm1, %v197_v7  ;;  %9828 = vmatprep.subr.bf16.mxu0 %v11283_v8  ;;  %v206_v42 = vrot.slane %v201_v38, %v11360_v37  ;;  %v210_v44 = vrot.slane %v201_v38, %v11365_v40  ;;  %v214_v53 = vrot.slane %v201_v38, %v11368_v43  ;;  %p10926_p4 = scmp.ne.s32.totalorder %s9493_s28, %s10925_s29  ;;  %p10931_p6 = scmp.lt.s32.totalorder %s10925_s29, %s10925_s29 }
  0xdc   :  { %9830 = vmatpush1.bf16.msra.mxu0 %v11285_v9  ;;  %313 = vmatprep.mubr.f32.mxu0 %v11000_v0  ;;  %v218_v56 = vrot.slane %v201_v38, %v11371_v47 }
  0xdd   :  { %9528 = vmatprep.subr.msk.mxu1 %vm234_vm0, %v226_v11  ;;  %616 = vmatprep.subr.mxu0 %v11329_v19  ;;  %p10932_p7 = por %p10931_p6, %p10930_p5 }
  0xde   :  { %9529 = vmatpush1.msk.msra.mxu1 %vm234_vm0, %v200_v10 }
  0xdf   :  { %9527 = vmatmul.mubr.msk.f32.gmra.mrb[2].mxu0 %vm227_vm1, %v198_v16  ;;  %9530 = vmatmul.mubr.msk.f32.vlgmr.msra.gmra.mrb[0].mxu1 %vm227_vm1, %v197_v7  ;;  %p10933_p8 = pnand %p10932_p7, %p10926_p4 }
  0xe0   :  { %495 = vmatprep.mubr.f32.mxu0 %v11000_v0  ;;  %390 = vmatprep.mubr.f32.mxu1 %v11000_v0 }
  0xe1   :  { %9832 = vmatprep.subr.bf16.mxu1 %v11312_v17 }
  0xe2   :  { %9834 = vmatpush1.bf16.msra.mxu1 %v11315_v18 }
  0xe3   :  { %496 = vmatmul.mubr.f32.vlgmr.msra.gmra.mrb[4].mxu0 %v11000_v0  ;;  %9531 = vmatmul.mubr.msk.f32.gmra.mrb[2].mxu1 %vm227_vm1, %v198_v16 }
  0xe4   :  { %566 = vmatprep.mubr.f32.mxu1 %v11000_v0  ;;  %680 = vmatprep.mubr.f32.mxu0 %v11000_v0 }
  0xe5   :  { %687 = vmatprep.subr.mxu1 %v11333_v21  ;;  %617 = vmatpush1.msra.mxu0 %v11331_v20 }
  0xe6   :  { %9836 = vmatprep.subr.bf16.mxu0 %v11341_v25 }
  0xe7   :  { %567 = vmatmul.mubr.f32.vlgmr.msra.gmra.mrb[4].mxu1 %v11000_v0  ;;  %681 = vmatmul.mubr.f32.vlgmr.msra.gmra.mrb[6].mxu0 %v11000_v0 }
  0xe8   :  { %751 = vmatprep.mubr.f32.mxu1 %v11000_v0  ;;  %688 = vmatpush1.msra.mxu1 %v11337_v22 }
  0xe9   :  { %825 = vmatprep.mubr.f32.mxu0 %v11000_v0  ;;  %9838 = vmatpush1.bf16.msra.mxu0 %v11345_v29 }
  0xea   :  { %9840 = vmatprep.subr.bf16.mxu1 %v11348_v33  ;;  %9844 = vmatprep.subr.bf16.mxu0 %v11283_v8 }
  0xeb   :  { %752 = vmatmul.mubr.f32.vlgmr.msra.gmra.mrb[6].mxu1 %v11000_v0 }
  0xec   :  { %896 = vmatprep.mubr.f32.mxu1 %v11000_v0  ;;  %9842 = vmatpush1.bf16.msra.mxu1 %v11350_v34 }
  0xed   :  { %9848 = vmatprep.subr.bf16.mxu1 %v11312_v17 }
 0x1ae   :  { %v309_v39 = vpop.f32.mrb[0].mxu0 }
 0x1af   :  { %v311_v41 = vpop.f32.mrb[1].mxu0  ;;  %v11377_v52 = vadd.f32 %v309_v39, %v206_v42  ;;  %v397_v39 = vld [vmem:[#allocation7] sm:$0xf] }
 0x1b0   :  { %v11380_v54 = vadd.f32 %v311_v41, %v210_v44  ;;  %v11415_v41 = vrot.slane %v397_v39, %v11360_v37 }
 0x1b2   :  { %v315_v45 = vpop.f32.mrb[2].mxu0  ;;  %v386_v46 = vpop.f32.mrb[0].mxu1 }
 0x1b3   :  { %v11373_v48 = vadd.f32 %v315_v45, %v206_v42  ;;  %v317_v49 = vpop.f32.mrb[3].mxu0  ;;  %v388_v50 = vpop.f32.mrb[1].mxu1  ;;  %v11392_v7 = vadd.f32 %v386_v46, %v214_v53  ;;  %v11418_v42 = vrot.slane %v397_v39, %v11365_v40 }
 0x1b4   :  { %v11375_v51 = vadd.f32 %v317_v49, %v210_v44  ;;  %v11389_v3 = vadd.f32 %v388_v50, %v218_v56 }
 0x1b6   :  { %v497_v55 = vpop.f32.mrb[4].mxu0  ;;  %v392_v57 = vpop.f32.mrb[2].mxu1 }
 0x1b7   :  { %v573_v58 = vadd.f32 %v497_v55, %v11377_v52  ;;  %v499_v59 = vpop.f32.mrb[5].mxu0  ;;  %v11384_v60 = vadd.f32 %v392_v57, %v214_v53  ;;  %v394_v61 = vpop.f32.mrb[3].mxu1 }
 0x1b8   :  { %v574_v62 = vadd.f32 %v499_v59, %v11380_v54  ;;  %v11387_v63 = vadd.f32 %v394_v61, %v218_v56  ;;  %v11423_v56 = vrot.slane %v397_v39, %v11371_v47 }
 0x1b9   :  { %v9532_v1 = vmul.f32 -1.442695, %v573_v58 }
 0x1ba   :  { %v9533_v2 = vmul.f32 -1.442695, %v574_v62  ;;  %v568_v4 = vpop.f32.mrb[4].mxu1 }
 0x1bb   :  { %10132 = vpow2.f32 %v9532_v1  ;;  %v570_v5 = vpop.f32.mrb[5].mxu1  ;;  %v575_v11 = vadd.f32 %v568_v4, %v11392_v7 }
 0x1bc   :  { %10134 = vpow2.f32 %v9533_v2  ;;  %v576_v6 = vadd.f32 %v570_v5, %v11389_v3 }
 0x1be   :  { %v9534_v10 = vmul.f32 -1.442695, %v576_v6 }
 0x1c0   :  { %10136 = vpow2.f32 %v9534_v10  ;;  %v11429_v10 = vrot.slane %v397_v39, %v11368_v43 }
 0x1c1   :  { %10138 = vtanh.f32 %v575_v11 }
 0x1c5   :  { %v10133_v12 = vpop.eup %10132 }
 0x1c6   :  { %v10135_v13 = vpop.eup %10134  ;;  %v580_v14 = vadd.f32 1.0, %v10133_v12 }
 0x1c7   :  { %v586_v15 = vadd.f32 1.0, %v10135_v13 }
 0x1c8   :  { %10140 = vrcp.f32 %v580_v14 }
 0x1c9   :  { %10142 = vrcp.f32 %v586_v15 }
 0x1ca   :  { %v10137_v16 = vpop.eup %10136 }
 0x1cb   :  { %v10139_v23 = vpop.eup %10138  ;;  %v593_v28 = vadd.f32 1.0, %v10137_v16 }
 0x1cd   :  { %10144 = vrcp.f32 %v593_v28 }
 0x1d2   :  { %v10141_v24 = vpop.eup %10140 }
 0x1d3   :  { %v10143_v26 = vpop.eup %10142  ;;  %v597_v27 = vmul.f32 %v10141_v24, %v10139_v23 }
 0x1d4   :  { %v596_v30 = vmul.f32 0.0, %v10143_v26 }
 0x1d6   :  { %v11395_v31 = vadd.f32 %v597_v27, %v596_v30 }
 0x1d7   :  { %v10145_v32 = vpop.eup %10144 }
 0x1d8   :  { %10146 = vtanh.f32 %v11395_v31 }
 0x1e2   :  { %v10147_v36 = vpop.eup %10146 }
 0x1e3   :  { %v600_v38 = vmul.f32 %v10147_v36, %v10145_v32 }
 0x1e5   :  { %9535 = vmatmul.mubr.msk.f32.vlgmr.msra.gmra.mrb[6].mxu0 %vm427_vm2, %v600_v38  ;;  %9536 = vmatmul.mubr.msk.f32.vlgmr.msra.gmra.mrb[6].mxu1 %vm427_vm2, %v600_v38 }
 0x1e6   :  { %9846 = vmatpush1.bf16.msra.mxu0 %v11285_v9  ;;  %9850 = vmatpush1.bf16.msra.mxu1 %v11315_v18 }
 0x1e7   :  { %995 = vmatprep.mubr.f32.mxu0 %v11000_v0  ;;  %1066 = vmatprep.mubr.f32.mxu1 %v11000_v0 }
 0x1e8   :  { %1119 = vmatprep.subr.mxu0 %v11329_v19  ;;  %1190 = vmatprep.subr.mxu1 %v11333_v21 }
 0x1e9   :  { %9540 = vmatmul.mubr.msk.f32.vlgmr.msra.gmra.mrb[8].mxu0 %vm427_vm2, %v600_v38  ;;  %9541 = vmatmul.mubr.msk.f32.vlgmr.msra.gmra.mrb[8].mxu1 %vm427_vm2, %v600_v38 }
 0x1ea   :  { %1120 = vmatpush1.msra.mxu0 %v11331_v20  ;;  %1183 = vmatprep.mubr.f32.mxu0 %v11000_v0 }
 0x1eb   :  { %1191 = vmatpush1.msra.mxu1 %v11337_v22  ;;  %1254 = vmatprep.mubr.f32.mxu1 %v11000_v0 }
 0x1ec   :  { %9852 = vmatprep.subr.bf16.mxu0 %v11341_v25  ;;  %9856 = vmatprep.subr.bf16.mxu1 %v11348_v33 }
 0x2b8   :  { %v827_v44 = vpop.f32.mrb[6].mxu0  ;;  %v898_v45 = vpop.f32.mrb[6].mxu1 }
 0x2b9   :  { %v903_v46 = vadd.f32 %v827_v44, %v11415_v41  ;;  %v829_v49 = vpop.f32.mrb[7].mxu0  ;;  %v900_v50 = vpop.f32.mrb[7].mxu1  ;;  %v905_v15 = vadd.f32 %v898_v45, %v11429_v10 }
 0x2ba   :  { %v904_v53 = vadd.f32 %v829_v49, %v11418_v42  ;;  %v906_v5 = vadd.f32 %v900_v50, %v11423_v56 }
 0x2bb   :  { %v9537_v55 = vmul.f32 -1.442695, %v903_v46 }
 0x2bc   :  { %v9538_v57 = vmul.f32 -1.442695, %v904_v53  ;;  %v997_v58 = vpop.f32.mrb[8].mxu0  ;;  %v1068_v59 = vpop.f32.mrb[8].mxu1  ;;  %v9539_v14 = vmul.f32 -1.442695, %v906_v5 }
 0x2bd   :  { %10148 = vpow2.f32 %v9537_v55  ;;  %v1077_v61 = vrot.slane %v997_v58, 6  ;;  %v999_v62 = vpop.f32.mrb[9].mxu0  ;;  %v1070_v1 = vpop.f32.mrb[9].mxu1  ;;  %v1079_v24 = vrot.slane %v1068_v59, 6 }
 0x2be   :  { %10150 = vpow2.f32 %v9538_v57  ;;  %v1078_v2 = vrot.slane %v999_v62, 6  ;;  %v1080_v13 = vrot.slane %v1070_v1, 6  ;;  %v1109_v1 = vrot.slane %v11395_v31, 6 }
 0x2bf   :  { %v1085_v4 = vadd.f32 %v1077_v61, %v11377_v52  ;;  %v1087_v32 = vadd.f32 %v1079_v24, %v11392_v7 }
 0x2c0   :  { %v1086_v6 = vadd.f32 %v1078_v2, %v11380_v54  ;;  %v1088_v16 = vadd.f32 %v1080_v13, %v11389_v3 }
 0x2c1   :  { %v9542_v11 = vmul.f32 -1.442695, %v1085_v4 }
 0x2c2   :  { %v9543_v12 = vmul.f32 -1.442695, %v1086_v6  ;;  %v9544_v30 = vmul.f32 -1.442695, %v1088_v16 }
 0x2c3   :  { %10152 = vpow2.f32 %v9542_v11 }
 0x2c4   :  { %10154 = vpow2.f32 %v9543_v12 }
 0x2c5   :  { %10156 = vpow2.f32 %v9539_v14 }
 0x2c6   :  { %10158 = vtanh.f32 %v905_v15 }
 0x2c7   :  { %v10149_v23 = vpop.eup %10148 }
 0x2c8   :  { %v10151_v26 = vpop.eup %10150  ;;  %v910_v27 = vadd.f32 1.0, %v10149_v23 }
 0x2c9   :  { %v916_v28 = vadd.f32 1.0, %v10151_v26 }
 0x2ca   :  { %10160 = vrcp.f32 %v910_v27 }
 0x2cb   :  { %10162 = vrcp.f32 %v916_v28 }
 0x2cc   :  { %10164 = vpow2.f32 %v9544_v30 }
 0x2cd   :  { %v10153_v36 = vpop.eup %10152  ;;  %10166 = vtanh.f32 %v1087_v32 }
 0x2ce   :  { %v10155_v38 = vpop.eup %10154  ;;  %v1092_v39 = vadd.f32 1.0, %v10153_v36 }
 0x2cf   :  { %v1098_v44 = vadd.f32 1.0, %v10155_v38  ;;  %v10157_v45 = vpop.eup %10156 }
 0x2d0   :  { %10168 = vrcp.f32 %v1092_v39  ;;  %v10159_v46 = vpop.eup %10158  ;;  %v923_v55 = vadd.f32 1.0, %v10157_v45 }
 0x2d1   :  { %10170 = vrcp.f32 %v1098_v44 }
 0x2d2   :  { %10172 = vrcp.f32 %v923_v55 }
 0x2d4   :  { %v10161_v49 = vpop.eup %10160 }
 0x2d5   :  { %v10163_v50 = vpop.eup %10162  ;;  %v927_v53 = vmul.f32 %v10161_v49, %v10159_v46 }
 0x2d6   :  { %v926_v57 = vmul.f32 0.0, %v10163_v50  ;;  %v10165_v58 = vpop.eup %10164 }
 0x2d7   :  { %v10167_v61 = vpop.eup %10166  ;;  %v1105_v5 = vadd.f32 1.0, %v10165_v58 }
 0x2d8   :  { %v11434_v59 = vadd.f32 %v927_v53, %v926_v57 }
 0x2da   :  { %v10169_v62 = vpop.eup %10168  ;;  %10174 = vtanh.f32 %v11434_v59 }
 0x2db   :  { %v10171_v2 = vpop.eup %10170  ;;  %v1112_v4 = vmul.f32 %v10169_v62, %v10167_v61  ;;  %10176 = vrcp.f32 %v1105_v5 }
 0x2dc   :  { %v1111_v6 = vmul.f32 %v10171_v2, %v1109_v1  ;;  %v10173_v12 = vpop.eup %10172 }
 0x2de   :  { %v11438_v11 = vadd.f32 %v1112_v4, %v1111_v6 }
 0x2e0   :  { %10178 = vtanh.f32 %v11438_v11 }
 0x2e4   :  { %v10175_v13 = vpop.eup %10174 }
 0x2e5   :  { %v930_v14 = vmul.f32 %v10175_v13, %v10173_v12  ;;  %v10177_v31 = vpop.eup %10176 }
 0x2e7   :  { %9545 = vmatmul.mubr.msk.f32.vlgmr.msra.gmra.mrb[10].mxu0 %vm613_vm3, %v930_v14  ;;  %9546 = vmatmul.mubr.msk.f32.vlgmr.msra.gmra.mrb[10].mxu1 %vm613_vm3, %v930_v14 }
 0x2e8   :  { %9854 = vmatpush1.bf16.msra.mxu0 %v11345_v29  ;;  %9858 = vmatpush1.bf16.msra.mxu1 %v11350_v34 }
 0x2e9   :  { %1329 = vmatprep.mubr.f32.mxu0 %v11000_v0  ;;  %1400 = vmatprep.mubr.f32.mxu1 %v11000_v0 }
 0x2ea   :  { %v10179_v15 = vpop.eup %10178  ;;  %9860 = vmatprep.subr.bf16.mxu0 %v11283_v8  ;;  %9864 = vmatprep.subr.bf16.mxu1 %v11312_v17 }
 0x2eb   :  { %v1115_v16 = vmul.f32 %v10179_v15, %v10177_v31 }
 0x2ed   :  { %v1262_v23 = vrot.slane %v1115_v16, 2 }
 0x2ef   :  { %9547 = vmatmul.mubr.msk.f32.vlgmr.msra.gmra.mrb[10].mxu0 %vm427_vm2, %v1262_v23  ;;  %9548 = vmatmul.mubr.msk.f32.vlgmr.msra.gmra.mrb[10].mxu1 %vm427_vm2, %v1262_v23 }
 0x2f0   :  { %9862 = vmatpush1.bf16.msra.mxu0 %v11285_v9  ;;  %9866 = vmatpush1.bf16.msra.mxu1 %v11315_v18 }
 0x2f1   :  { %1499 = vmatprep.mubr.f32.mxu0 %v11000_v0  ;;  %1570 = vmatprep.mubr.f32.mxu1 %v11000_v0 }
 0x2f2   :  { %1623 = vmatprep.subr.mxu0 %v11329_v19  ;;  %1694 = vmatprep.subr.mxu1 %v11333_v21 }
 0x2f3   :  { %9552 = vmatmul.mubr.msk.f32.vlgmr.msra.gmra.mrb[12].mxu0 %vm427_vm2, %v1262_v23  ;;  %9553 = vmatmul.mubr.msk.f32.vlgmr.msra.gmra.mrb[12].mxu1 %vm427_vm2, %v1262_v23 }
 0x2f4   :  { %1624 = vmatpush1.msra.mxu0 %v11331_v20  ;;  %1687 = vmatprep.mubr.f32.mxu0 %v11000_v0 }
 0x2f5   :  { %1695 = vmatpush1.msra.mxu1 %v11337_v22  ;;  %1758 = vmatprep.mubr.f32.mxu1 %v11000_v0 }
 0x2f6   :  { %9868 = vmatprep.subr.bf16.mxu0 %v11341_v25  ;;  %9872 = vmatprep.subr.bf16.mxu1 %v11348_v33 }
 0x3c2   :  { %v1331_v24 = vpop.f32.mrb[10].mxu0  ;;  %v1402_v26 = vpop.f32.mrb[10].mxu1 }
 0x3c3   :  { %v1407_v27 = vadd.f32 %v1331_v24, %v11415_v41  ;;  %v1333_v28 = vpop.f32.mrb[11].mxu0  ;;  %v1404_v30 = vpop.f32.mrb[11].mxu1  ;;  %v1409_v2 = vadd.f32 %v1402_v26, %v11429_v10 }
 0x3c4   :  { %v1408_v32 = vadd.f32 %v1333_v28, %v11418_v42  ;;  %v1410_v55 = vadd.f32 %v1404_v30, %v11423_v56 }
 0x3c5   :  { %v9549_v36 = vmul.f32 -1.442695, %v1407_v27 }
 0x3c6   :  { %v9550_v38 = vmul.f32 -1.442695, %v1408_v32  ;;  %v1501_v39 = vpop.f32.mrb[12].mxu0  ;;  %v1572_v44 = vpop.f32.mrb[12].mxu1  ;;  %v9551_v1 = vmul.f32 -1.442695, %v1410_v55 }
 0x3c7   :  { %10180 = vpow2.f32 %v9549_v36  ;;  %v1581_v45 = vrot.slane %v1501_v39, 4  ;;  %v1503_v46 = vpop.f32.mrb[13].mxu0  ;;  %v1574_v49 = vpop.f32.mrb[13].mxu1  ;;  %v1583_v6 = vrot.slane %v1572_v44, 4 }
 0x3c8   :  { %10182 = vpow2.f32 %v9550_v38  ;;  %v1582_v50 = vrot.slane %v1503_v46, 4  ;;  %v1584_v62 = vrot.slane %v1574_v49, 4 }
 0x3c9   :  { %v1589_v53 = vadd.f32 %v1581_v45, %v11377_v52  ;;  %v1591_v15 = vadd.f32 %v1583_v6, %v11392_v7 }
 0x3ca   :  { %v1590_v57 = vadd.f32 %v1582_v50, %v11380_v54  ;;  %v1592_v4 = vadd.f32 %v1584_v62, %v11389_v3  ;;  %v1613_v50 = vrot.slane %v11438_v11, 6 }
 0x3cb   :  { %v9554_v58 = vmul.f32 -1.442695, %v1589_v53 }
 0x3cc   :  { %v9555_v61 = vmul.f32 -1.442695, %v1590_v57  ;;  %v9556_v31 = vmul.f32 -1.442695, %v1592_v4 }
 0x3cd   :  { %10184 = vpow2.f32 %v9554_v58 }
 0x3ce   :  { %10186 = vpow2.f32 %v9555_v61 }
 0x3cf   :  { %10188 = vpow2.f32 %v9551_v1 }
 0x3d0   :  { %10190 = vtanh.f32 %v1409_v2 }
 0x3d1   :  { %v10181_v5 = vpop.eup %10180 }
 0x3d2   :  { %v10183_v12 = vpop.eup %10182  ;;  %v1414_v13 = vadd.f32 1.0, %v10181_v5 }
 0x3d3   :  { %v1420_v14 = vadd.f32 1.0, %v10183_v12 }
 0x3d4   :  { %10192 = vrcp.f32 %v1414_v13 }
 0x3d5   :  { %10194 = vrcp.f32 %v1420_v14 }
 0x3d6   :  { %10196 = vpow2.f32 %v9556_v31 }
 0x3d7   :  { %v10185_v16 = vpop.eup %10184  ;;  %10198 = vtanh.f32 %v1591_v15 }
 0x3d8   :  { %v10187_v23 = vpop.eup %10186  ;;  %v1596_v24 = vadd.f32 1.0, %v10185_v16 }
 0x3d9   :  { %v1602_v26 = vadd.f32 1.0, %v10187_v23  ;;  %v10189_v27 = vpop.eup %10188 }
 0x3da   :  { %10200 = vrcp.f32 %v1596_v24  ;;  %v10191_v28 = vpop.eup %10190  ;;  %v1427_v38 = vadd.f32 1.0, %v10189_v27 }
 0x3db   :  { %10202 = vrcp.f32 %v1602_v26 }
 0x3dc   :  { %10204 = vrcp.f32 %v1427_v38 }
 0x3de   :  { %v10193_v30 = vpop.eup %10192 }
 0x3df   :  { %v10195_v32 = vpop.eup %10194  ;;  %v1431_v36 = vmul.f32 %v10193_v30, %v10191_v28 }
 0x3e0   :  { %v1430_v39 = vmul.f32 %v10195_v32, %v11434_v59  ;;  %v10197_v44 = vpop.eup %10196 }
 0x3e1   :  { %v10199_v46 = vpop.eup %10198  ;;  %v1609_v57 = vadd.f32 1.0, %v10197_v44 }
 0x3e2   :  { %v11474_v45 = vadd.f32 %v1431_v36, %v1430_v39 }
 0x3e4   :  { %v10201_v49 = vpop.eup %10200  ;;  %10206 = vtanh.f32 %v11474_v45 }
 0x3e5   :  { %v10203_v53 = vpop.eup %10202  ;;  %v1616_v55 = vmul.f32 %v10201_v49, %v10199_v46  ;;  %10208 = vrcp.f32 %v1609_v57 }
 0x3e6   :  { %v1615_v58 = vmul.f32 %v10203_v53, %v1613_v50  ;;  %v10205_v59 = vpop.eup %10204 }
 0x3e8   :  { %v11478_v61 = vadd.f32 %v1616_v55, %v1615_v58 }
 0x3ea   :  { %10210 = vtanh.f32 %v11478_v61 }
 0x3ee   :  { %v10207_v62 = vpop.eup %10206 }
 0x3ef   :  { %v1434_v1 = vmul.f32 %v10207_v62, %v10205_v59  ;;  %v10209_v11 = vpop.eup %10208 }
 0x3f1   :  { %9557 = vmatmul.mubr.msk.f32.vlgmr.msra.gmra.mrb[14].mxu0 %vm613_vm3, %v1434_v1  ;;  %9558 = vmatmul.mubr.msk.f32.vlgmr.msra.gmra.mrb[14].mxu1 %vm613_vm3, %v1434_v1 }
 0x3f2   :  { %9870 = vmatpush1.bf16.msra.mxu0 %v11345_v29  ;;  %9874 = vmatpush1.bf16.msra.mxu1 %v11350_v34 }
 0x3f3   :  { %1833 = vmatprep.mubr.f32.mxu0 %v11000_v0  ;;  %1904 = vmatprep.mubr.f32.mxu1 %v11000_v0 }
 0x3f4   :  { %v10211_v2 = vpop.eup %10210  ;;  %9876 = vmatprep.subr.bf16.mxu0 %v11283_v8  ;;  %9880 = vmatprep.subr.bf16.mxu1 %v11312_v17 }
 0x3f5   :  { %v1619_v4 = vmul.f32 %v10211_v2, %v10209_v11 }
 0x3f7   :  { %v1766_v5 = vrot.slane %v1619_v4, 4 }
 0x3f9   :  { %9559 = vmatmul.mubr.msk.f32.vlgmr.msra.gmra.mrb[14].mxu0 %vm427_vm2, %v1766_v5  ;;  %9560 = vmatmul.mubr.msk.f32.vlgmr.msra.gmra.mrb[14].mxu1 %vm427_vm2, %v1766_v5 }
 0x3fa   :  { %9878 = vmatpush1.bf16.msra.mxu0 %v11285_v9  ;;  %9882 = vmatpush1.bf16.msra.mxu1 %v11315_v18 }
 0x3fb   :  { %2003 = vmatprep.mubr.f32.mxu0 %v11000_v0  ;;  %2074 = vmatprep.mubr.f32.mxu1 %v11000_v0 }
 0x3fc   :  { %2127 = vmatprep.subr.mxu0 %v11329_v19  ;;  %2198 = vmatprep.subr.mxu1 %v11333_v21 }
 0x3fd   :  { %9564 = vmatmul.mubr.msk.f32.vlgmr.msra.gmra.mrb[16].mxu0 %vm427_vm2, %v1766_v5  ;;  %9565 = vmatmul.mubr.msk.f32.vlgmr.msra.gmra.mrb[16].mxu1 %vm427_vm2, %v1766_v5 }
 0x3fe   :  { %2128 = vmatpush1.msra.mxu0 %v11331_v20  ;;  %2191 = vmatprep.mubr.f32.mxu0 %v11000_v0 }
 0x3ff   :  { %2199 = vmatpush1.msra.mxu1 %v11337_v22  ;;  %2262 = vmatprep.mubr.f32.mxu1 %v11000_v0 }
 0x400   :  { %9884 = vmatprep.subr.bf16.mxu0 %v11341_v25  ;;  %9888 = vmatprep.subr.bf16.mxu1 %v11348_v33 }
 0x4cc   :  { %v1835_v6 = vpop.f32.mrb[14].mxu0  ;;  %v1906_v12 = vpop.f32.mrb[14].mxu1 }
 0x4cd   :  { %v1911_v13 = vadd.f32 %v1835_v6, %v11415_v41  ;;  %v1837_v14 = vpop.f32.mrb[15].mxu0  ;;  %v1908_v31 = vpop.f32.mrb[15].mxu1  ;;  %v1913_v53 = vadd.f32 %v1906_v12, %v11429_v10 }
 0x4ce   :  { %v1912_v15 = vadd.f32 %v1837_v14, %v11418_v42  ;;  %v1914_v38 = vadd.f32 %v1908_v31, %v11423_v56 }
 0x4cf   :  { %v9561_v16 = vmul.f32 -1.442695, %v1911_v13 }
 0x4d0   :  { %v9562_v23 = vmul.f32 -1.442695, %v1912_v15  ;;  %v2005_v24 = vpop.f32.mrb[16].mxu0  ;;  %v2076_v26 = vpop.f32.mrb[16].mxu1  ;;  %v9563_v50 = vmul.f32 -1.442695, %v1914_v38 }
 0x4d1   :  { %10212 = vpow2.f32 %v9561_v16  ;;  %v2085_v27 = vrot.slane %v2005_v24, 2  ;;  %v2007_v28 = vpop.f32.mrb[17].mxu0  ;;  %v2078_v30 = vpop.f32.mrb[17].mxu1  ;;  %v2087_v58 = vrot.slane %v2076_v26, 2  ;;  %v2117_v26 = vrot.slane %v11478_v61, 6 }
 0x4d2   :  { %10214 = vpow2.f32 %v9562_v23  ;;  %v2086_v32 = vrot.slane %v2007_v28, 2  ;;  %v2088_v49 = vrot.slane %v2078_v30, 2 }
 0x4d3   :  { %v2093_v36 = vadd.f32 %v2085_v27, %v11377_v52 }
 0x4d4   :  { %v2094_v39 = vadd.f32 %v2086_v32, %v11380_v54  ;;  %v2096_v55 = vadd.f32 %v2088_v49, %v11389_v3  ;;  %v2095_v54 = vadd.f32 %v2087_v58, %v11392_v7 }
 0x4d5   :  { %v9566_v44 = vmul.f32 -1.442695, %v2093_v36 }
 0x4d6   :  { %v9567_v46 = vmul.f32 -1.442695, %v2094_v39  ;;  %v9568_v1 = vmul.f32 -1.442695, %v2096_v55 }
 0x4d7   :  { %10216 = vpow2.f32 %v9566_v44 }
 0x4d8   :  { %10218 = vpow2.f32 %v9567_v46 }
 0x4d9   :  { %10220 = vpow2.f32 %v9563_v50 }
 0x4da   :  { %10222 = vtanh.f32 %v1913_v53 }
 0x4db   :  { %v10213_v57 = vpop.eup %10212 }
 0x4dc   :  { %v10215_v59 = vpop.eup %10214  ;;  %v1918_v62 = vadd.f32 1.0, %v10213_v57 }
 0x4dd   :  { %v1924_v52 = vadd.f32 1.0, %v10215_v59 }
 0x4de   :  { %10224 = vrcp.f32 %v1918_v62 }
 0x4df   :  { %10226 = vrcp.f32 %v1924_v52 }
 0x4e0   :  { %10228 = vpow2.f32 %v9568_v1 }
 0x4e1   :  { %v10217_v11 = vpop.eup %10216  ;;  %10230 = vtanh.f32 %v2095_v54 }
 0x4e2   :  { %v10219_v2 = vpop.eup %10218  ;;  %v2100_v4 = vadd.f32 1.0, %v10217_v11 }
 0x4e3   :  { %v2106_v5 = vadd.f32 1.0, %v10219_v2  ;;  %v10221_v3 = vpop.eup %10220 }
 0x4e4   :  { %10232 = vrcp.f32 %v2100_v4  ;;  %v10223_v6 = vpop.eup %10222  ;;  %v1931_v31 = vadd.f32 1.0, %v10221_v3 }
 0x4e5   :  { %10234 = vrcp.f32 %v2106_v5 }
 0x4e6   :  { %10236 = vrcp.f32 %v1931_v31 }
 0x4e8   :  { %v10225_v12 = vpop.eup %10224 }
 0x4e9   :  { %v10227_v13 = vpop.eup %10226  ;;  %v1935_v14 = vmul.f32 %v10225_v12, %v10223_v6 }
 0x4ea   :  { %v1934_v15 = vmul.f32 %v10227_v13, %v11474_v45  ;;  %v10229_v16 = vpop.eup %10228 }
 0x4eb   :  { %v10231_v7 = vpop.eup %10230  ;;  %v2113_v30 = vadd.f32 1.0, %v10229_v16 }
 0x4ec   :  { %v11514_v23 = vadd.f32 %v1935_v14, %v1934_v15 }
 0x4ee   :  { %v10233_v24 = vpop.eup %10232  ;;  %10238 = vtanh.f32 %v11514_v23 }
 0x4ef   :  { %v10235_v27 = vpop.eup %10234  ;;  %v2120_v28 = vmul.f32 %v10233_v24, %v10231_v7  ;;  %10240 = vrcp.f32 %v2113_v30 }
 0x4f0   :  { %v2119_v32 = vmul.f32 %v10235_v27, %v2117_v26  ;;  %v10237_v45 = vpop.eup %10236 }
 0x4f2   :  { %v11518_v36 = vadd.f32 %v2120_v28, %v2119_v32 }
 0x4f4   :  { %10242 = vtanh.f32 %v11518_v36 }
 0x4f8   :  { %v10239_v38 = vpop.eup %10238 }
 0x4f9   :  { %v1938_v39 = vmul.f32 %v10239_v38, %v10237_v45  ;;  %v10241_v61 = vpop.eup %10240 }
 0x4fb   :  { %9569 = vmatmul.mubr.msk.f32.vlgmr.msra.gmra.mrb[18].mxu0 %vm613_vm3, %v1938_v39  ;;  %9570 = vmatmul.mubr.msk.f32.vlgmr.msra.gmra.mrb[18].mxu1 %vm613_vm3, %v1938_v39 }
 0x4fc   :  { %9886 = vmatpush1.bf16.msra.mxu0 %v11345_v29  ;;  %9890 = vmatpush1.bf16.msra.mxu1 %v11350_v34 }
 0x4fd   :  { %2337 = vmatprep.mubr.f32.mxu0 %v11000_v0  ;;  %2408 = vmatprep.mubr.f32.mxu1 %v11000_v0 }
 0x4fe   :  { %v10243_v44 = vpop.eup %10242  ;;  %9892 = vmatprep.subr.bf16.mxu0 %v11283_v8  ;;  %9896 = vmatprep.subr.bf16.mxu1 %v11312_v17 }
 0x4ff   :  { %v2123_v46 = vmul.f32 %v10243_v44, %v10241_v61 }
 0x501   :  { %v2270_v49 = vrot.slane %v2123_v46, 6 }
 0x503   :  { %9571 = vmatmul.mubr.msk.f32.vlgmr.msra.gmra.mrb[18].mxu0 %vm427_vm2, %v2270_v49  ;;  %9572 = vmatmul.mubr.msk.f32.vlgmr.msra.gmra.mrb[18].mxu1 %vm427_vm2, %v2270_v49 }
 0x504   :  { %9894 = vmatpush1.bf16.msra.mxu0 %v11285_v9  ;;  %9898 = vmatpush1.bf16.msra.mxu1 %v11315_v18 }
 0x505   :  { %2507 = vmatprep.mubr.f32.mxu0 %v11000_v0  ;;  %2578 = vmatprep.mubr.f32.mxu1 %v11000_v0 }
 0x506   :  { %2619 = vmatprep.subr.mxu0 %v11329_v19  ;;  %2690 = vmatprep.subr.mxu1 %v11333_v21 }
 0x507   :  { %9576 = vmatmul.mubr.msk.f32.vlgmr.msra.gmra.mrb[20].mxu0 %vm427_vm2, %v2270_v49  ;;  %9577 = vmatmul.mubr.msk.f32.vlgmr.msra.gmra.mrb[20].mxu1 %vm427_vm2, %v2270_v49 }
 0x508   :  { %2620 = vmatpush1.msra.mxu0 %v11331_v20  ;;  %2683 = vmatprep.mubr.f32.mxu0 %v11000_v0 }
 0x509   :  { %2691 = vmatpush1.msra.mxu1 %v11337_v22  ;;  %2754 = vmatprep.mubr.f32.mxu1 %v11000_v0 }
 0x50a   :  { %9900 = vmatprep.subr.bf16.mxu0 %v11341_v25  ;;  %9904 = vmatprep.subr.bf16.mxu1 %v11348_v33 }
 0x5d6   :  { %v2339_v50 = vpop.f32.mrb[18].mxu0  ;;  %v2410_v53 = vpop.f32.mrb[18].mxu1 }
 0x5d7   :  { %v2415_v55 = vadd.f32 %v2339_v50, %v11415_v41  ;;  %v2341_v57 = vpop.f32.mrb[19].mxu0  ;;  %v2412_v58 = vpop.f32.mrb[19].mxu1  ;;  %v2417_v31 = vadd.f32 %v2410_v53, %v11429_v10 }
 0x5d8   :  { %v2416_v59 = vadd.f32 %v2341_v57, %v11418_v42  ;;  %v2418_v6 = vadd.f32 %v2412_v58, %v11423_v56 }
 0x5d9   :  { %v9573_v62 = vmul.f32 -1.442695, %v2415_v55 }
 0x5da   :  { %v9574_v52 = vmul.f32 -1.442695, %v2416_v59  ;;  %v2509_v1 = vpop.f32.mrb[20].mxu0  ;;  %v2580_v54 = vpop.f32.mrb[20].mxu1  ;;  %v9575_v13 = vmul.f32 -1.442695, %v2418_v6 }
 0x5db   :  { %10244 = vpow2.f32 %v9573_v62  ;;  %v2585_v11 = vadd.f32 %v2509_v1, %v11373_v48  ;;  %v2511_v2 = vpop.f32.mrb[21].mxu0  ;;  %v2582_v4 = vpop.f32.mrb[21].mxu1  ;;  %v2587_v27 = vadd.f32 %v2580_v54, %v11384_v60  ;;  %v2609_v59 = vrot.slane %v11518_v36, 6 }
 0x5dc   :  { %10246 = vpow2.f32 %v9574_v52  ;;  %v2586_v5 = vadd.f32 %v2511_v2, %v11375_v51  ;;  %v2588_v14 = vadd.f32 %v2582_v4, %v11387_v63 }
 0x5dd   :  { %v9578_v3 = vmul.f32 -1.442695, %v2585_v11 }
 0x5de   :  { %v9579_v12 = vmul.f32 -1.442695, %v2586_v5  ;;  %v9580_v24 = vmul.f32 -1.442695, %v2588_v14 }
 0x5df   :  { %10248 = vpow2.f32 %v9578_v3 }
 0x5e0   :  { %10250 = vpow2.f32 %v9579_v12 }
 0x5e1   :  { %10252 = vpow2.f32 %v9575_v13 }
 0x5e2   :  { %10254 = vtanh.f32 %v2417_v31 }
 0x5e5   :  { %v10245_v15 = vpop.eup %10244 }
 0x5e6   :  { %v10247_v16 = vpop.eup %10246  ;;  %v2422_v7 = vadd.f32 1.0, %v10245_v15 }
 0x5e7   :  { %v2428_v26 = vadd.f32 1.0, %v10247_v16 }
 0x5e8   :  { %10256 = vrcp.f32 %v2422_v7 }
 0x5e9   :  { %v10249_v28 = vpop.eup %10248  ;;  %10258 = vrcp.f32 %v2428_v26 }
 0x5ea   :  { %v10251_v30 = vpop.eup %10250  ;;  %v2592_v32 = vadd.f32 1.0, %v10249_v28  ;;  %10260 = vpow2.f32 %v9580_v24 }
 0x5eb   :  { %10262 = vtanh.f32 %v2587_v27  ;;  %v2598_v45 = vadd.f32 1.0, %v10251_v30  ;;  %v10253_v38 = vpop.eup %10252 }
 0x5ec   :  { %10264 = vrcp.f32 %v2592_v32  ;;  %v10255_v39 = vpop.eup %10254  ;;  %v2435_v49 = vadd.f32 1.0, %v10253_v38 }
 0x5ed   :  { %10266 = vrcp.f32 %v2598_v45 }
 0x5ee   :  { %10268 = vrcp.f32 %v2435_v49 }
 0x5f2   :  { %v10257_v61 = vpop.eup %10256 }
 0x5f3   :  { %v10259_v44 = vpop.eup %10258  ;;  %v2439_v46 = vmul.f32 %v10257_v61, %v10255_v39 }
 0x5f4   :  { %v10261_v50 = vpop.eup %10260  ;;  %v2438_v53 = vmul.f32 %v10259_v44, %v11514_v23 }
 0x5f5   :  { %v10263_v55 = vpop.eup %10262  ;;  %v2605_v1 = vadd.f32 1.0, %v10261_v50 }
 0x5f6   :  { %v10265_v57 = vpop.eup %10264  ;;  %v11554_v58 = vadd.f32 %v2439_v46, %v2438_v53 }
 0x5f7   :  { %v10267_v62 = vpop.eup %10266  ;;  %v2612_v52 = vmul.f32 %v10265_v57, %v10263_v55 }
 0x5f8   :  { %10270 = vtanh.f32 %v11554_v58  ;;  %v2611_v54 = vmul.f32 %v10267_v62, %v2609_v59  ;;  %v10269_v2 = vpop.eup %10268 }
 0x5f9   :  { %10272 = vrcp.f32 %v2605_v1 }
 0x5fa   :  { %v11558_v11 = vadd.f32 %v2612_v52, %v2611_v54 }
 0x5fc   :  { %10274 = vtanh.f32 %v11558_v11 }
 0x602   :  { %v10271_v23 = vpop.eup %10270 }
 0x603   :  { %v2442_v4 = vmul.f32 %v10271_v23, %v10269_v2  ;;  %v10273_v5 = vpop.eup %10272 }
 0x605   :  { %9581 = vmatmul.mubr.msk.f32.vlgmr.msra.gmra.mrb[22].mxu0 %vm613_vm3, %v2442_v4  ;;  %9582 = vmatmul.mubr.msk.f32.vlgmr.msra.gmra.mrb[22].mxu1 %vm613_vm3, %v2442_v4 }
 0x606   :  { %v10275_v36 = vpop.eup %10274  ;;  %9902 = vmatpush1.bf16.msra.mxu0 %v11345_v29  ;;  %9906 = vmatpush1.bf16.msra.mxu1 %v11350_v34 }
 0x607   :  { %2828 = vmatprep.mubr.f32.mxu0 %v11000_v0  ;;  %2899 = vmatprep.mubr.f32.mxu1 %v11000_v0  ;;  %v2615_v3 = vmul.f32 %v10275_v36, %v10273_v5 }
 0x608   :  { %9908 = vmatprep.subr.bf16.mxu0 %v11283_v8  ;;  %9912 = vmatprep.subr.bf16.mxu1 %v11312_v17 }
 0x60d   :  { %9583 = vmatmul.mubr.msk.f32.vlgmr.msra.gmra.mrb[22].mxu0 %vm427_vm2, %v2615_v3  ;;  %9584 = vmatmul.mubr.msk.f32.vlgmr.msra.gmra.mrb[22].mxu1 %vm427_vm2, %v2615_v3 }
 0x60e   :  { %9910 = vmatpush1.bf16.msra.mxu0 %v11285_v9  ;;  %9914 = vmatpush1.bf16.msra.mxu1 %v11315_v18 }
 0x60f   :  { %2998 = vmatprep.mubr.f32.mxu0 %v11000_v0  ;;  %3069 = vmatprep.mubr.f32.mxu1 %v11000_v0 }
 0x610   :  { %3122 = vmatprep.subr.mxu0 %v11329_v19  ;;  %3193 = vmatprep.subr.mxu1 %v11333_v21 }
 0x611   :  { %9588 = vmatmul.mubr.msk.f32.vlgmr.msra.gmra.mrb[24].mxu0 %vm427_vm2, %v2615_v3  ;;  %9589 = vmatmul.mubr.msk.f32.vlgmr.msra.gmra.mrb[24].mxu1 %vm427_vm2, %v2615_v3 }
 0x612   :  { %3123 = vmatpush1.msra.mxu0 %v11331_v20  ;;  %3186 = vmatprep.mubr.f32.mxu0 %v11000_v0 }
 0x613   :  { %3194 = vmatpush1.msra.mxu1 %v11337_v22  ;;  %3257 = vmatprep.mubr.f32.mxu1 %v11000_v0 }
 0x614   :  { %9916 = vmatprep.subr.bf16.mxu0 %v11341_v25  ;;  %9920 = vmatprep.subr.bf16.mxu1 %v11348_v33 }
 0x6e0   :  { %v2830_v6 = vpop.f32.mrb[22].mxu0  ;;  %v2901_v19 = vpop.f32.mrb[22].mxu1 }
 0x6e1   :  { %v2906_v21 = vadd.f32 %v2830_v6, %v11415_v41  ;;  %v2832_v12 = vpop.f32.mrb[23].mxu0  ;;  %v2903_v13 = vpop.f32.mrb[23].mxu1  ;;  %v2908_v61 = vadd.f32 %v2901_v19, %v11429_v10 }
 0x6e2   :  { %v2907_v14 = vadd.f32 %v2832_v12, %v11418_v42  ;;  %v2909_v28 = vadd.f32 %v2903_v13, %v11423_v56 }
 0x6e3   :  { %v9585_v31 = vmul.f32 -1.442695, %v2906_v21 }
 0x6e4   :  { %v9586_v20 = vmul.f32 -1.442695, %v2907_v14  ;;  %v3000_v15 = vpop.f32.mrb[24].mxu0  ;;  %v3071_v16 = vpop.f32.mrb[24].mxu1  ;;  %v9587_v39 = vmul.f32 -1.442695, %v2909_v28 }
 0x6e5   :  { %10276 = vpow2.f32 %v9585_v31  ;;  %v3080_v22 = vrot.slane %v3000_v15, 6  ;;  %v3002_v7 = vpop.f32.mrb[25].mxu0  ;;  %v3073_v24 = vpop.f32.mrb[25].mxu1  ;;  %v3082_v49 = vrot.slane %v3071_v16, 6  ;;  %v3112_v14 = vrot.slane %v11558_v11, 6 }
 0x6e6   :  { %10278 = vpow2.f32 %v9586_v20  ;;  %v3081_v26 = vrot.slane %v3002_v7, 6  ;;  %v3083_v38 = vrot.slane %v3073_v24, 6 }
 0x6e7   :  { %v3088_v27 = vadd.f32 %v3080_v22, %v11373_v48  ;;  %v3090_v59 = vadd.f32 %v3082_v49, %v11384_v60 }
 0x6e8   :  { %v3089_v30 = vadd.f32 %v3081_v26, %v11375_v51  ;;  %v3091_v44 = vadd.f32 %v3083_v38, %v11387_v63  ;;  %v11627_v38 = vld [vmem:[#allocation5 + $0x10] sm:$0xff] }
 0x6e9   :  { %v9590_v32 = vmul.f32 -1.442695, %v3088_v27 }
 0x6ea   :  { %v9591_v45 = vmul.f32 -1.442695, %v3089_v30  ;;  %v9592_v57 = vmul.f32 -1.442695, %v3091_v44  ;;  %v11615_v30 = vld [vmem:[#allocation5 + $0x8] sm:$0xff] }
 0x6eb   :  { %10280 = vpow2.f32 %v9590_v32  ;;  %v11618_v32 = vld [vmem:[#allocation5 + $0x18] sm:$0xff] }
 0x6ec   :  { %10282 = vpow2.f32 %v9591_v45  ;;  %v11623_v45 = vld [vmem:[#allocation5] sm:$0xff] }
 0x6ed   :  { %10284 = vpow2.f32 %v9587_v39 }
 0x6ee   :  { %10286 = vtanh.f32 %v2908_v61 }
 0x6ef   :  { %v10277_v46 = vpop.eup %10276 }
 0x6f0   :  { %v10279_v50 = vpop.eup %10278  ;;  %v2913_v53 = vadd.f32 1.0, %v10277_v46 }
 0x6f1   :  { %v2919_v55 = vadd.f32 1.0, %v10279_v50 }
 0x6f2   :  { %10288 = vrcp.f32 %v2913_v53 }
 0x6f3   :  { %10290 = vrcp.f32 %v2919_v55 }
 0x6f4   :  { %10292 = vpow2.f32 %v9592_v57 }
 0x6f5   :  { %v10281_v62 = vpop.eup %10280  ;;  %10294 = vtanh.f32 %v3090_v59 }
 0x6f6   :  { %v10283_v52 = vpop.eup %10282  ;;  %v3095_v1 = vadd.f32 1.0, %v10281_v62 }
 0x6f7   :  { %v3101_v54 = vadd.f32 1.0, %v10283_v52  ;;  %v10285_v2 = vpop.eup %10284 }
 0x6f8   :  { %10296 = vrcp.f32 %v3095_v1  ;;  %v10287_v23 = vpop.eup %10286  ;;  %v2926_v3 = vadd.f32 1.0, %v10285_v2 }
 0x6f9   :  { %10298 = vrcp.f32 %v3101_v54 }
 0x6fa   :  { %10300 = vrcp.f32 %v2926_v3 }
 0x6fc   :  { %v10289_v4 = vpop.eup %10288 }
 0x6fd   :  { %v10291_v5 = vpop.eup %10290  ;;  %v2930_v36 = vmul.f32 %v10289_v4, %v10287_v23 }
 0x6fe   :  { %v2929_v6 = vmul.f32 %v10291_v5, %v11554_v58  ;;  %v10293_v19 = vpop.eup %10292 }
 0x6ff   :  { %v10295_v12 = vpop.eup %10294  ;;  %v3108_v15 = vadd.f32 1.0, %v10293_v19 }
 0x700   :  { %v11594_v21 = vadd.f32 %v2930_v36, %v2929_v6 }
 0x702   :  { %v10297_v13 = vpop.eup %10296  ;;  %10302 = vtanh.f32 %v11594_v21 }
 0x703   :  { %v10299_v31 = vpop.eup %10298  ;;  %v3115_v20 = vmul.f32 %v10297_v13, %v10295_v12  ;;  %10304 = vrcp.f32 %v3108_v15 }
 0x704   :  { %v3114_v16 = vmul.f32 %v10299_v31, %v3112_v14  ;;  %v10301_v58 = vpop.eup %10300 }
 0x706   :  { %v11598_v22 = vadd.f32 %v3115_v20, %v3114_v16 }
 0x708   :  { %10306 = vtanh.f32 %v11598_v22 }
 0x70c   :  { %v10303_v7 = vpop.eup %10302 }
 0x70d   :  { %v2933_v24 = vmul.f32 %v10303_v7, %v10301_v58  ;;  %v10305_v11 = vpop.eup %10304 }
 0x70f   :  { %9593 = vmatmul.mubr.msk.f32.vlgmr.msra.gmra.mrb[26].mxu0 %vm613_vm3, %v2933_v24  ;;  %9594 = vmatmul.mubr.msk.f32.vlgmr.msra.gmra.mrb[26].mxu1 %vm613_vm3, %v2933_v24 }
 0x710   :  { %9918 = vmatpush1.bf16.msra.mxu0 %v11345_v29  ;;  %9922 = vmatpush1.bf16.msra.mxu1 %v11350_v34 }
 0x711   :  { %3332 = vmatprep.mubr.f32.mxu0 %v11000_v0  ;;  %3403 = vmatprep.mubr.f32.mxu1 %v11000_v0 }
 0x712   :  { %v10307_v26 = vpop.eup %10306  ;;  %9924 = vmatprep.subr.bf16.mxu0 %v11283_v8  ;;  %9928 = vmatprep.subr.bf16.mxu1 %v11312_v17 }
 0x713   :  { %v3118_v27 = vmul.f32 %v10307_v26, %v10305_v11 }
 0x715   :  { %v3265_v28 = vrot.slane %v3118_v27, 2 }
 0x717   :  { %9595 = vmatmul.mubr.msk.f32.vlgmr.msra.gmra.mrb[26].mxu0 %vm427_vm2, %v3265_v28  ;;  %9596 = vmatmul.mubr.msk.f32.vlgmr.msra.gmra.mrb[26].mxu1 %vm427_vm2, %v3265_v28 }
 0x718   :  { %9926 = vmatpush1.bf16.msra.mxu0 %v11285_v9  ;;  %9930 = vmatpush1.bf16.msra.mxu1 %v11315_v18 }
 0x719   :  { %3502 = vmatprep.mubr.f32.mxu0 %v11000_v0  ;;  %3573 = vmatprep.mubr.f32.mxu1 %v11000_v0 }
 0x71a   :  { %3626 = vmatprep.subr.mxu0 %v11615_v30  ;;  %3697 = vmatprep.subr.mxu1 %v11618_v32 }
 0x71b   :  { %9600 = vmatmul.mubr.msk.f32.vlgmr.msra.gmra.mrb[28].mxu0 %vm427_vm2, %v3265_v28  ;;  %9601 = vmatmul.mubr.msk.f32.vlgmr.msra.gmra.mrb[28].mxu1 %vm427_vm2, %v3265_v28 }
 0x71c   :  { %3627 = vmatpush1.msra.mxu0 %v11623_v45  ;;  %3690 = vmatprep.mubr.f32.mxu0 %v11000_v0 }
 0x71d   :  { %3698 = vmatpush1.msra.mxu1 %v11627_v38  ;;  %3761 = vmatprep.mubr.f32.mxu1 %v11000_v0 }
 0x71e   :  { %9932 = vmatprep.subr.bf16.mxu0 %v11341_v25  ;;  %9936 = vmatprep.subr.bf16.mxu1 %v11348_v33 }
 0x7ea   :  { %v3334_v39 = vpop.f32.mrb[26].mxu0  ;;  %v3405_v61 = vpop.f32.mrb[26].mxu1 }
 0x7eb   :  { %v3410_v44 = vadd.f32 %v3334_v39, %v11415_v41  ;;  %v3336_v46 = vpop.f32.mrb[27].mxu0  ;;  %v3407_v49 = vpop.f32.mrb[27].mxu1  ;;  %v3412_v19 = vadd.f32 %v3405_v61, %v11429_v10 }
 0x7ec   :  { %v3411_v50 = vadd.f32 %v3336_v46, %v11418_v42  ;;  %v3413_v23 = vadd.f32 %v3407_v49, %v11423_v56 }
 0x7ed   :  { %v9597_v53 = vmul.f32 -1.442695, %v3410_v44 }
 0x7ee   :  { %v9598_v55 = vmul.f32 -1.442695, %v3411_v50  ;;  %v3504_v57 = vpop.f32.mrb[28].mxu0  ;;  %v3575_v59 = vpop.f32.mrb[28].mxu1  ;;  %v9599_v6 = vmul.f32 -1.442695, %v3413_v23 }
 0x7ef   :  { %10308 = vpow2.f32 %v9597_v53  ;;  %v3584_v62 = vrot.slane %v3504_v57, 4  ;;  %v3506_v52 = vpop.f32.mrb[29].mxu0  ;;  %v3577_v1 = vpop.f32.mrb[29].mxu1  ;;  %v3586_v14 = vrot.slane %v3575_v59, 4  ;;  %v3616_v59 = vrot.slane %v11598_v22, 6 }
 0x7f0   :  { %10310 = vpow2.f32 %v9598_v55  ;;  %v3585_v54 = vrot.slane %v3506_v52, 4  ;;  %v3587_v3 = vrot.slane %v3577_v1, 4 }
 0x7f1   :  { %v3592_v2 = vadd.f32 %v3584_v62, %v11373_v48  ;;  %v3594_v58 = vadd.f32 %v3586_v14, %v11384_v60 }
 0x7f2   :  { %v3593_v4 = vadd.f32 %v3585_v54, %v11375_v51  ;;  %v3595_v12 = vadd.f32 %v3587_v3, %v11387_v63 }
 0x7f3   :  { %v9602_v5 = vmul.f32 -1.442695, %v3592_v2 }
 0x7f4   :  { %v9603_v36 = vmul.f32 -1.442695, %v3593_v4  ;;  %v9604_v16 = vmul.f32 -1.442695, %v3595_v12 }
 0x7f5   :  { %10312 = vpow2.f32 %v9602_v5 }
 0x7f6   :  { %10314 = vpow2.f32 %v9603_v36 }
 0x7f7   :  { %10316 = vpow2.f32 %v9599_v6 }
 0x7f8   :  { %10318 = vtanh.f32 %v3412_v19 }
 0x7f9   :  { %v10309_v13 = vpop.eup %10308 }
 0x7fa   :  { %v10311_v31 = vpop.eup %10310  ;;  %v3417_v20 = vadd.f32 1.0, %v10309_v13 }
 0x7fb   :  { %v3423_v15 = vadd.f32 1.0, %v10311_v31 }
 0x7fc   :  { %10320 = vrcp.f32 %v3417_v20 }
 0x7fd   :  { %10322 = vrcp.f32 %v3423_v15 }
 0x7fe   :  { %10324 = vpow2.f32 %v9604_v16 }
 0x7ff   :  { %v10313_v7 = vpop.eup %10312  ;;  %10326 = vtanh.f32 %v3594_v58 }
 0x800   :  { %v10315_v24 = vpop.eup %10314  ;;  %v3599_v11 = vadd.f32 1.0, %v10313_v7 }
 0x801   :  { %v3605_v26 = vadd.f32 1.0, %v10315_v24  ;;  %v10317_v27 = vpop.eup %10316 }
 0x802   :  { %10328 = vrcp.f32 %v3599_v11  ;;  %v10319_v28 = vpop.eup %10318  ;;  %v3430_v46 = vadd.f32 1.0, %v10317_v27 }
 0x803   :  { %10330 = vrcp.f32 %v3605_v26 }
 0x804   :  { %10332 = vrcp.f32 %v3430_v46 }
 0x806   :  { %v10321_v39 = vpop.eup %10320 }
 0x807   :  { %v10323_v61 = vpop.eup %10322  ;;  %v3434_v44 = vmul.f32 %v10321_v39, %v10319_v28 }
 0x808   :  { %v3433_v49 = vmul.f32 %v10323_v61, %v11594_v21  ;;  %v10325_v50 = vpop.eup %10324 }
 0x809   :  { %v10327_v55 = vpop.eup %10326  ;;  %v3612_v1 = vadd.f32 1.0, %v10325_v50 }
 0x80a   :  { %v11642_v53 = vadd.f32 %v3434_v44, %v3433_v49 }
 0x80c   :  { %v10329_v57 = vpop.eup %10328  ;;  %10334 = vtanh.f32 %v11642_v53 }
 0x80d   :  { %v10331_v62 = vpop.eup %10330  ;;  %v3619_v52 = vmul.f32 %v10329_v57, %v10327_v55  ;;  %10336 = vrcp.f32 %v3612_v1 }
 0x80e   :  { %v3618_v54 = vmul.f32 %v10331_v62, %v3616_v59  ;;  %v10333_v21 = vpop.eup %10332 }
 0x810   :  { %v11646_v2 = vadd.f32 %v3619_v52, %v3618_v54 }
 0x812   :  { %10338 = vtanh.f32 %v11646_v2 }
 0x816   :  { %v10335_v23 = vpop.eup %10334 }
 0x817   :  { %v3437_v4 = vmul.f32 %v10335_v23, %v10333_v21  ;;  %v10337_v22 = vpop.eup %10336 }
 0x819   :  { %9605 = vmatmul.mubr.msk.f32.vlgmr.msra.gmra.mrb[30].mxu0 %vm613_vm3, %v3437_v4  ;;  %9606 = vmatmul.mubr.msk.f32.vlgmr.msra.gmra.mrb[30].mxu1 %vm613_vm3, %v3437_v4  ;;  %v4120_v4 = vrot.slane %v11646_v2, 6 }
 0x81a   :  { %9934 = vmatpush1.bf16.msra.mxu0 %v11345_v29  ;;  %9938 = vmatpush1.bf16.msra.mxu1 %v11350_v34 }
 0x81b   :  { %3836 = vmatprep.mubr.f32.mxu0 %v11000_v0  ;;  %3907 = vmatprep.mubr.f32.mxu1 %v11000_v0 }
 0x81c   :  { %v10339_v5 = vpop.eup %10338  ;;  %9940 = vmatprep.subr.bf16.mxu0 %v11283_v8  ;;  %9944 = vmatprep.subr.bf16.mxu1 %v11312_v17 }
 0x81d   :  { %v3622_v36 = vmul.f32 %v10339_v5, %v10337_v22 }
 0x81f   :  { %v3769_v3 = vrot.slane %v3622_v36, 4 }
 0x821   :  { %9607 = vmatmul.mubr.msk.f32.vlgmr.msra.gmra.mrb[30].mxu0 %vm427_vm2, %v3769_v3  ;;  %9608 = vmatmul.mubr.msk.f32.vlgmr.msra.gmra.mrb[30].mxu1 %vm427_vm2, %v3769_v3 }
 0x822   :  { %9942 = vmatpush1.bf16.msra.mxu0 %v11285_v9  ;;  %9946 = vmatpush1.bf16.msra.mxu1 %v11315_v18 }
 0x823   :  { %4006 = vmatprep.mubr.f32.mxu0 %v11000_v0  ;;  %4077 = vmatprep.mubr.f32.mxu1 %v11000_v0 }
 0x824   :  { %4130 = vmatprep.subr.mxu0 %v11615_v30  ;;  %4201 = vmatprep.subr.mxu1 %v11618_v32 }
 0x825   :  { %9612 = vmatmul.mubr.msk.f32.vlgmr.msra.gmra.mrb[32].mxu0 %vm427_vm2, %v3769_v3  ;;  %9613 = vmatmul.mubr.msk.f32.vlgmr.msra.gmra.mrb[32].mxu1 %vm427_vm2, %v3769_v3 }
 0x826   :  { %4131 = vmatpush1.msra.mxu0 %v11623_v45  ;;  %4194 = vmatprep.mubr.f32.mxu0 %v11000_v0 }
 0x827   :  { %4202 = vmatpush1.msra.mxu1 %v11627_v38  ;;  %4265 = vmatprep.mubr.f32.mxu1 %v11000_v0 }
 0x828   :  { %9948 = vmatprep.subr.bf16.mxu0 %v11341_v25  ;;  %9952 = vmatprep.subr.bf16.mxu1 %v11348_v33 }
 0x8f4   :  { %v3838_v8 = vpop.f32.mrb[30].mxu0  ;;  %v3909_v9 = vpop.f32.mrb[30].mxu1 }
 0x8f5   :  { %v3914_v17 = vadd.f32 %v3838_v8, %v11415_v41  ;;  %v3840_v18 = vpop.f32.mrb[31].mxu0  ;;  %v3911_v30 = vpop.f32.mrb[31].mxu1  ;;  %v3916_v24 = vadd.f32 %v3909_v9, %v11429_v10 }
 0x8f6   :  { %v3915_v32 = vadd.f32 %v3840_v18, %v11418_v42  ;;  %v3917_v31 = vadd.f32 %v3911_v30, %v11423_v56 }
 0x8f7   :  { %v9609_v6 = vmul.f32 -1.442695, %v3914_v17 }
 0x8f8   :  { %v9610_v45 = vmul.f32 -1.442695, %v3915_v32  ;;  %v4008_v19 = vpop.f32.mrb[32].mxu0  ;;  %v4079_v12 = vpop.f32.mrb[32].mxu1  ;;  %v9611_v7 = vmul.f32 -1.442695, %v3917_v31 }
 0x8f9   :  { %10340 = vpow2.f32 %v9609_v6  ;;  %v4088_v38 = vrot.slane %v4008_v19, 2  ;;  %v4010_v13 = vpop.f32.mrb[33].mxu0  ;;  %v4081_v14 = vpop.f32.mrb[33].mxu1  ;;  %v4090_v27 = vrot.slane %v4079_v12, 2 }
 0x8fa   :  { %10342 = vpow2.f32 %v9610_v45  ;;  %v4089_v25 = vrot.slane %v4010_v13, 2  ;;  %v4091_v58 = vrot.slane %v4081_v14, 2 }
 0x8fb   :  { %v4096_v33 = vadd.f32 %v4088_v38, %v11373_v48 }
 0x8fc   :  { %v4097_v20 = vadd.f32 %v4089_v25, %v11375_v51  ;;  %v4099_v11 = vadd.f32 %v4091_v58, %v11387_v63  ;;  %v4098_v51 = vadd.f32 %v4090_v27, %v11384_v60 }
 0x8fd   :  { %v9614_v15 = vmul.f32 -1.442695, %v4096_v33 }
 0x8fe   :  { %v9615_v16 = vmul.f32 -1.442695, %v4097_v20  ;;  %v9616_v61 = vmul.f32 -1.442695, %v4099_v11 }
 0x8ff   :  { %10344 = vpow2.f32 %v9614_v15 }
 0x900   :  { %10346 = vpow2.f32 %v9615_v16 }
 0x901   :  { %10348 = vpow2.f32 %v9611_v7 }
 0x902   :  { %10350 = vtanh.f32 %v3916_v24 }
 0x903   :  { %v10341_v26 = vpop.eup %10340 }
 0x904   :  { %v10343_v28 = vpop.eup %10342  ;;  %v3921_v39 = vadd.f32 1.0, %v10341_v26 }
 0x905   :  { %v3927_v48 = vadd.f32 1.0, %v10343_v28 }
 0x906   :  { %10352 = vrcp.f32 %v3921_v39 }
 0x907   :  { %10354 = vrcp.f32 %v3927_v48  ;;  %v9624_v48 = vld [vmem:[%s12274_s8] ss:$0 sm:$0xff]  ;;  %s11002_s8 = smov 124  }
 0x908   :  { %10356 = vpow2.f32 %v9616_v61 }
 0x909   :  { %v10345_v44 = vpop.eup %10344  ;;  %10358 = vtanh.f32 %v4098_v51 }
 0x90a   :  { %v10347_v46 = vpop.eup %10346  ;;  %v4103_v49 = vadd.f32 1.0, %v10345_v44 }
 0x90b   :  { %v4109_v50 = vadd.f32 1.0, %v10347_v46  ;;  %v10349_v63 = vpop.eup %10348 }
 0x90c   :  { %10360 = vrcp.f32 %v4103_v49  ;;  %v10351_v55 = vpop.eup %10350  ;;  %v3934_v52 = vadd.f32 1.0, %v10349_v63  ;;  %v4545_v63 = vld [vmem:[#allocation10 + $0x8] sm:$0xff] }
 0x90d   :  { %10362 = vrcp.f32 %v4109_v50  ;;  %v4544_v50 = vld [vmem:[#allocation10] sm:$0xff] }
 0x90e   :  { %10364 = vrcp.f32 %v3934_v52 }
 0x910   :  { %v10353_v57 = vpop.eup %10352 }
 0x911   :  { %v10355_v59 = vpop.eup %10354  ;;  %v3938_v62 = vmul.f32 %v10353_v57, %v10351_v55  ;;  %v4570_v55 = vcombine.high %v4544_v50, %v4544_v50  ;;  %v4571_v57 = vcombine.high %v4545_v63, %v4545_v63 }
 0x912   :  { %v3937_v1 = vmul.f32 %v10355_v59, %v11642_v53  ;;  %v10357_v54 = vpop.eup %10356  ;;  %v11712_v59 = vld [vmem:[#allocation11 + $0x8] sm:$0xff] }
 0x913   :  { %v10359_v23 = vpop.eup %10358  ;;  %v4116_v36 = vadd.f32 1.0, %v10357_v54 }
 0x914   :  { %v3939_v21 = vadd.f32 %v3938_v62, %v3937_v1  ;;  %v11715_v62 = vld [vmem:[#allocation11 + $0x18] sm:$0xff]  ;;  %v4534_v1 = vld [vmem:[#allocation8] sm:$0x3] }
 0x916   :  { %v10361_v60 = vpop.eup %10360  ;;  %10366 = vtanh.f32 %v3939_v21 }
 0x917   :  { %v10363_v22 = vpop.eup %10362  ;;  %v4123_v5 = vmul.f32 %v10361_v60, %v10359_v23  ;;  %10368 = vrcp.f32 %v4116_v36  ;;  %v11718_v60 = vld [vmem:[#allocation11] sm:$0xff]  ;;  %v4939_v36 = vld [vmem:[#allocation16 + $0x28] sm:$0xff] }
 0x918   :  { %v4122_v3 = vmul.f32 %v10363_v22, %v4120_v4  ;;  %v10365_v9 = vpop.eup %10364  ;;  %v11720_v22 = vld [vmem:[#allocation11 + $0x10] sm:$0xff] }
 0x91a   :  { %v4124_v8 = vadd.f32 %v4123_v5, %v4122_v3  ;;  %v4935_v5 = vld [vmem:[#allocation16 + $0x8] sm:$0xff]  ;;  %v4937_v3 = vld [vmem:[#allocation16 + $0x18] sm:$0xff] }
 0x91c   :  { %10370 = vtanh.f32 %v4124_v8  ;;  %v11733_v8 = vpack.c.bf16 %v4939_v36, %v4935_v5  ;;  %v5257_v36 = vld [vmem:[#allocation19] sm:$0xff] }
 0x920   :  { %v10367_v17 = vpop.eup %10366 }
 0x921   :  { %v3941_v18 = vmul.f32 %v10367_v17, %v10365_v9  ;;  %v10369_v53 = vpop.eup %10368  ;;  %v4941_v9 = vld [vmem:[#allocation16 + $0x38] sm:$0xff]  ;;  %v4934_v17 = vld [vmem:[#allocation16] sm:$0xff] }
 0x923   :  { %9617 = vmatmul.mubr.msk.f32.vlgmr.msra.gmra.mrb[34].mxu0 %vm613_vm3, %v3941_v18  ;;  %9618 = vmatmul.mubr.msk.f32.vlgmr.msra.gmra.mrb[34].mxu1 %vm613_vm3, %v3941_v18  ;;  %v4938_v18 = vld [vmem:[#allocation16 + $0x20] sm:$0xff] }
 0x924   :  { %9950 = vmatpush1.bf16.msra.mxu0 %v11345_v29  ;;  %9954 = vmatpush1.bf16.msra.mxu1 %v11350_v34  ;;  %v4446_v29 = vld [vmem:[%s12273_s7] sm:$0xff] }
 0x925   :  { %4340 = vmatprep.mubr.f32.mxu0 %v11000_v0  ;;  %4411 = vmatprep.mubr.f32.mxu1 %v11000_v0 }
 0x926   :  { %v10371_v2 = vpop.eup %10370  ;;  %9766 = vmatprep.subr.mxu0 %v11000_v0  ;;  %9626 = vmatprep.subr.msk.mxu1 %vm234_vm0, %v4570_v55 }
 0x927   :  { %v4126_v30 = vmul.f32 %v10371_v2, %v10369_v53  ;;  %v11735_v53 = vpack.c.bf16 %v4941_v9, %v4937_v3  ;;  %v11737_v2 = vpack.c.bf16 %v4938_v18, %v4934_v17  ;;  %v5258_v3 = vld [vmem:[#allocation19 + $0x8] sm:$0xff]  ;;  %v11003_v9 = vmov 0.0|0.0   ;;  %v4725_v18 = vld [vmem:[#allocation17] sm:$0xf] }
 0x928   :  { %v11798_v17 = vpack.c.bf16 %v5258_v3, %v5257_v36 }
 0x929   :  { %v4273_v32 = vrot.slane %v4126_v30, 6  ;;  %v4936_v30 = vld [vmem:[#allocation16 + $0x10] sm:$0xff] }
 0x92b   :  { %9619 = vmatmul.mubr.msk.f32.vlgmr.msra.gmra.mrb[34].mxu0 %vm427_vm2, %v4273_v32  ;;  %9620 = vmatmul.mubr.msk.f32.vlgmr.msra.gmra.mrb[34].mxu1 %vm427_vm2, %v4273_v32  ;;  %v4940_v32 = vld [vmem:[#allocation16 + $0x30] sm:$0xff] }
 0x92c   :  { %4647 = vmatprep.mubr.f32.mxu1 %v11000_v0  ;;  %9767 = vmatpush3.msra.mxu0 %v4446_v29  ;;  %v11739_v29 = vld [vmem:[#allocation14 + $0x8] sm:$0xff] }
 0x92d   :  { %9768 = vmatprep.mubr.msk.f32.mxu0 %vm11001_vm4, %v11000_v0  ;;  %9629 = vmatprep.subr.msk.mxu0 %vm234_vm0, %v4571_v57 }
 0x92e   :  { %9627 = vmatpush1.msk.msra.mxu1 %vm234_vm0, %v4544_v50 }
 0x92f   :  { %4760 = vmatprep.subr.mxu1 %v11712_v59 }
 0x9fe   :  { %v4342_v34 = vpop.f32.mrb[34].mxu0  ;;  %v4413_v6 = vpop.f32.mrb[34].mxu1 }
 0x9ff   :  { %v4418_v45 = vadd.f32 %v4342_v34, %v11415_v41  ;;  %v4344_v19 = vpop.f32.mrb[35].mxu0  ;;  %v4415_v12 = vpop.f32.mrb[35].mxu1  ;;  %v4420_v31 = vadd.f32 %v4413_v6, %v11429_v10  ;;  %v11742_v34 = vpack.c.bf16 %v4940_v32, %v4936_v30  ;;  %v11744_v6 = vld [vmem:[#allocation14 + $0x18] sm:$0xff]  ;;  %v11803_v30 = vrot.slane %v4725_v18, %v11360_v37 }
 0xa00   :  { %v4419_v38 = vadd.f32 %v4344_v19, %v11418_v42  ;;  %v4421_v25 = vadd.f32 %v4415_v12, %v11423_v56  ;;  %v11753_v19 = vld [vmem:[#allocation14 + $0x10] sm:$0xff]  ;;  %v4546_v12 = vld [vmem:[#allocation13] sm:$0xf]  ;;  %v11806_v32 = vrot.slane %v4725_v18, %v11365_v40 }
 0xa01   :  { %v9621_v13 = vmul.f32 -1.442695, %v4418_v45  ;;  %v11750_v45 = vld [vmem:[#allocation14] sm:$0xff] }
 0xa02   :  { %v9622_v14 = vmul.f32 -1.442695, %v4419_v38  ;;  %v9623_v33 = vmul.f32 -1.442695, %v4421_v25  ;;  %v4551_v38 = vrot.slane %v4546_v12, %v11360_v37  ;;  %v4555_v25 = vrot.slane %v4546_v12, %v11365_v40 }
 0xa03   :  { %10372 = vpow2.f32 %v9621_v13 }
 0xa04   :  { %10374 = vpow2.f32 %v9622_v14 }
 0xa05   :  { %10376 = vpow2.f32 %v9623_v33 }
 0xa06   :  { %10378 = vtanh.f32 %v4420_v31 }
 0xa0d   :  { %v10373_v20 = vpop.eup %10372 }
 0xa0e   :  { %v10375_v15 = vpop.eup %10374  ;;  %v4425_v16 = vadd.f32 1.0, %v10373_v20 }
 0xa0f   :  { %v4431_v58 = vadd.f32 1.0, %v10375_v15  ;;  %v10377_v41 = vpop.eup %10376 }
 0xa10   :  { %10380 = vrcp.f32 %v4425_v16  ;;  %v10379_v7 = vpop.eup %10378  ;;  %v4438_v26 = vadd.f32 1.0, %v10377_v41 }
 0xa11   :  { %10382 = vrcp.f32 %v4431_v58 }
 0xa12   :  { %10384 = vrcp.f32 %v4438_v26 }
 0xa1a   :  { %v10381_v42 = vpop.eup %10380 }
 0xa1b   :  { %v10383_v24 = vpop.eup %10382  ;;  %v4442_v11 = vmul.f32 %v10381_v42, %v10379_v7 }
 0xa1c   :  { %v4441_v27 = vmul.f32 %v10383_v24, %v3939_v21  ;;  %v10385_v56 = vpop.eup %10384  ;;  %v4563_v24 = vrot.slane %v4546_v12, %v11371_v47 }
 0xa1e   :  { %v4443_v28 = vadd.f32 %v4442_v11, %v4441_v27 }
 0xa20   :  { %10386 = vtanh.f32 %v4443_v28 }
 0xa2a   :  { %v10387_v10 = vpop.eup %10386 }
 0xa2b   :  { %v4445_v39 = vmul.f32 %v10387_v10, %v10385_v56  ;;  %v4559_v56 = vrot.slane %v4546_v12, %v11368_v43 }
 0xa2d   :  { %9769 = vmatmul.mubr.msk.f32.vlgmr.msra.gmra.mrb[36].mxu0 %vm613_vm3, %v4445_v39 }
 0xa2e   :  { %4718 = vmatprep.mubr.f32.mxu0 %v11000_v0  ;;  %9630 = vmatpush1.msk.msra.mxu0 %vm234_vm0, %v4545_v63 }
 0xa2f   :  { %4831 = vmatprep.subr.mxu0 %v11715_v62 }
 0xb00   :  { %v4523_v61 = vpop.f32.mrb[36].mxu0 }
 0xb01   :  { %v4524_v51 = vadd.f32 %v9624_v48, %v4523_v61  ;;  %v9770_v44 = vpop.f32.mrb[37].mxu0 }
 0xb03   :  { %v4535_v46 = vmul.f32 0.5, %v4524_v51  ;;  %4528 = vst.msk [vmem:[#allocation20] sm:$0x3] %vm4527_vm5, %v4524_v51 }
 0xb05   :  { %v4536_v49 = vmul.f32 1.442695, %v4535_v46 }
 0xb07   :  { %10388 = vpow2.f32 %v4536_v49 }
 0xb11   :  { %v10389_v52 = vpop.eup %10388 }
 0xb12   :  { %4539 = vrot.lane.b32.xlu0 %v10389_v52, %s11002_s8 }
 0xb16   :  { %4530 = vrot.lane.b32.xlu0 %v4524_v51, %s11002_s8 }
 0xb84   :  { %v4540_v54 = vpop.permute.xlu0 %4539 }
 0xb85   :  { %v4542_v21 = vmul.f32 %v4540_v54, %v4534_v1 }
 0xb87   :  { %v4543_v23 = vadd.f32 %v4542_v21, %v4524_v51 }
 0xb88   :  { %v4531_v4 = vpop.permute.xlu0 %4530 }
 0xb89   :  { %9628 = vmatmul.mubr.msk.f32.vlgmr.msra.gmra.mrb[36].mxu1 %vm227_vm1, %v4543_v23  ;;  %9631 = vmatmul.mubr.msk.f32.vlgmr.msra.gmra.mrb[38].mxu0 %vm227_vm1, %v4543_v23  ;;  %4533 = vst.msk [vmem:[#allocation21] sm:$0x3] %vm4527_vm5, %v4531_v4 }
 0xb8a   :  { %4761 = vmatpush1.msra.mxu1 %v11718_v60  ;;  %4824 = vmatprep.mubr.f32.mxu1 %v11000_v0 }
 0xb8b   :  { %4832 = vmatpush1.msra.mxu0 %v11720_v22  ;;  %4895 = vmatprep.mubr.f32.mxu0 %v11000_v0 }
 0xb8c   :  { %9956 = vmatprep.subr.bf16.mxu1 %v11733_v8  ;;  %9960 = vmatprep.subr.bf16.mxu0 %v11735_v53 }
 0xb8d   :  { %4825 = vmatmul.mubr.f32.vlgmr.msra.gmra.mrb[38].mxu1 %v11000_v0  ;;  %4896 = vmatmul.mubr.f32.vlgmr.msra.gmra.mrb[40].mxu0 %v11000_v0 }
 0xb8e   :  { %5006 = vmatprep.mubr.f32.mxu1 %v11000_v0  ;;  %5077 = vmatprep.mubr.f32.mxu0 %v11000_v0 }
 0xb8f   :  { %9958 = vmatpush1.bf16.msra.mxu1 %v11737_v2  ;;  %9962 = vmatpush1.bf16.msra.mxu0 %v11742_v34 }
 0xb90   :  { %5087 = vmatprep.subr.mxu1 %v11739_v29  ;;  %5158 = vmatprep.subr.mxu0 %v11744_v6 }
 0xb92   :  { %5007 = vmatmul.mubr.f32.vlgmr.msra.gmra.mrb[40].mxu1 %v11000_v0  ;;  %5078 = vmatmul.mubr.f32.vlgmr.msra.gmra.mrb[42].mxu0 %v11000_v0 }
 0xb93   :  { %5088 = vmatpush1.msra.mxu1 %v11750_v45  ;;  %5151 = vmatprep.mubr.f32.mxu1 %v11000_v0 }
 0xb94   :  { %5159 = vmatpush1.msra.mxu0 %v11753_v19  ;;  %5222 = vmatprep.mubr.f32.mxu0 %v11000_v0 }
 0xb95   :  { %5353 = vmatprep.subr.mxu0 %v11712_v59  ;;  %9963 = vmatprep.subr.bf16.mxu1 %v11003_v9 }
 0xc5c   :  { %v4649_v13 = vpop.f32.mrb[36].mxu1  ;;  %v4720_v14 = vpop.f32.mrb[38].mxu0 }
 0xc5d   :  { %v4651_v33 = vpop.f32.mrb[37].mxu1  ;;  %v4722_v31 = vpop.f32.mrb[39].mxu0  ;;  %v11764_v20 = vadd.f32 %v4649_v13, %v4551_v38  ;;  %v11775_v39 = vadd.f32 %v4720_v14, %v4559_v56 }
 0xc5e   :  { %v11766_v15 = vadd.f32 %v4651_v33, %v4555_v25  ;;  %v11771_v28 = vadd.f32 %v4722_v31, %v4563_v24 }
 0xc60   :  { %v4826_v16 = vpop.f32.mrb[38].mxu1  ;;  %v4897_v58 = vpop.f32.mrb[40].mxu0 }
 0xc61   :  { %v4902_v41 = vadd.f32 %v4826_v16, %v11764_v20  ;;  %v4828_v7 = vpop.f32.mrb[39].mxu1  ;;  %v4899_v42 = vpop.f32.mrb[41].mxu0  ;;  %v4904_v61 = vadd.f32 %v4897_v58, %v11775_v39  ;;  %v11811_v16 = vrot.slane %v4725_v18, %v11371_v47 }
 0xc62   :  { %v4903_v11 = vadd.f32 %v4828_v7, %v11766_v15  ;;  %v4905_v10 = vadd.f32 %v4899_v42, %v11771_v28  ;;  %v11815_v7 = vrot.slane %v4725_v18, %v11368_v43 }
 0xc63   :  { %v9633_v26 = vmul.f32 -1.442695, %v4902_v41 }
 0xc64   :  { %v9634_v27 = vmul.f32 -1.442695, %v4903_v11  ;;  %v9635_v48 = vmul.f32 -1.442695, %v4905_v10 }
 0xc65   :  { %10390 = vpow2.f32 %v9633_v26 }
 0xc66   :  { %10392 = vpow2.f32 %v9634_v27 }
 0xc67   :  { %10394 = vpow2.f32 %v9635_v48 }
 0xc68   :  { %10396 = vtanh.f32 %v4904_v61 }
 0xc6f   :  { %v10391_v51 = vpop.eup %10390 }
 0xc70   :  { %v10393_v44 = vpop.eup %10392  ;;  %v4909_v46 = vadd.f32 1.0, %v10391_v51 }
 0xc71   :  { %v4915_v49 = vadd.f32 1.0, %v10393_v44  ;;  %v10395_v50 = vpop.eup %10394 }
 0xc72   :  { %10398 = vrcp.f32 %v4909_v46  ;;  %v10397_v63 = vpop.eup %10396  ;;  %v4922_v1 = vadd.f32 1.0, %v10395_v50 }
 0xc73   :  { %10400 = vrcp.f32 %v4915_v49 }
 0xc74   :  { %10402 = vrcp.f32 %v4922_v1 }
 0xc7c   :  { %v10399_v55 = vpop.eup %10398 }
 0xc7d   :  { %v10401_v57 = vpop.eup %10400  ;;  %v4926_v52 = vmul.f32 %v10399_v55, %v10397_v63 }
 0xc7e   :  { %v4925_v54 = vmul.f32 0.0, %v10401_v57  ;;  %v10403_v23 = vpop.eup %10402 }
 0xc80   :  { %v11778_v21 = vadd.f32 %v4926_v52, %v4925_v54 }
 0xc82   :  { %10404 = vtanh.f32 %v11778_v21 }
 0xc8c   :  { %v10405_v4 = vpop.eup %10404 }
 0xc8d   :  { %v11781_v5 = vmul.f32 %v10405_v4, %v10403_v23  ;;  %v11843_v23 = vld [vmem:[%s12283_s17] ss:$0 sm:$0xff] }
 0xc8f   :  { %9636 = vmatmul.mubr.msk.f32.vlgmr.msra.gmra.mrb[40].mxu1 %vm613_vm3, %v11781_v5  ;;  %9637 = vmatmul.mubr.msk.f32.vlgmr.msra.gmra.mrb[42].mxu0 %vm613_vm3, %v11781_v5 }
 0xc90   :  { %5354 = vmatpush1.msra.mxu0 %v11718_v60  ;;  %5417 = vmatprep.mubr.f32.mxu0 %v11000_v0 }
 0xc91   :  { %9967 = vmatprep.subr.bf16.mxu0 %v11733_v8  ;;  %9775 = vmatprep.mubr.msk.f32.mxu1 %vm11001_vm4, %v11000_v0 }
 0xc92   :  { %9965 = vmatpush3.bf16.msra.mxu1 %v11798_v17 }
 0xc93   :  { %9642 = vmatmul.mubr.msk.f32.vlgmr.msra.gmra.mrb[44].mxu0 %vm613_vm3, %v11781_v5  ;;  %5424 = vmatprep.subr.mxu1 %v11715_v62 }
 0xc94   :  { %9969 = vmatpush1.bf16.msra.mxu0 %v11737_v2  ;;  %5599 = vmatprep.mubr.f32.mxu0 %v11000_v0 }
 0xc95   :  { %5680 = vmatprep.subr.mxu0 %v11739_v29 }
 0xd62   :  { %v5153_v12 = vpop.f32.mrb[40].mxu1  ;;  %v5224_v38 = vpop.f32.mrb[42].mxu0 }
 0xd63   :  { %v5229_v13 = vadd.f32 %v5153_v12, %v11803_v30  ;;  %v5155_v14 = vpop.f32.mrb[41].mxu1  ;;  %v5226_v25 = vpop.f32.mrb[43].mxu0  ;;  %v5231_v24 = vadd.f32 %v5224_v38, %v11815_v7 }
 0xd64   :  { %v5230_v33 = vadd.f32 %v5155_v14, %v11806_v32  ;;  %v5232_v40 = vadd.f32 %v5226_v25, %v11811_v16 }
 0xd65   :  { %v9638_v31 = vmul.f32 -1.442695, %v5229_v13 }
 0xd66   :  { %v9639_v58 = vmul.f32 -1.442695, %v5230_v33  ;;  %v5419_v41 = vpop.f32.mrb[44].mxu0  ;;  %v9640_v42 = vmul.f32 -1.442695, %v5232_v40 }
 0xd67   :  { %10406 = vpow2.f32 %v9638_v31  ;;  %v5421_v37 = vpop.f32.mrb[45].mxu0  ;;  %v5495_v55 = vadd.f32 %v5419_v41, %v11764_v20 }
 0xd68   :  { %10408 = vpow2.f32 %v9639_v58  ;;  %v5496_v57 = vadd.f32 %v5421_v37, %v11766_v15 }
 0xd69   :  { %10410 = vpow2.f32 %v9640_v42  ;;  %v9644_v52 = vmul.f32 -1.442695, %v5495_v55 }
 0xd6a   :  { %10412 = vtanh.f32 %v5231_v24  ;;  %v9645_v1 = vmul.f32 -1.442695, %v5496_v57  ;;  %v11849_v24 = vand.u32 127, %v203_v35 }
 0xd6c   :  { %vm5332_vm7 = vcmp.lt.s32.totalorder %v11849_v24, 4  ;;  %vm5333_vm8 = vcmp.lt.s32.totalorder %v11849_v24, 8 }
 0xd71   :  { %v10407_v11 = vpop.eup %10406 }
 0xd72   :  { %v10409_v26 = vpop.eup %10408  ;;  %v5236_v27 = vadd.f32 1.0, %v10407_v11 }
 0xd73   :  { %v5242_v47 = vadd.f32 1.0, %v10409_v26  ;;  %v10411_v56 = vpop.eup %10410 }
 0xd74   :  { %10414 = vrcp.f32 %v5236_v27  ;;  %v10413_v10 = vpop.eup %10412  ;;  %v5249_v44 = vadd.f32 1.0, %v10411_v56 }
 0xd75   :  { %10416 = vrcp.f32 %v5242_v47 }
 0xd76   :  { %10418 = vrcp.f32 %v5249_v44 }
 0xd7e   :  { %v10415_v48 = vpop.eup %10414 }
 0xd7f   :  { %v10417_v61 = vpop.eup %10416  ;;  %v5253_v51 = vmul.f32 %v10415_v48, %v10413_v10 }
 0xd80   :  { %v5252_v46 = vmul.f32 0.0, %v10417_v61  ;;  %v10419_v49 = vpop.eup %10418 }
 0xd82   :  { %v11818_v43 = vadd.f32 %v5253_v51, %v5252_v46 }
 0xd84   :  { %10420 = vtanh.f32 %v11818_v43 }
 0xd85   :  { %10422 = vpow2.f32 %v9644_v52 }
 0xd86   :  { %10424 = vpow2.f32 %v9645_v1 }
 0xd8e   :  { %v10421_v50 = vpop.eup %10420 }
 0xd8f   :  { %v5256_v63 = vmul.f32 %v10421_v50, %v10419_v49  ;;  %v10423_v54 = vpop.eup %10422 }
 0xd90   :  { %v10425_v4 = vpop.eup %10424  ;;  %v5502_v36 = vadd.f32 1.0, %v10423_v54 }
 0xd91   :  { %9776 = vmatmul.mubr.msk.f32.vlgmr.msra.gmra.mrb[42].mxu1 %vm427_vm2, %v5256_v63  ;;  %9647 = vmatmul.mubr.msk.f32.vlgmr.msra.gmra.mrb[46].mxu0 %vm427_vm2, %v5256_v63  ;;  %v5508_v12 = vadd.f32 1.0, %v10425_v4 }
 0xd92   :  { %5425 = vmatpush1.msra.mxu1 %v11720_v22  ;;  %5488 = vmatprep.mubr.f32.mxu1 %v11000_v0 }
 0xd93   :  { %9971 = vmatprep.subr.bf16.mxu1 %v11735_v53  ;;  %5681 = vmatpush1.msra.mxu0 %v11750_v45 }
 0xd94   :  { %5744 = vmatprep.mubr.f32.mxu0 %v11000_v0  ;;  %9974 = vmatprep.subr.bf16.mxu0 %v11003_v9 }
 0xd95   :  { %9643 = vmatmul.mubr.msk.f32.vlgmr.msra.gmra.mrb[44].mxu1 %vm613_vm3, %v11781_v5 }
 0xd96   :  { %9973 = vmatpush1.bf16.msra.mxu1 %v11742_v34  ;;  %5670 = vmatprep.mubr.f32.mxu1 %v11000_v0 }
 0xd97   :  { %5751 = vmatprep.subr.mxu1 %v11744_v6 }
 0xd99   :  { %9648 = vmatmul.mubr.msk.f32.vlgmr.msra.gmra.mrb[46].mxu1 %vm427_vm2, %v5256_v63 }
 0xd9a   :  { %5752 = vmatpush1.msra.mxu1 %v11753_v19  ;;  %5815 = vmatprep.mubr.f32.mxu1 %v11000_v0 }
 0xd9b   :  { %5944 = vmatprep.subr.mxu1 %v11712_v59 }
 0xe64   :  { %v5328_v5 = vpop.f32.mrb[42].mxu1 }
 0xe65   :  { %v5329_v3 = vadd.f32 %v11843_v23, %v5328_v5  ;;  %v9777_v18 = vpop.f32.mrb[43].mxu1 }
 0xe67   :  { %v5335_v38 = vmul.f32 %v5329_v3, %v5329_v3  ;;  %10426 = vtanh.f32 %v5329_v3  ;;  %vm5334_vm6 = vcmp.gt.f32.partialorder %v5329_v3, 0.0 }
 0xe68   :  { %v5490_v13 = vpop.f32.mrb[44].mxu1  ;;  %10428 = vrcp.f32 %v5502_v36 }
 0xe69   :  { %v5336_v14 = vadd.f32 1.0, %v5335_v38  ;;  %v5497_v25 = vadd.f32 %v5490_v13, %v11775_v39  ;;  %v5492_v33 = vpop.f32.mrb[45].mxu1  ;;  %10430 = vrcp.f32 %v5508_v12 }
 0xe6a   :  { %v5498_v31 = vadd.f32 %v5492_v33, %v11771_v28 }
 0xe6b   :  { %10432 = vrsqrt.f32 %v5336_v14 }
 0xe6c   :  { %10434 = vtanh.f32 %v5497_v25  ;;  %v9646_v58 = vmul.f32 -1.442695, %v5498_v31 }
 0xe6e   :  { %10436 = vpow2.f32 %v9646_v58 }
 0xe71   :  { %v10427_v41 = vpop.eup %10426 }
 0xe72   :  { %v5342_v37 = vmul.f32 0.999, %v10427_v41  ;;  %v10429_v40 = vpop.eup %10428 }
 0xe73   :  { %v10431_v42 = vpop.eup %10430 }
 0xe74   :  { %v5343_v26 = vadd.f32 1.0, %v5342_v37  ;;  %v5518_v56 = vmul.f32 %v10431_v42, %v11778_v21 }
 0xe75   :  { %v10433_v11 = vpop.eup %10432 }
 0xe76   :  { %v10435_v27 = vpop.eup %10434  ;;  %v5338_v47 = vmul.f32 %v10433_v11, %v5329_v3  ;;  %v5344_v44 = vmul.f32 0.5, %v5343_v26 }
 0xe77   :  { %v5519_v10 = vmul.f32 %v10435_v27, %v10429_v40 }
 0xe78   :  { %v10437_v48 = vpop.eup %10436  ;;  %v5339_v61 = vsel %vm5334_vm6, %v5329_v3, %v5338_v47 }
 0xe79   :  { %v5340_v51 = vadd.f32 1.005, %v5339_v61  ;;  %v11854_v46 = vadd.f32 %v5519_v10, %v5518_v56  ;;  %v5515_v35 = vadd.f32 1.0, %v10437_v48 }
 0xe7b   :  { %v5345_v49 = vsel %vm5333_vm8, %v5340_v51, %v5344_v44  ;;  %10438 = vtanh.f32 %v11854_v46 }
 0xe7c   :  { %v5346_v21 = vsel %vm5332_vm7, %v5329_v3, %v5345_v49  ;;  %10440 = vrcp.f32 %v5515_v35 }
 0xe7d   :  { %5348 = vst.msk [vmem:[%s12286_s20] sm:$0x3] %vm5347_vm9, %v5346_v21 }
 0xe85   :  { %v10439_v50 = vpop.eup %10438 }
 0xe86   :  { %v10441_v63 = vpop.eup %10440 }
 0xe87   :  { %v5522_v55 = vmul.f32 %v10441_v63, %v10439_v50 }
 0xe89   :  { %9649 = vmatmul.mubr.msk.f32.vlgmr.msra.gmra.mrb[46].mxu0 %vm613_vm3, %v5522_v55  ;;  %9650 = vmatmul.mubr.msk.f32.vlgmr.msra.gmra.mrb[46].mxu1 %vm613_vm3, %v5522_v55 }
 0xe8a   :  { %5945 = vmatpush1.msra.mxu1 %v11718_v60  ;;  %6008 = vmatprep.mubr.f32.mxu1 %v11000_v0 }
 0xe8b   :  { %9978 = vmatprep.subr.bf16.mxu1 %v11733_v8  ;;  %9976 = vmatpush3.bf16.msra.mxu0 %v11798_v17 }
 0xe8c   :  { %9782 = vmatprep.mubr.msk.f32.mxu0 %vm11001_vm4, %v11000_v0  ;;  %6015 = vmatprep.subr.mxu0 %v11715_v62 }
 0xe8d   :  { %9656 = vmatmul.mubr.msk.f32.vlgmr.msra.gmra.mrb[48].mxu1 %vm613_vm3, %v5522_v55 }
 0xe8e   :  { %9980 = vmatpush1.bf16.msra.mxu1 %v11737_v2  ;;  %6190 = vmatprep.mubr.f32.mxu1 %v11000_v0 }
 0xe8f   :  { %6271 = vmatprep.subr.mxu1 %v11739_v29 }
 0xf5c   :  { %v5746_v57 = vpop.f32.mrb[46].mxu0  ;;  %v5817_v52 = vpop.f32.mrb[46].mxu1 }
 0xf5d   :  { %v5822_v1 = vadd.f32 %v5746_v57, %v11803_v30  ;;  %v5748_v54 = vpop.f32.mrb[47].mxu0  ;;  %v5819_v4 = vpop.f32.mrb[47].mxu1  ;;  %v5824_v14 = vadd.f32 %v5817_v52, %v11815_v7 }
 0xf5e   :  { %v5823_v5 = vadd.f32 %v5748_v54, %v11806_v32  ;;  %v5825_v38 = vadd.f32 %v5819_v4, %v11811_v16 }
 0xf5f   :  { %v9651_v36 = vmul.f32 -1.442695, %v5822_v1 }
 0xf60   :  { %v9652_v3 = vmul.f32 -1.442695, %v5823_v5  ;;  %v6010_v18 = vpop.f32.mrb[48].mxu1  ;;  %v9653_v13 = vmul.f32 -1.442695, %v5825_v38 }
 0xf61   :  { %10442 = vpow2.f32 %v9651_v36  ;;  %v6012_v12 = vpop.f32.mrb[49].mxu1 }
 0xf62   :  { %10444 = vpow2.f32 %v9652_v3  ;;  %v6087_v61 = vadd.f32 %v6012_v12, %v11766_v15 }
 0xf63   :  { %10446 = vpow2.f32 %v9653_v13 }
 0xf64   :  { %10448 = vtanh.f32 %v5824_v14  ;;  %v9659_v44 = vmul.f32 -1.442695, %v6087_v61 }
 0xf6b   :  { %v10443_v25 = vpop.eup %10442 }
 0xf6c   :  { %v10445_v33 = vpop.eup %10444  ;;  %v5829_v31 = vadd.f32 1.0, %v10443_v25 }
 0xf6d   :  { %v5835_v58 = vadd.f32 1.0, %v10445_v33  ;;  %v10447_v41 = vpop.eup %10446 }
 0xf6e   :  { %10450 = vrcp.f32 %v5829_v31  ;;  %v10449_v37 = vpop.eup %10448  ;;  %v5842_v26 = vadd.f32 1.0, %v10447_v41 }
 0xf6f   :  { %10452 = vrcp.f32 %v5835_v58 }
 0xf70   :  { %10454 = vrcp.f32 %v5842_v26 }
 0xf78   :  { %v10451_v40 = vpop.eup %10450 }
 0xf79   :  { %v10453_v42 = vpop.eup %10452  ;;  %v5846_v11 = vmul.f32 %v10451_v40, %v10449_v37 }
 0xf7a   :  { %v5845_v27 = vmul.f32 %v10453_v42, %v11818_v43  ;;  %v10455_v56 = vpop.eup %10454  ;;  %v6086_v43 = vadd.f32 %v6010_v18, %v11764_v20 }
 0xf7c   :  { %v11883_v47 = vadd.f32 %v5846_v11, %v5845_v27  ;;  %v9658_v51 = vmul.f32 -1.442695, %v6086_v43 }
 0xf7e   :  { %10456 = vtanh.f32 %v11883_v47 }
 0xf7f   :  { %10458 = vpow2.f32 %v9658_v51 }
 0xf80   :  { %10460 = vpow2.f32 %v9659_v44 }
 0xf88   :  { %v10457_v10 = vpop.eup %10456 }
 0xf89   :  { %v5849_v48 = vmul.f32 %v10457_v10, %v10455_v56  ;;  %v10459_v35 = vpop.eup %10458 }
 0xf8a   :  { %v10461_v49 = vpop.eup %10460  ;;  %v6093_v50 = vadd.f32 1.0, %v10459_v35 }
 0xf8b   :  { %9783 = vmatmul.mubr.msk.f32.vlgmr.msra.gmra.mrb[48].mxu0 %vm427_vm2, %v5849_v48  ;;  %9661 = vmatmul.mubr.msk.f32.vlgmr.msra.gmra.mrb[50].mxu1 %vm427_vm2, %v5849_v48  ;;  %v6099_v57 = vadd.f32 1.0, %v10461_v49 }
 0xf8c   :  { %6016 = vmatpush1.msra.mxu0 %v11720_v22  ;;  %6079 = vmatprep.mubr.f32.mxu0 %v11000_v0 }
 0xf8d   :  { %9982 = vmatprep.subr.bf16.mxu0 %v11735_v53  ;;  %6272 = vmatpush1.msra.mxu1 %v11750_v45 }
 0xf8e   :  { %6335 = vmatprep.mubr.f32.mxu1 %v11000_v0  ;;  %9985 = vmatprep.subr.bf16.mxu1 %v11003_v9 }
 0xf8f   :  { %9657 = vmatmul.mubr.msk.f32.vlgmr.msra.gmra.mrb[50].mxu0 %vm613_vm3, %v5522_v55 }
 0xf90   :  { %9984 = vmatpush1.bf16.msra.mxu0 %v11742_v34  ;;  %6261 = vmatprep.mubr.f32.mxu0 %v11000_v0 }
 0xf91   :  { %6342 = vmatprep.subr.mxu0 %v11744_v6 }
 0xf93   :  { %9662 = vmatmul.mubr.msk.f32.vlgmr.msra.gmra.mrb[52].mxu0 %vm427_vm2, %v5849_v48 }
 0xf94   :  { %6343 = vmatpush1.msra.mxu0 %v11753_v19  ;;  %6406 = vmatprep.mubr.f32.mxu0 %v11000_v0 }
 0xf95   :  { %6535 = vmatprep.subr.mxu0 %v11712_v59 }
0x105e   :  { %v5921_v21 = vpop.f32.mrb[48].mxu0 }
0x105f   :  { %v5922_v63 = vadd.f32 %v11843_v23, %v5921_v21  ;;  %v9784_v55 = vpop.f32.mrb[49].mxu0 }
0x1061   :  { %v5926_v52 = vmul.f32 %v5922_v63, %v5922_v63  ;;  %10462 = vtanh.f32 %v5922_v63  ;;  %vm5925_vm10 = vcmp.gt.f32.partialorder %v5922_v63, 0.0 }
0x1062   :  { %v6081_v1 = vpop.f32.mrb[50].mxu0  ;;  %10464 = vrcp.f32 %v6093_v50 }
0x1063   :  { %v5927_v54 = vadd.f32 1.0, %v5926_v52  ;;  %v6088_v4 = vadd.f32 %v6081_v1, %v11775_v39  ;;  %v6083_v5 = vpop.f32.mrb[51].mxu0  ;;  %10466 = vrcp.f32 %v6099_v57 }
0x1064   :  { %v6089_v36 = vadd.f32 %v6083_v5, %v11771_v28 }
0x1065   :  { %10468 = vrsqrt.f32 %v5927_v54 }
0x1066   :  { %10470 = vtanh.f32 %v6088_v4  ;;  %v9660_v3 = vmul.f32 -1.442695, %v6089_v36 }
0x1068   :  { %10472 = vpow2.f32 %v9660_v3 }
0x106b   :  { %v10463_v18 = vpop.eup %10462 }
0x106c   :  { %v5933_v12 = vmul.f32 0.999, %v10463_v18  ;;  %v10465_v38 = vpop.eup %10464 }
0x106d   :  { %v10467_v13 = vpop.eup %10466 }
0x106e   :  { %v5934_v25 = vadd.f32 1.0, %v5933_v12  ;;  %v6109_v58 = vmul.f32 %v10467_v13, %v11854_v46 }
0x106f   :  { %v10469_v14 = vpop.eup %10468 }
0x1070   :  { %v10471_v33 = vpop.eup %10470  ;;  %v5929_v31 = vmul.f32 %v10469_v14, %v5922_v63  ;;  %v5935_v11 = vmul.f32 0.5, %v5934_v25 }
0x1071   :  { %v6110_v41 = vmul.f32 %v10471_v33, %v10465_v38 }
0x1072   :  { %v10473_v37 = vpop.eup %10472  ;;  %v5930_v40 = vsel %vm5925_vm10, %v5922_v63, %v5929_v31 }
0x1073   :  { %v5931_v42 = vadd.f32 1.005, %v5930_v40  ;;  %v11908_v26 = vadd.f32 %v6110_v41, %v6109_v58  ;;  %v6106_v27 = vadd.f32 1.0, %v10473_v37 }
0x1075   :  { %v5936_v56 = vsel %vm5333_vm8, %v5931_v42, %v5935_v11  ;;  %10474 = vtanh.f32 %v11908_v26 }
0x1076   :  { %v5937_v10 = vsel %vm5332_vm7, %v5922_v63, %v5936_v56  ;;  %10476 = vrcp.f32 %v6106_v27 }
0x1077   :  { %9655 = vst.msk [vmem:[%s12286_s20 + $0x2] sm:$0x3] %vm5347_vm9, %v5937_v10 }
0x107f   :  { %v10475_v46 = vpop.eup %10474 }
0x1080   :  { %v10477_v48 = vpop.eup %10476 }
0x1081   :  { %v6113_v43 = vmul.f32 %v10477_v48, %v10475_v46 }
0x1083   :  { %9663 = vmatmul.mubr.msk.f32.vlgmr.msra.gmra.mrb[50].mxu1 %vm613_vm3, %v6113_v43  ;;  %9664 = vmatmul.mubr.msk.f32.vlgmr.msra.gmra.mrb[52].mxu0 %vm613_vm3, %v6113_v43 }
0x1084   :  { %6536 = vmatpush1.msra.mxu0 %v11718_v60  ;;  %6599 = vmatprep.mubr.f32.mxu0 %v11000_v0 }
0x1085   :  { %9989 = vmatprep.subr.bf16.mxu0 %v11733_v8  ;;  %9987 = vmatpush3.bf16.msra.mxu1 %v11798_v17 }
0x1086   :  { %9789 = vmatprep.mubr.msk.f32.mxu1 %vm11001_vm4, %v11000_v0  ;;  %6606 = vmatprep.subr.mxu1 %v11715_v62 }
0x1087   :  { %9670 = vmatmul.mubr.msk.f32.vlgmr.msra.gmra.mrb[54].mxu0 %vm613_vm3, %v6113_v43 }
0x1088   :  { %9991 = vmatpush1.bf16.msra.mxu0 %v11737_v2  ;;  %6781 = vmatprep.mubr.f32.mxu0 %v11000_v0 }
0x1089   :  { %6862 = vmatprep.subr.mxu0 %v11739_v29 }
0x1156   :  { %v6337_v61 = vpop.f32.mrb[50].mxu1  ;;  %v6408_v51 = vpop.f32.mrb[52].mxu0 }
0x1157   :  { %v6413_v44 = vadd.f32 %v6337_v61, %v11803_v30  ;;  %v6339_v35 = vpop.f32.mrb[51].mxu1  ;;  %v6410_v49 = vpop.f32.mrb[53].mxu0  ;;  %v6415_v54 = vadd.f32 %v6408_v51, %v11815_v7 }
0x1158   :  { %v6414_v21 = vadd.f32 %v6339_v35, %v11806_v32  ;;  %v6416_v52 = vadd.f32 %v6410_v49, %v11811_v16 }
0x1159   :  { %v9665_v50 = vmul.f32 -1.442695, %v6413_v44 }
0x115a   :  { %v9666_v63 = vmul.f32 -1.442695, %v6414_v21  ;;  %v6601_v55 = vpop.f32.mrb[54].mxu0  ;;  %v9667_v1 = vmul.f32 -1.442695, %v6416_v52 }
0x115b   :  { %10478 = vpow2.f32 %v9665_v50  ;;  %v6603_v57 = vpop.f32.mrb[55].mxu0 }
0x115c   :  { %10480 = vpow2.f32 %v9666_v63  ;;  %v6678_v40 = vadd.f32 %v6603_v57, %v11766_v15 }
0x115d   :  { %10482 = vpow2.f32 %v9667_v1 }
0x115e   :  { %10484 = vtanh.f32 %v6415_v54  ;;  %v9673_v11 = vmul.f32 -1.442695, %v6678_v40 }
0x1165   :  { %v10479_v4 = vpop.eup %10478 }
0x1166   :  { %v10481_v5 = vpop.eup %10480  ;;  %v6420_v36 = vadd.f32 1.0, %v10479_v4 }
0x1167   :  { %v6426_v3 = vadd.f32 1.0, %v10481_v5  ;;  %v10483_v18 = vpop.eup %10482 }
0x1168   :  { %10486 = vrcp.f32 %v6420_v36  ;;  %v10485_v12 = vpop.eup %10484  ;;  %v6433_v25 = vadd.f32 1.0, %v10483_v18 }
0x1169   :  { %10488 = vrcp.f32 %v6426_v3 }
0x116a   :  { %10490 = vrcp.f32 %v6433_v25 }
0x1172   :  { %v10487_v38 = vpop.eup %10486 }
0x1173   :  { %v10489_v13 = vpop.eup %10488  ;;  %v6437_v14 = vmul.f32 %v10487_v38, %v10485_v12 }
0x1174   :  { %v6436_v33 = vmul.f32 %v10489_v13, %v11883_v47  ;;  %v10491_v58 = vpop.eup %10490  ;;  %v6677_v47 = vadd.f32 %v6601_v55, %v11764_v20 }
0x1176   :  { %v11937_v31 = vadd.f32 %v6437_v14, %v6436_v33  ;;  %v9672_v42 = vmul.f32 -1.442695, %v6677_v47 }
0x1178   :  { %10492 = vtanh.f32 %v11937_v31 }
0x1179   :  { %10494 = vpow2.f32 %v9672_v42 }
0x117a   :  { %10496 = vpow2.f32 %v9673_v11 }
0x1182   :  { %v10493_v41 = vpop.eup %10492 }
0x1183   :  { %v6440_v37 = vmul.f32 %v10493_v41, %v10491_v58  ;;  %v10495_v27 = vpop.eup %10494 }
0x1184   :  { %v10497_v56 = vpop.eup %10496  ;;  %v6684_v46 = vadd.f32 1.0, %v10495_v27 }
0x1185   :  { %9790 = vmatmul.mubr.msk.f32.vlgmr.msra.gmra.mrb[52].mxu1 %vm427_vm2, %v6440_v37  ;;  %9675 = vmatmul.mubr.msk.f32.vlgmr.msra.gmra.mrb[56].mxu0 %vm427_vm2, %v6440_v37  ;;  %v6690_v61 = vadd.f32 1.0, %v10497_v56 }
0x1186   :  { %6607 = vmatpush1.msra.mxu1 %v11720_v22  ;;  %6670 = vmatprep.mubr.f32.mxu1 %v11000_v0 }
0x1187   :  { %9993 = vmatprep.subr.bf16.mxu1 %v11735_v53  ;;  %6863 = vmatpush1.msra.mxu0 %v11750_v45 }
0x1188   :  { %6926 = vmatprep.mubr.f32.mxu0 %v11000_v0  ;;  %9996 = vmatprep.subr.bf16.mxu0 %v11003_v9 }
0x1189   :  { %9671 = vmatmul.mubr.msk.f32.vlgmr.msra.gmra.mrb[54].mxu1 %vm613_vm3, %v6113_v43 }
0x118a   :  { %9995 = vmatpush1.bf16.msra.mxu1 %v11742_v34  ;;  %6852 = vmatprep.mubr.f32.mxu1 %v11000_v0 }
0x118b   :  { %6933 = vmatprep.subr.mxu1 %v11744_v6 }
0x118d   :  { %9676 = vmatmul.mubr.msk.f32.vlgmr.msra.gmra.mrb[56].mxu1 %vm427_vm2, %v6440_v37 }
0x118e   :  { %6934 = vmatpush1.msra.mxu1 %v11753_v19  ;;  %6997 = vmatprep.mubr.f32.mxu1 %v11000_v0 }
0x118f   :  { %7126 = vmatprep.subr.mxu1 %v11712_v59 }
0x1258   :  { %v6512_v10 = vpop.f32.mrb[52].mxu1 }
0x1259   :  { %v6513_v48 = vadd.f32 %v11843_v23, %v6512_v10  ;;  %v9791_v43 = vpop.f32.mrb[53].mxu1 }
0x125b   :  { %v6517_v51 = vmul.f32 %v6513_v48, %v6513_v48  ;;  %10498 = vtanh.f32 %v6513_v48  ;;  %vm6516_vm11 = vcmp.gt.f32.partialorder %v6513_v48, 0.0 }
0x125c   :  { %v6672_v44 = vpop.f32.mrb[54].mxu1  ;;  %10500 = vrcp.f32 %v6684_v46 }
0x125d   :  { %v6518_v59 = vadd.f32 1.0, %v6517_v51  ;;  %v6679_v35 = vadd.f32 %v6672_v44, %v11775_v39  ;;  %v6674_v49 = vpop.f32.mrb[55].mxu1  ;;  %10502 = vrcp.f32 %v6690_v61 }
0x125e   :  { %v6680_v21 = vadd.f32 %v6674_v49, %v11771_v28 }
0x125f   :  { %10504 = vrsqrt.f32 %v6518_v59 }
0x1260   :  { %10506 = vtanh.f32 %v6679_v35  ;;  %v9674_v50 = vmul.f32 -1.442695, %v6680_v21 }
0x1262   :  { %10508 = vpow2.f32 %v9674_v50 }
0x1265   :  { %v10499_v63 = vpop.eup %10498 }
0x1266   :  { %v6524_v55 = vmul.f32 0.999, %v10499_v63  ;;  %v10501_v57 = vpop.eup %10500 }
0x1267   :  { %v10503_v52 = vpop.eup %10502 }
0x1268   :  { %v6525_v54 = vadd.f32 1.0, %v6524_v55  ;;  %v6700_v36 = vmul.f32 %v10503_v52, %v11908_v26 }
0x1269   :  { %v10505_v1 = vpop.eup %10504 }
0x126a   :  { %v10507_v4 = vpop.eup %10506  ;;  %v6520_v5 = vmul.f32 %v10505_v1, %v6513_v48  ;;  %v6526_v13 = vmul.f32 0.5, %v6525_v54 }
0x126b   :  { %v6701_v3 = vmul.f32 %v10507_v4, %v10501_v57 }
0x126c   :  { %v10509_v18 = vpop.eup %10508  ;;  %v6521_v12 = vsel %vm6516_vm11, %v6513_v48, %v6520_v5 }
0x126d   :  { %v6522_v38 = vadd.f32 1.005, %v6521_v12  ;;  %v11962_v14 = vadd.f32 %v6701_v3, %v6700_v36  ;;  %v6697_v25 = vadd.f32 1.0, %v10509_v18 }
0x126f   :  { %v6527_v33 = vsel %vm5333_vm8, %v6522_v38, %v6526_v13  ;;  %10510 = vtanh.f32 %v11962_v14 }
0x1270   :  { %v6528_v58 = vsel %vm5332_vm7, %v6513_v48, %v6527_v33  ;;  %10512 = vrcp.f32 %v6697_v25 }
0x1271   :  { %9669 = vst.msk [vmem:[%s12286_s20 + $0x4] sm:$0x3] %vm5347_vm9, %v6528_v58 }
0x1279   :  { %v10511_v26 = vpop.eup %10510 }
0x127a   :  { %v10513_v41 = vpop.eup %10512 }
0x127b   :  { %v6704_v37 = vmul.f32 %v10513_v41, %v10511_v26 }
0x127d   :  { %9677 = vmatmul.mubr.msk.f32.vlgmr.msra.gmra.mrb[56].mxu0 %vm613_vm3, %v6704_v37  ;;  %9678 = vmatmul.mubr.msk.f32.vlgmr.msra.gmra.mrb[56].mxu1 %vm613_vm3, %v6704_v37 }
0x127e   :  { %7127 = vmatpush1.msra.mxu1 %v11718_v60  ;;  %7190 = vmatprep.mubr.f32.mxu1 %v11000_v0 }
0x127f   :  { %10000 = vmatprep.subr.bf16.mxu1 %v11733_v8  ;;  %9998 = vmatpush3.bf16.msra.mxu0 %v11798_v17 }
0x1280   :  { %9796 = vmatprep.mubr.msk.f32.mxu0 %vm11001_vm4, %v11000_v0  ;;  %7197 = vmatprep.subr.mxu0 %v11715_v62 }
0x1281   :  { %9684 = vmatmul.mubr.msk.f32.vlgmr.msra.gmra.mrb[58].mxu1 %vm613_vm3, %v6704_v37 }
0x1282   :  { %10002 = vmatpush1.bf16.msra.mxu1 %v11737_v2  ;;  %7372 = vmatprep.mubr.f32.mxu1 %v11000_v0 }
0x1283   :  { %7453 = vmatprep.subr.mxu1 %v11739_v29 }
0x1350   :  { %v6928_v60 = vpop.f32.mrb[56].mxu0  ;;  %v6999_v47 = vpop.f32.mrb[56].mxu1 }
0x1351   :  { %v7004_v40 = vadd.f32 %v6928_v60, %v11803_v30  ;;  %v6930_v8 = vpop.f32.mrb[57].mxu0  ;;  %v7001_v42 = vpop.f32.mrb[57].mxu1  ;;  %v7006_v48 = vadd.f32 %v6999_v47, %v11815_v7 }
0x1352   :  { %v7005_v11 = vadd.f32 %v6930_v8, %v11806_v32  ;;  %v7007_v2 = vadd.f32 %v7001_v42, %v11811_v16 }
0x1353   :  { %v9679_v27 = vmul.f32 -1.442695, %v7004_v40 }
0x1354   :  { %v9680_v56 = vmul.f32 -1.442695, %v7005_v11  ;;  %v7192_v10 = vpop.f32.mrb[58].mxu1  ;;  %v9681_v46 = vmul.f32 -1.442695, %v7007_v2 }
0x1355   :  { %10514 = vpow2.f32 %v9679_v27  ;;  %v7194_v62 = vpop.f32.mrb[59].mxu1 }
0x1356   :  { %10516 = vpow2.f32 %v9680_v56 }
0x1357   :  { %10518 = vpow2.f32 %v9681_v46 }
0x1358   :  { %10520 = vtanh.f32 %v7006_v48 }
0x135f   :  { %v10515_v29 = vpop.eup %10514 }
0x1360   :  { %v10517_v43 = vpop.eup %10516  ;;  %v7011_v61 = vadd.f32 1.0, %v10515_v29 }
0x1361   :  { %v7017_v51 = vadd.f32 1.0, %v10517_v43  ;;  %v10519_v44 = vpop.eup %10518 }
0x1362   :  { %10522 = vrcp.f32 %v7011_v61  ;;  %v10521_v59 = vpop.eup %10520  ;;  %v7024_v50 = vadd.f32 1.0, %v10519_v44  ;;  %v12031_v44 = vld [vmem:[#allocation11] sm:$0xff] }
0x1363   :  { %10524 = vrcp.f32 %v7017_v51 }
0x1364   :  { %10526 = vrcp.f32 %v7024_v50  ;;  %v7895_v50 = vld [vmem:[#allocation16 + $0x20] sm:$0xff] }
0x136c   :  { %v10523_v35 = vpop.eup %10522 }
0x136d   :  { %v10525_v49 = vpop.eup %10524  ;;  %v7028_v21 = vmul.f32 %v10523_v35, %v10521_v59  ;;  %v7892_v59 = vld [vmem:[#allocation16 + $0x8] sm:$0xff] }
0x136e   :  { %v7027_v63 = vmul.f32 %v10525_v49, %v11937_v31  ;;  %v10527_v57 = vpop.eup %10526  ;;  %v7896_v35 = vld [vmem:[#allocation16 + $0x28] sm:$0xff]  ;;  %v7891_v49 = vld [vmem:[#allocation16] sm:$0xff] }
0x1370   :  { %v11991_v55 = vadd.f32 %v7028_v21, %v7027_v63  ;;  %v12045_v21 = vpack.c.bf16 %v7896_v35, %v7892_v59  ;;  %v12047_v63 = vpack.c.bf16 %v7895_v50, %v7891_v49 }
0x1372   :  { %10528 = vtanh.f32 %v11991_v55 }
0x137c   :  { %v10529_v52 = vpop.eup %10528 }
0x137d   :  { %v7031_v1 = vmul.f32 %v10529_v52, %v10527_v57 }
0x137f   :  { %9797 = vmatmul.mubr.msk.f32.vlgmr.msra.gmra.mrb[58].mxu0 %vm427_vm2, %v7031_v1  ;;  %9689 = vmatmul.mubr.msk.f32.vlgmr.msra.gmra.mrb[60].mxu1 %vm427_vm2, %v7031_v1 }
0x1380   :  { %7198 = vmatpush1.msra.mxu0 %v11720_v22  ;;  %7261 = vmatprep.mubr.f32.mxu0 %v11000_v0  ;;  %v12009_v22 = vld [vmem:[#allocation11 + $0x8] sm:$0xff] }
0x1381   :  { %10004 = vmatprep.subr.bf16.mxu0 %v11735_v53  ;;  %7454 = vmatpush1.msra.mxu1 %v11750_v45  ;;  %v7268_v53 = vadd.f32 %v7192_v10, %v11764_v20  ;;  %v7269_v45 = vadd.f32 %v7194_v62, %v11766_v15 }
0x1382   :  { %7517 = vmatprep.mubr.f32.mxu1 %v11000_v0  ;;  %10007 = vmatprep.subr.bf16.mxu1 %v11003_v9 }
0x1383   :  { %9685 = vmatmul.mubr.msk.f32.vlgmr.msra.gmra.mrb[60].mxu0 %vm613_vm3, %v6704_v37  ;;  %v9686_v31 = vmul.f32 -1.442695, %v7268_v53 }
0x1384   :  { %10006 = vmatpush1.bf16.msra.mxu0 %v11742_v34  ;;  %7443 = vmatprep.mubr.f32.mxu0 %v11000_v0  ;;  %v9687_v34 = vmul.f32 -1.442695, %v7269_v45 }
0x1385   :  { %7524 = vmatprep.subr.mxu0 %v11744_v6  ;;  %10530 = vpow2.f32 %v9686_v31 }
0x1386   :  { %10532 = vpow2.f32 %v9687_v34 }
0x1387   :  { %9690 = vmatmul.mubr.msk.f32.vlgmr.msra.gmra.mrb[62].mxu0 %vm427_vm2, %v7031_v1 }
0x1388   :  { %7525 = vmatpush1.msra.mxu0 %v11753_v19  ;;  %7588 = vmatprep.mubr.f32.mxu0 %v11000_v0 }
0x1389   :  { %7717 = vmatprep.subr.mxu0 %v12009_v22 }
0x138f   :  { %v10531_v54 = vpop.eup %10530 }
0x1390   :  { %v10533_v6 = vpop.eup %10532  ;;  %v7275_v5 = vadd.f32 1.0, %v10531_v54 }
0x1391   :  { %v7281_v3 = vadd.f32 1.0, %v10533_v6 }
0x1452   :  { %v7103_v4 = vpop.f32.mrb[58].mxu0 }
0x1453   :  { %v7104_v19 = vadd.f32 %v11843_v23, %v7103_v4  ;;  %v9798_v36 = vpop.f32.mrb[59].mxu0 }
0x1455   :  { %v7108_v18 = vmul.f32 %v7104_v19, %v7104_v19  ;;  %10534 = vtanh.f32 %v7104_v19  ;;  %vm7107_vm12 = vcmp.gt.f32.partialorder %v7104_v19, 0.0 }
0x1456   :  { %v7263_v12 = vpop.f32.mrb[60].mxu0  ;;  %10536 = vrcp.f32 %v7275_v5 }
0x1457   :  { %v7109_v38 = vadd.f32 1.0, %v7108_v18  ;;  %v7270_v13 = vadd.f32 %v7263_v12, %v11775_v39  ;;  %v7265_v25 = vpop.f32.mrb[61].mxu0  ;;  %10538 = vrcp.f32 %v7281_v3 }
0x1458   :  { %v7271_v33 = vadd.f32 %v7265_v25, %v11771_v28 }
0x1459   :  { %10540 = vrsqrt.f32 %v7109_v38 }
0x145a   :  { %10542 = vtanh.f32 %v7270_v13  ;;  %v9688_v58 = vmul.f32 -1.442695, %v7271_v33 }
0x145c   :  { %10544 = vpow2.f32 %v9688_v58 }
0x145f   :  { %v10535_v26 = vpop.eup %10534 }
0x1460   :  { %v7115_v41 = vmul.f32 0.999, %v10535_v26  ;;  %v10537_v37 = vpop.eup %10536 }
0x1461   :  { %v10539_v60 = vpop.eup %10538 }
0x1462   :  { %v7116_v40 = vadd.f32 1.0, %v7115_v41  ;;  %v7291_v11 = vmul.f32 %v10539_v60, %v11962_v14 }
0x1463   :  { %v10541_v47 = vpop.eup %10540 }
0x1464   :  { %v10543_v8 = vpop.eup %10542  ;;  %v7111_v42 = vmul.f32 %v10541_v47, %v7104_v19  ;;  %v7117_v2 = vmul.f32 0.5, %v7116_v40  ;;  %v7894_v47 = vld [vmem:[#allocation16 + $0x18] sm:$0xff] }
0x1465   :  { %v7292_v27 = vmul.f32 %v10543_v8, %v10537_v37  ;;  %v7898_v40 = vld [vmem:[#allocation16 + $0x38] sm:$0xff] }
0x1466   :  { %v10545_v56 = vpop.eup %10544  ;;  %v7112_v10 = vsel %vm7107_vm12, %v7104_v19, %v7111_v42 }
0x1467   :  { %v7113_v62 = vadd.f32 1.005, %v7112_v10  ;;  %v12018_v46 = vadd.f32 %v7292_v27, %v7291_v11  ;;  %v7288_v48 = vadd.f32 1.0, %v10545_v56  ;;  %v12062_v27 = vld [vmem:[#allocation11 + $0x10] sm:$0xff]  ;;  %v12064_v56 = vpack.c.bf16 %v7898_v40, %v7894_v47 }
0x1468   :  { %v7893_v10 = vld [vmem:[#allocation16 + $0x10] sm:$0xff] }
0x1469   :  { %v7118_v29 = vsel %vm5333_vm8, %v7113_v62, %v7117_v2  ;;  %10546 = vtanh.f32 %v12018_v46  ;;  %v7897_v62 = vld [vmem:[#allocation16 + $0x30] sm:$0xff]  ;;  %v12080_v2 = vld [vmem:[#allocation14 + $0x8] sm:$0xff] }
0x146a   :  { %v7119_v43 = vsel %vm5332_vm7, %v7104_v19, %v7118_v29  ;;  %10548 = vrcp.f32 %v7288_v48  ;;  %v12082_v48 = vld [vmem:[#allocation14] sm:$0xff]  ;;  %v12084_v29 = vld [vmem:[#allocation14 + $0x18] sm:$0xff] }
0x146b   :  { %9683 = vst.msk [vmem:[%s12286_s20 + $0x6] sm:$0x3] %vm5347_vm9, %v7119_v43  ;;  %v12088_v43 = vld [vmem:[#allocation14 + $0x10] sm:$0xff] }
0x1473   :  { %v10547_v14 = vpop.eup %10546 }
0x1474   :  { %v10549_v61 = vpop.eup %10548 }
0x1475   :  { %v12029_v51 = vmul.f32 %v10549_v61, %v10547_v14 }
0x1477   :  { %9691 = vmatmul.mubr.msk.f32.vlgmr.msra.gmra.mrb[60].mxu1 %vm613_vm3, %v12029_v51  ;;  %9692 = vmatmul.mubr.msk.f32.vlgmr.msra.gmra.mrb[62].mxu0 %vm613_vm3, %v12029_v51 }
0x1478   :  { %7718 = vmatpush1.msra.mxu0 %v12031_v44  ;;  %7781 = vmatprep.mubr.f32.mxu0 %v11000_v0 }
0x1479   :  { %10009 = vmatpush3.bf16.msra.mxu1 %v11798_v17  ;;  %9803 = vmatprep.mubr.msk.f32.mxu1 %vm11001_vm4, %v11000_v0  ;;  %v12051_v17 = vld [vmem:[#allocation11 + $0x18] sm:$0xff] }
0x147a   :  { %10011 = vmatprep.subr.bf16.mxu0 %v12045_v21  ;;  %7788 = vmatprep.subr.mxu1 %v12051_v17 }
0x147b   :  { %9698 = vmatmul.mubr.msk.f32.vlgmr.msra.gmra.mrb[64].mxu0 %vm613_vm3, %v12029_v51 }
0x147c   :  { %7963 = vmatprep.mubr.f32.mxu0 %v11000_v0  ;;  %10013 = vmatpush1.bf16.msra.mxu0 %v12047_v63 }
0x147d   :  { %8044 = vmatprep.subr.mxu0 %v12080_v2 }
0x154a   :  { %v7519_v57 = vpop.f32.mrb[60].mxu1  ;;  %v7590_v52 = vpop.f32.mrb[62].mxu0 }
0x154b   :  { %v7595_v1 = vadd.f32 %v7519_v57, %v11803_v30  ;;  %v7521_v53 = vpop.f32.mrb[61].mxu1  ;;  %v7592_v45 = vpop.f32.mrb[63].mxu0  ;;  %v7597_v36 = vadd.f32 %v7590_v52, %v11815_v7 }
0x154c   :  { %v7596_v31 = vadd.f32 %v7521_v53, %v11806_v32  ;;  %v7598_v5 = vadd.f32 %v7592_v45, %v11811_v16 }
0x154d   :  { %v9693_v34 = vmul.f32 -1.442695, %v7595_v1 }
0x154e   :  { %v9694_v54 = vmul.f32 -1.442695, %v7596_v31  ;;  %v7783_v6 = vpop.f32.mrb[64].mxu0  ;;  %v9695_v19 = vmul.f32 -1.442695, %v7598_v5 }
0x154f   :  { %10550 = vpow2.f32 %v9693_v34  ;;  %v7785_v4 = vpop.f32.mrb[65].mxu0  ;;  %v7859_v14 = vadd.f32 %v7783_v6, %v11764_v20 }
0x1550   :  { %10552 = vpow2.f32 %v9694_v54  ;;  %v7860_v61 = vadd.f32 %v7785_v4, %v11766_v15 }
0x1551   :  { %10554 = vpow2.f32 %v9695_v19 }
0x1552   :  { %10556 = vtanh.f32 %v7597_v36  ;;  %v9701_v59 = vmul.f32 -1.442695, %v7860_v61 }
0x1559   :  { %v10551_v3 = vpop.eup %10550 }
0x155a   :  { %v10553_v18 = vpop.eup %10552  ;;  %v7602_v12 = vadd.f32 1.0, %v10551_v3 }
0x155b   :  { %v7608_v38 = vadd.f32 1.0, %v10553_v18  ;;  %v10555_v13 = vpop.eup %10554 }
0x155c   :  { %10558 = vrcp.f32 %v7602_v12  ;;  %v10557_v25 = vpop.eup %10556  ;;  %v7615_v41 = vadd.f32 1.0, %v10555_v13 }
0x155d   :  { %10560 = vrcp.f32 %v7608_v38 }
0x155e   :  { %10562 = vrcp.f32 %v7615_v41 }
0x1566   :  { %v10559_v33 = vpop.eup %10558 }
0x1567   :  { %v10561_v58 = vpop.eup %10560  ;;  %v7619_v26 = vmul.f32 %v10559_v33, %v10557_v25 }
0x1568   :  { %v7618_v37 = vmul.f32 %v10561_v58, %v11991_v55  ;;  %v10563_v8 = vpop.eup %10562  ;;  %v12070_v55 = vpack.c.bf16 %v7897_v62, %v7893_v10  ;;  %v8214_v62 = vld [vmem:[#allocation19] sm:$0xff] }
0x156a   :  { %v12059_v60 = vadd.f32 %v7619_v26, %v7618_v37 }
0x156c   :  { %10564 = vtanh.f32 %v12059_v60 }
0x1576   :  { %v10565_v42 = vpop.eup %10564 }
0x1577   :  { %v7622_v11 = vmul.f32 %v10565_v42, %v10563_v8 }
0x1579   :  { %9804 = vmatmul.mubr.msk.f32.vlgmr.msra.gmra.mrb[62].mxu1 %vm427_vm2, %v7622_v11  ;;  %9703 = vmatmul.mubr.msk.f32.vlgmr.msra.gmra.mrb[66].mxu0 %vm427_vm2, %v7622_v11 }
0x157a   :  { %7789 = vmatpush1.msra.mxu1 %v12062_v27  ;;  %7852 = vmatprep.mubr.f32.mxu1 %v11000_v0 }
0x157b   :  { %10015 = vmatprep.subr.bf16.mxu1 %v12064_v56  ;;  %8108 = vmatprep.mubr.f32.mxu0 %v11000_v0 }
0x157c   :  { %8045 = vmatpush1.msra.mxu0 %v12082_v48 }
0x157d   :  { %9699 = vmatmul.mubr.msk.f32.vlgmr.msra.gmra.mrb[64].mxu1 %vm613_vm3, %v12029_v51  ;;  %10018 = vmatprep.subr.bf16.mxu0 %v11003_v9  ;;  %v9700_v51 = vmul.f32 -1.442695, %v7859_v14  ;;  %v8215_v14 = vld [vmem:[#allocation19 + $0x8] sm:$0xff] }
0x157e   :  { %10017 = vmatpush1.bf16.msra.mxu1 %v12070_v55  ;;  %8034 = vmatprep.mubr.f32.mxu1 %v11000_v0  ;;  %v12122_v61 = vpack.c.bf16 %v8215_v14, %v8214_v62 }
0x157f   :  { %8115 = vmatprep.subr.mxu1 %v12084_v29  ;;  %10566 = vpow2.f32 %v9700_v51 }
0x1580   :  { %10568 = vpow2.f32 %v9701_v59 }
0x1581   :  { %9704 = vmatmul.mubr.msk.f32.vlgmr.msra.gmra.mrb[66].mxu1 %vm427_vm2, %v7622_v11 }
0x1582   :  { %8179 = vmatprep.mubr.f32.mxu1 %v11000_v0  ;;  %8116 = vmatpush1.msra.mxu1 %v12088_v43 }
0x1583   :  { %8308 = vmatprep.subr.mxu1 %v12009_v22 }
0x1589   :  { %v10567_v35 = vpop.eup %10566 }
0x158a   :  { %v10569_v49 = vpop.eup %10568  ;;  %v7866_v57 = vadd.f32 1.0, %v10567_v35 }
0x158b   :  { %v7872_v53 = vadd.f32 1.0, %v10569_v49 }
0x164c   :  { %v7694_v50 = vpop.f32.mrb[62].mxu1 }
0x164d   :  { %v7695_v52 = vadd.f32 %v11843_v23, %v7694_v50  ;;  %v9805_v1 = vpop.f32.mrb[63].mxu1 }
0x164f   :  { %v7699_v45 = vmul.f32 %v7695_v52, %v7695_v52  ;;  %10570 = vtanh.f32 %v7695_v52  ;;  %vm7698_vm13 = vcmp.gt.f32.partialorder %v7695_v52, 0.0 }
0x1650   :  { %v7854_v31 = vpop.f32.mrb[64].mxu1  ;;  %10572 = vrcp.f32 %v7866_v57 }
0x1651   :  { %v7700_v34 = vadd.f32 1.0, %v7699_v45  ;;  %v7861_v54 = vadd.f32 %v7854_v31, %v11775_v39  ;;  %v7856_v6 = vpop.f32.mrb[65].mxu1  ;;  %10574 = vrcp.f32 %v7872_v53 }
0x1652   :  { %v7862_v4 = vadd.f32 %v7856_v6, %v11771_v28 }
0x1653   :  { %10576 = vrsqrt.f32 %v7700_v34 }
0x1654   :  { %10578 = vtanh.f32 %v7861_v54  ;;  %v9702_v5 = vmul.f32 -1.442695, %v7862_v4 }
0x1656   :  { %10580 = vpow2.f32 %v9702_v5 }
0x1659   :  { %v10571_v19 = vpop.eup %10570 }
0x165a   :  { %v7706_v36 = vmul.f32 0.999, %v10571_v19  ;;  %v10573_v23 = vpop.eup %10572 }
0x165b   :  { %v10575_v3 = vpop.eup %10574 }
0x165c   :  { %v7707_v12 = vadd.f32 1.0, %v7706_v36  ;;  %v7882_v25 = vmul.f32 %v10575_v3, %v12018_v46 }
0x165d   :  { %v10577_v18 = vpop.eup %10576 }
0x165e   :  { %v10579_v38 = vpop.eup %10578  ;;  %v7702_v13 = vmul.f32 %v10577_v18, %v7695_v52  ;;  %v7708_v37 = vmul.f32 0.5, %v7707_v12 }
0x165f   :  { %v7883_v33 = vmul.f32 %v10579_v38, %v10573_v23 }
0x1660   :  { %v10581_v58 = vpop.eup %10580  ;;  %v7703_v26 = vsel %vm7698_vm13, %v7695_v52, %v7702_v13 }
0x1661   :  { %v7704_v41 = vadd.f32 1.005, %v7703_v26  ;;  %v12100_v47 = vadd.f32 %v7883_v33, %v7882_v25  ;;  %v7879_v40 = vadd.f32 1.0, %v10581_v58 }
0x1663   :  { %v7709_v8 = vsel %vm5333_vm8, %v7704_v41, %v7708_v37  ;;  %10582 = vtanh.f32 %v12100_v47 }
0x1664   :  { %v7710_v42 = vsel %vm5332_vm7, %v7695_v52, %v7709_v8  ;;  %10584 = vrcp.f32 %v7879_v40 }
0x1665   :  { %9697 = vst.msk [vmem:[%s12286_s20 + $0x8] sm:$0x3] %vm5347_vm9, %v7710_v42 }
0x166d   :  { %v10583_v46 = vpop.eup %10582 }
0x166e   :  { %v10585_v11 = vpop.eup %10584 }
0x166f   :  { %v7886_v10 = vmul.f32 %v10585_v11, %v10583_v46 }
0x1671   :  { %9705 = vmatmul.mubr.msk.f32.vlgmr.msra.gmra.mrb[66].mxu0 %vm613_vm3, %v7886_v10  ;;  %9706 = vmatmul.mubr.msk.f32.vlgmr.msra.gmra.mrb[66].mxu1 %vm613_vm3, %v7886_v10 }
0x1672   :  { %8309 = vmatpush1.msra.mxu1 %v12031_v44  ;;  %8372 = vmatprep.mubr.f32.mxu1 %v11000_v0 }
0x1673   :  { %10022 = vmatprep.subr.bf16.mxu1 %v12045_v21  ;;  %9810 = vmatprep.mubr.msk.f32.mxu0 %vm11001_vm4, %v11000_v0 }
0x1674   :  { %10020 = vmatpush3.bf16.msra.mxu0 %v12122_v61 }
0x1675   :  { %9712 = vmatmul.mubr.msk.f32.vlgmr.msra.gmra.mrb[68].mxu1 %vm613_vm3, %v7886_v10  ;;  %8379 = vmatprep.subr.mxu0 %v12051_v17 }
0x1676   :  { %10024 = vmatpush1.bf16.msra.mxu1 %v12047_v63  ;;  %8554 = vmatprep.mubr.f32.mxu1 %v11000_v0 }
0x1677   :  { %8635 = vmatprep.subr.mxu1 %v12080_v2 }
0x1744   :  { %v8110_v51 = vpop.f32.mrb[66].mxu0  ;;  %v8181_v59 = vpop.f32.mrb[66].mxu1 }
0x1745   :  { %v8186_v35 = vadd.f32 %v8110_v51, %v11803_v30  ;;  %v8112_v49 = vpop.f32.mrb[67].mxu0  ;;  %v8183_v50 = vpop.f32.mrb[67].mxu1  ;;  %v8188_v54 = vadd.f32 %v8181_v59, %v11815_v7 }
0x1746   :  { %v8187_v57 = vadd.f32 %v8112_v49, %v11806_v32  ;;  %v8189_v31 = vadd.f32 %v8183_v50, %v11811_v16 }
0x1747   :  { %v9707_v52 = vmul.f32 -1.442695, %v8186_v35 }
0x1748   :  { %v9708_v1 = vmul.f32 -1.442695, %v8187_v57  ;;  %v8374_v53 = vpop.f32.mrb[68].mxu1  ;;  %v9709_v34 = vmul.f32 -1.442695, %v8189_v31 }
0x1749   :  { %10586 = vpow2.f32 %v9707_v52  ;;  %v8376_v45 = vpop.f32.mrb[69].mxu1 }
0x174a   :  { %10588 = vpow2.f32 %v9708_v1  ;;  %v8451_v41 = vadd.f32 %v8376_v45, %v11766_v15 }
0x174b   :  { %10590 = vpow2.f32 %v9709_v34 }
0x174c   :  { %10592 = vtanh.f32 %v8188_v54  ;;  %v9715_v40 = vmul.f32 -1.442695, %v8451_v41 }
0x1753   :  { %v10587_v6 = vpop.eup %10586 }
0x1754   :  { %v10589_v4 = vpop.eup %10588  ;;  %v8193_v5 = vadd.f32 1.0, %v10587_v6 }
0x1755   :  { %v8199_v19 = vadd.f32 1.0, %v10589_v4  ;;  %v10591_v36 = vpop.eup %10590 }
0x1756   :  { %10594 = vrcp.f32 %v8193_v5  ;;  %v10593_v23 = vpop.eup %10592  ;;  %v8206_v38 = vadd.f32 1.0, %v10591_v36 }
0x1757   :  { %10596 = vrcp.f32 %v8199_v19 }
0x1758   :  { %10598 = vrcp.f32 %v8206_v38 }
0x1760   :  { %v10595_v3 = vpop.eup %10594 }
0x1761   :  { %v10597_v18 = vpop.eup %10596  ;;  %v8210_v12 = vmul.f32 %v10595_v3, %v10593_v23 }
0x1762   :  { %v8209_v13 = vmul.f32 %v10597_v18, %v12059_v60  ;;  %v10599_v33 = vpop.eup %10598  ;;  %v8450_v60 = vadd.f32 %v8374_v53, %v11764_v20 }
0x1764   :  { %v12131_v25 = vadd.f32 %v8210_v12, %v8209_v13  ;;  %v9714_v37 = vmul.f32 -1.442695, %v8450_v60 }
0x1766   :  { %10600 = vtanh.f32 %v12131_v25 }
0x1767   :  { %10602 = vpow2.f32 %v9714_v37 }
0x1768   :  { %10604 = vpow2.f32 %v9715_v40 }
0x1770   :  { %v10601_v58 = vpop.eup %10600 }
0x1771   :  { %v8213_v26 = vmul.f32 %v10601_v58, %v10599_v33  ;;  %v10603_v8 = vpop.eup %10602 }
0x1772   :  { %v10605_v42 = vpop.eup %10604  ;;  %v8457_v11 = vadd.f32 1.0, %v10603_v8 }
0x1773   :  { %9811 = vmatmul.mubr.msk.f32.vlgmr.msra.gmra.mrb[68].mxu0 %vm427_vm2, %v8213_v26  ;;  %9717 = vmatmul.mubr.msk.f32.vlgmr.msra.gmra.mrb[70].mxu1 %vm427_vm2, %v8213_v26  ;;  %v8463_v14 = vadd.f32 1.0, %v10605_v42 }
0x1774   :  { %8380 = vmatpush1.msra.mxu0 %v12062_v27  ;;  %8443 = vmatprep.mubr.f32.mxu0 %v11000_v0 }
0x1775   :  { %10026 = vmatprep.subr.bf16.mxu0 %v12064_v56  ;;  %8636 = vmatpush1.msra.mxu1 %v12082_v48 }
0x1776   :  { %8699 = vmatprep.mubr.f32.mxu1 %v11000_v0  ;;  %10029 = vmatprep.subr.bf16.mxu1 %v11003_v9 }
0x1777   :  { %9713 = vmatmul.mubr.msk.f32.vlgmr.msra.gmra.mrb[70].mxu0 %vm613_vm3, %v7886_v10  ;;  %v12155_v10 = vld [vmem:[%s12283_s17] ss:$0 sm:$0xff] }
0x1778   :  { %10028 = vmatpush1.bf16.msra.mxu0 %v12070_v55  ;;  %8625 = vmatprep.mubr.f32.mxu0 %v11000_v0 }
0x1779   :  { %8706 = vmatprep.subr.mxu0 %v12084_v29 }
0x177b   :  { %9718 = vmatmul.mubr.msk.f32.vlgmr.msra.gmra.mrb[72].mxu0 %vm427_vm2, %v8213_v26 }
0x177c   :  { %8707 = vmatpush1.msra.mxu0 %v12088_v43  ;;  %8770 = vmatprep.mubr.f32.mxu0 %v11000_v0 }
0x177d   :  { %8899 = vmatprep.subr.mxu0 %v12009_v22 }
0x1846   :  { %v8285_v46 = vpop.f32.mrb[68].mxu0 }
0x1847   :  { %v8286_v62 = vadd.f32 %v12155_v10, %v8285_v46  ;;  %v9812_v22 = vpop.f32.mrb[69].mxu0 }
0x1849   :  { %v8290_v51 = vmul.f32 %v8286_v62, %v8286_v62  ;;  %10606 = vtanh.f32 %v8286_v62  ;;  %vm8289_vm14 = vcmp.gt.f32.partialorder %v8286_v62, 0.0 }
0x184a   :  { %v8445_v59 = vpop.f32.mrb[70].mxu0  ;;  %10608 = vrcp.f32 %v8457_v11 }
0x184b   :  { %v8291_v35 = vadd.f32 1.0, %v8290_v51  ;;  %v8452_v49 = vadd.f32 %v8445_v59, %v11775_v39  ;;  %v8447_v50 = vpop.f32.mrb[71].mxu0  ;;  %10610 = vrcp.f32 %v8463_v14 }
0x184c   :  { %v8453_v57 = vadd.f32 %v8447_v50, %v11771_v28 }
0x184d   :  { %10612 = vrsqrt.f32 %v8291_v35 }
0x184e   :  { %10614 = vtanh.f32 %v8452_v49  ;;  %v9716_v52 = vmul.f32 -1.442695, %v8453_v57 }
0x1850   :  { %10616 = vpow2.f32 %v9716_v52 }
0x1853   :  { %v10607_v1 = vpop.eup %10606 }
0x1854   :  { %v8297_v53 = vmul.f32 0.999, %v10607_v1  ;;  %v10609_v45 = vpop.eup %10608 }
0x1855   :  { %v10611_v31 = vpop.eup %10610 }
0x1856   :  { %v8298_v54 = vadd.f32 1.0, %v8297_v53  ;;  %v8473_v5 = vmul.f32 %v10611_v31, %v12100_v47 }
0x1857   :  { %v10613_v34 = vpop.eup %10612 }
0x1858   :  { %v10615_v6 = vpop.eup %10614  ;;  %v8293_v4 = vmul.f32 %v10613_v34, %v8286_v62  ;;  %v8299_v18 = vmul.f32 0.5, %v8298_v54 }
0x1859   :  { %v8474_v19 = vmul.f32 %v10615_v6, %v10609_v45 }
0x185a   :  { %v10617_v36 = vpop.eup %10616  ;;  %v8294_v23 = vsel %vm8289_vm14, %v8286_v62, %v8293_v4 }
0x185b   :  { %v8295_v3 = vadd.f32 1.005, %v8294_v23  ;;  %v12161_v12 = vadd.f32 %v8474_v19, %v8473_v5  ;;  %v8470_v38 = vadd.f32 1.0, %v10617_v36 }
0x185d   :  { %v8300_v13 = vsel %vm5333_vm8, %v8295_v3, %v8299_v18  ;;  %10618 = vtanh.f32 %v12161_v12 }
0x185e   :  { %v8301_v33 = vsel %vm5332_vm7, %v8286_v62, %v8300_v13  ;;  %10620 = vrcp.f32 %v8470_v38 }
0x185f   :  { %9711 = vst.msk [vmem:[%s12286_s20 + $0xa] sm:$0x3] %vm5347_vm9, %v8301_v33 }
0x1867   :  { %v10619_v47 = vpop.eup %10618 }
0x1868   :  { %v10621_v58 = vpop.eup %10620 }
0x1869   :  { %v8477_v26 = vmul.f32 %v10621_v58, %v10619_v47 }
0x186b   :  { %9719 = vmatmul.mubr.msk.f32.vlgmr.msra.gmra.mrb[70].mxu1 %vm613_vm3, %v8477_v26  ;;  %9720 = vmatmul.mubr.msk.f32.vlgmr.msra.gmra.mrb[72].mxu0 %vm613_vm3, %v8477_v26 }
0x186c   :  { %8900 = vmatpush1.msra.mxu0 %v12031_v44  ;;  %8963 = vmatprep.mubr.f32.mxu0 %v11000_v0 }
0x186d   :  { %10033 = vmatprep.subr.bf16.mxu0 %v12045_v21  ;;  %10031 = vmatpush3.bf16.msra.mxu1 %v12122_v61 }
0x186e   :  { %9817 = vmatprep.mubr.msk.f32.mxu1 %vm11001_vm4, %v11000_v0  ;;  %8970 = vmatprep.subr.mxu1 %v12051_v17 }
0x186f   :  { %9726 = vmatmul.mubr.msk.f32.vlgmr.msra.gmra.mrb[74].mxu0 %vm613_vm3, %v8477_v26 }
0x1870   :  { %10035 = vmatpush1.bf16.msra.mxu0 %v12047_v63  ;;  %9145 = vmatprep.mubr.f32.mxu0 %v11000_v0 }
0x1871   :  { %9226 = vmatprep.subr.mxu0 %v12080_v2 }
0x193e   :  { %v8701_v44 = vpop.f32.mrb[70].mxu1  ;;  %v8772_v60 = vpop.f32.mrb[72].mxu0 }
0x193f   :  { %v8777_v41 = vadd.f32 %v8701_v44, %v11803_v30  ;;  %v8703_v21 = vpop.f32.mrb[71].mxu1  ;;  %v8774_v37 = vpop.f32.mrb[73].mxu0  ;;  %v8779_v62 = vadd.f32 %v8772_v60, %v11815_v7 }
0x1940   :  { %v8778_v40 = vadd.f32 %v8703_v21, %v11806_v32  ;;  %v8780_v63 = vadd.f32 %v8774_v37, %v11811_v16 }
0x1941   :  { %v9721_v8 = vmul.f32 -1.442695, %v8777_v41 }
0x1942   :  { %v9722_v42 = vmul.f32 -1.442695, %v8778_v40  ;;  %v8965_v46 = vpop.f32.mrb[74].mxu0  ;;  %v9723_v11 = vmul.f32 -1.442695, %v8780_v63 }
0x1943   :  { %10622 = vpow2.f32 %v9721_v8  ;;  %v8967_v17 = vpop.f32.mrb[75].mxu0 }
0x1944   :  { %10624 = vpow2.f32 %v9722_v42 }
0x1945   :  { %10626 = vpow2.f32 %v9723_v11 }
0x1946   :  { %10628 = vtanh.f32 %v8779_v62 }
0x194d   :  { %v10623_v2 = vpop.eup %10622 }
0x194e   :  { %v10625_v22 = vpop.eup %10624  ;;  %v8784_v14 = vadd.f32 1.0, %v10623_v2 }
0x194f   :  { %v8790_v51 = vadd.f32 1.0, %v10625_v22  ;;  %v10627_v59 = vpop.eup %10626 }
0x1950   :  { %10630 = vrcp.f32 %v8784_v14  ;;  %v10629_v35 = vpop.eup %10628  ;;  %v8797_v52 = vadd.f32 1.0, %v10627_v59 }
0x1951   :  { %10632 = vrcp.f32 %v8790_v51 }
0x1952   :  { %10634 = vrcp.f32 %v8797_v52 }
0x195a   :  { %v10631_v49 = vpop.eup %10630 }
0x195b   :  { %v10633_v50 = vpop.eup %10632  ;;  %v8801_v57 = vmul.f32 %v10631_v49, %v10629_v35 }
0x195c   :  { %v8800_v1 = vmul.f32 %v10633_v50, %v12131_v25  ;;  %v10635_v45 = vpop.eup %10634 }
0x195e   :  { %v12190_v53 = vadd.f32 %v8801_v57, %v8800_v1 }
0x1960   :  { %10636 = vtanh.f32 %v12190_v53 }
0x196a   :  { %v10637_v31 = vpop.eup %10636 }
0x196b   :  { %v8804_v34 = vmul.f32 %v10637_v31, %v10635_v45 }
0x196d   :  { %9818 = vmatmul.mubr.msk.f32.vlgmr.msra.gmra.mrb[72].mxu1 %vm427_vm2, %v8804_v34  ;;  %9731 = vmatmul.mubr.msk.f32.vlgmr.msra.gmra.mrb[76].mxu0 %vm427_vm2, %v8804_v34 }
0x196e   :  { %8971 = vmatpush1.msra.mxu1 %v12062_v27  ;;  %9034 = vmatprep.mubr.f32.mxu1 %v11000_v0  ;;  %v9041_v27 = vadd.f32 %v8965_v46, %v11764_v20 }
0x196f   :  { %10037 = vmatprep.subr.bf16.mxu1 %v12064_v56  ;;  %9227 = vmatpush1.msra.mxu0 %v12082_v48  ;;  %v9042_v56 = vadd.f32 %v8967_v17, %v11766_v15 }
0x1970   :  { %9290 = vmatprep.mubr.f32.mxu0 %v11000_v0  ;;  %10040 = vmatprep.subr.bf16.mxu0 %v11003_v9  ;;  %v9728_v48 = vmul.f32 -1.442695, %v9041_v27 }
0x1971   :  { %9727 = vmatmul.mubr.msk.f32.vlgmr.msra.gmra.mrb[74].mxu1 %vm613_vm3, %v8477_v26  ;;  %v9729_v9 = vmul.f32 -1.442695, %v9042_v56 }
0x1972   :  { %10039 = vmatpush1.bf16.msra.mxu1 %v12070_v55  ;;  %9216 = vmatprep.mubr.f32.mxu1 %v11000_v0  ;;  %10638 = vpow2.f32 %v9728_v48 }
0x1973   :  { %9297 = vmatprep.subr.mxu1 %v12084_v29  ;;  %10640 = vpow2.f32 %v9729_v9 }
0x1975   :  { %9732 = vmatmul.mubr.msk.f32.vlgmr.msra.gmra.mrb[76].mxu1 %vm427_vm2, %v8804_v34 }
0x1976   :  { %9298 = vmatpush1.msra.mxu1 %v12088_v43  ;;  %9361 = vmatprep.mubr.f32.mxu1 %v11000_v0 }
0x197c   :  { %v10639_v25 = vpop.eup %10638 }
0x197d   :  { %v10641_v55 = vpop.eup %10640  ;;  %v9048_v6 = vadd.f32 1.0, %v10639_v25 }
0x197e   :  { %v9054_v5 = vadd.f32 1.0, %v10641_v55 }
0x1a40   :  { %v8876_v54 = vpop.f32.mrb[72].mxu1 }
0x1a41   :  { %v8877_v29 = vadd.f32 %v12155_v10, %v8876_v54  ;;  %v9819_v4 = vpop.f32.mrb[73].mxu1 }
0x1a43   :  { %v8881_v19 = vmul.f32 %v8877_v29, %v8877_v29  ;;  %10642 = vtanh.f32 %v8877_v29  ;;  %vm8880_vm15 = vcmp.gt.f32.partialorder %v8877_v29, 0.0 }
0x1a44   :  { %v9036_v43 = vpop.f32.mrb[74].mxu1  ;;  %10644 = vrcp.f32 %v9048_v6 }
0x1a45   :  { %v8882_v36 = vadd.f32 1.0, %v8881_v19  ;;  %v9043_v20 = vadd.f32 %v9036_v43, %v11775_v39  ;;  %v9038_v15 = vpop.f32.mrb[75].mxu1  ;;  %10646 = vrcp.f32 %v9054_v5 }
0x1a46   :  { %v9044_v23 = vadd.f32 %v9038_v15, %v11771_v28 }
0x1a47   :  { %10648 = vrsqrt.f32 %v8882_v36 }
0x1a48   :  { %10650 = vtanh.f32 %v9043_v20  ;;  %v9730_v3 = vmul.f32 -1.442695, %v9044_v23 }
0x1a4a   :  { %10652 = vpow2.f32 %v9730_v3 }
0x1a4d   :  { %v10643_v18 = vpop.eup %10642 }
0x1a4e   :  { %v8888_v38 = vmul.f32 0.999, %v10643_v18  ;;  %v10645_v13 = vpop.eup %10644 }
0x1a4f   :  { %v10647_v33 = vpop.eup %10646 }
0x1a50   :  { %v8889_v58 = vadd.f32 1.0, %v8888_v38  ;;  %v9064_v60 = vmul.f32 %v10647_v33, %v12161_v12 }
0x1a51   :  { %v10649_v47 = vpop.eup %10648 }
0x1a52   :  { %v10651_v26 = vpop.eup %10650  ;;  %v8884_v44 = vmul.f32 %v10649_v47, %v8877_v29  ;;  %v8890_v28 = vmul.f32 0.5, %v8889_v58 }
0x1a53   :  { %v9065_v39 = vmul.f32 %v10651_v26, %v10645_v13 }
0x1a54   :  { %v10653_v41 = vpop.eup %10652  ;;  %v8885_v21 = vsel %vm8880_vm15, %v8877_v29, %v8884_v44 }
0x1a55   :  { %v8886_v37 = vadd.f32 1.005, %v8885_v21  ;;  %v9066_v40 = vadd.f32 %v9065_v39, %v9064_v60  ;;  %v9061_v8 = vadd.f32 1.0, %v10653_v41 }
0x1a57   :  { %v8891_v42 = vsel %vm5333_vm8, %v8886_v37, %v8890_v28  ;;  %10654 = vtanh.f32 %v9066_v40 }
0x1a58   :  { %v8892_v46 = vsel %vm5332_vm7, %v8877_v29, %v8891_v42  ;;  %10656 = vrcp.f32 %v9061_v8 }
0x1a59   :  { %9725 = vst.msk [vmem:[%s12286_s20 + $0xc] sm:$0x3] %vm5347_vm9, %v8892_v46 }
0x1a61   :  { %v10655_v12 = vpop.eup %10654 }
0x1a62   :  { %v10657_v17 = vpop.eup %10656 }
0x1a63   :  { %v9068_v63 = vmul.f32 %v10657_v17, %v10655_v12 }
0x1a65   :  { %9733 = vmatmul.mubr.msk.f32.vlgmr.msra.gmra.mrb[76].mxu0 %vm613_vm3, %v9068_v63  ;;  %9734 = vmatmul.mubr.msk.f32.vlgmr.msra.gmra.mrb[76].mxu1 %vm613_vm3, %v9068_v63 }
0x1a66   :  { %10042 = vmatpush3.bf16.msra.mxu0 %v12122_v61  ;;  %9824 = vmatprep.mubr.msk.f32.mxu0 %vm11001_vm4, %v11000_v0 }
0x1b38   :  { %v9292_v11 = vpop.f32.mrb[76].mxu0  ;;  %v9363_v62 = vpop.f32.mrb[76].mxu1 }
0x1b39   :  { %v9368_v2 = vadd.f32 %v9292_v11, %v11803_v30  ;;  %v9294_v22 = vpop.f32.mrb[77].mxu0  ;;  %v9365_v14 = vpop.f32.mrb[77].mxu1  ;;  %v9370_v61 = vadd.f32 %v9363_v62, %v11815_v7 }
0x1b3a   :  { %v9369_v51 = vadd.f32 %v9294_v22, %v11806_v32  ;;  %v9371_v49 = vadd.f32 %v9365_v14, %v11811_v16 }
0x1b3b   :  { %v9735_v59 = vmul.f32 -1.442695, %v9368_v2 }
0x1b3c   :  { %v9736_v35 = vmul.f32 -1.442695, %v9369_v51  ;;  %v9737_v50 = vmul.f32 -1.442695, %v9371_v49 }
0x1b3d   :  { %10658 = vpow2.f32 %v9735_v59 }
0x1b3e   :  { %10660 = vpow2.f32 %v9736_v35 }
0x1b3f   :  { %10662 = vpow2.f32 %v9737_v50 }
0x1b40   :  { %10664 = vtanh.f32 %v9370_v61 }
0x1b47   :  { %v10659_v57 = vpop.eup %10658 }
0x1b48   :  { %v10661_v52 = vpop.eup %10660  ;;  %v9375_v0 = vadd.f32 1.0, %v10659_v57 }
0x1b49   :  { %v9381_v1 = vadd.f32 1.0, %v10661_v52  ;;  %v10663_v30 = vpop.eup %10662 }
0x1b4a   :  { %10666 = vrcp.f32 %v9375_v0  ;;  %v10665_v45 = vpop.eup %10664  ;;  %v9388_v27 = vadd.f32 1.0, %v10663_v30 }
0x1b4b   :  { %10668 = vrcp.f32 %v9381_v1 }
0x1b4c   :  { %10670 = vrcp.f32 %v9388_v27 }
0x1b54   :  { %v10667_v32 = vpop.eup %10666 }
0x1b55   :  { %v10669_v31 = vpop.eup %10668  ;;  %v9392_v34 = vmul.f32 %v10667_v32, %v10665_v45 }
0x1b56   :  { %v9391_v56 = vmul.f32 %v10669_v31, %v12190_v53  ;;  %v10671_v7 = vpop.eup %10670 }
0x1b58   :  { %v9393_v16 = vadd.f32 %v9392_v34, %v9391_v56 }
0x1b5a   :  { %10672 = vtanh.f32 %v9393_v16 }
0x1b64   :  { %v10673_v48 = vpop.eup %10672 }
0x1b65   :  { %v9395_v9 = vmul.f32 %v10673_v48, %v10671_v7 }
0x1b67   :  { %9825 = vmatmul.mubr.msk.f32.vlgmr.msra.gmra.mrb[78].mxu0 %vm427_vm2, %v9395_v9 }
0x1b68   :  { %10936 = shalt.err (!%p10933_p8)
}
0x1b69   :  { %s10937_s7 = scalar_lea.hbm %s12284_s18, 32 }
0x1b6a   :  { %p10938_p9 = scmp.ne.s32.totalorder %s12284_s18, %s10937_s7  ;;  %p10941_p10 = scmp.lt.u32.totalorder %s10937_s7, %s12284_s18 }
0x1b6c   :  { %p10943_p11 = pnand %p10941_p10, %p10938_p9 }
0x1b6e   :  { %10946 = shalt.err (!%p10943_p11)
}
0x1b6f   :  { %9495 = dma.vmem_to_hbm [thread:$0]  %s9493_s28, 32, %s12284_s18, [#allocation4]  }
0x1b70   :  { %s10947_s3 = scalar_lea.vmem %s9503_s30, 32  ;;  %p10952_p13 = scmp.lt.s32.totalorder %s9503_s30, %s9503_s30 }
0x1b71   :  { %p10948_p12 = scmp.ne.s32.totalorder %s9503_s30, %s10947_s3  ;;  %p10953_p0 = scmp.lt.s32.totalorder %s10947_s3, %s10947_s3 }
0x1b73   :  { %p10954_p1 = por %p10953_p0, %p10952_p13 }
0x1b75   :  { %p10955_p2 = pnand %p10954_p1, %p10948_p12 }
0x1b77   :  { %10958 = shalt.err (!%p10955_p2)
}
0x1b78   :  { %s10959_s9 = scalar_lea.hbm %s12285_s19, 32 }
0x1b79   :  { %p10960_p3 = scmp.ne.s32.totalorder %s12285_s19, %s10959_s9  ;;  %p10963_p4 = scmp.lt.u32.totalorder %s10959_s9, %s12285_s19 }
0x1b7b   :  { %p10965_p5 = pnand %p10963_p4, %p10960_p3 }
0x1b7d   :  { %10968 = shalt.err (!%p10965_p5)
}
0x1b7e   :  { %9505 = dma.vmem_to_hbm [thread:$0]  %s9503_s30, 32, %s12285_s19, [#allocation22]  }
0x1c3a   :  { %v9467_v53 = vpop.f32.mrb[78].mxu0 }
0x1c3b   :  { %v9468_v25 = vadd.f32 %v12155_v10, %v9467_v53  ;;  %v9826_v55 = vpop.f32.mrb[79].mxu0 }
0x1c3d   :  { %v9472_v54 = vmul.f32 %v9468_v25, %v9468_v25  ;;  %10674 = vtanh.f32 %v9468_v25  ;;  %vm9471_vm0 = vcmp.gt.f32.partialorder %v9468_v25, 0.0 }
0x1c3f   :  { %v9473_v6 = vadd.f32 1.0, %v9472_v54 }
0x1c41   :  { %10676 = vrsqrt.f32 %v9473_v6 }
0x1c47   :  { %v10675_v29 = vpop.eup %10674 }
0x1c48   :  { %v9479_v4 = vmul.f32 0.999, %v10675_v29 }
0x1c4a   :  { %v9480_v19 = vadd.f32 1.0, %v9479_v4 }
0x1c4b   :  { %v10677_v5 = vpop.eup %10676 }
0x1c4c   :  { %v9475_v43 = vmul.f32 %v10677_v5, %v9468_v25  ;;  %v9481_v15 = vmul.f32 0.5, %v9480_v19 }
0x1c4e   :  { %v9476_v36 = vsel %vm9471_vm0, %v9468_v25, %v9475_v43 }
0x1c4f   :  { %v9477_v20 = vadd.f32 1.005, %v9476_v36 }
0x1c51   :  { %v9482_v23 = vsel %vm5333_vm8, %v9477_v20, %v9481_v15 }
0x1c52   :  { %v9483_v10 = vsel %vm5332_vm7, %v9468_v25, %v9482_v23 }
0x1c53   :  { %9739 = vst.msk [vmem:[%s12286_s20 + $0xe] sm:$0x3] %vm5347_vm9, %v9483_v10 }
0x1c54   :  { %10981 = dma.done.wait [#allocation4], 32  }
0x1c55   :  { %10982 = vsyncadd [#allocation4], 4294967264 }
0x1c56   :  { %10983 = dma.done.wait [#allocation22], 32  }
0x1c57   :  { %10984 = vsyncadd [#allocation22], 4294967264 }
0x1c58   :  { %9516 = vsyncpa [#allocation3], 1 }
0x1c59   :  { %9517 = vsyncpa [#allocation6], 1 }
0x1c5a   :  { %9518 = vsyncpa [#allocation9], 1 }
0x1c5b   :  { %9519 = vsyncpa [#allocation12], 1 }
0x1c5c   :  { %9520 = vsyncpa [#allocation15], 1 }
0x1c5d   :  { %9521 = vsyncpa [#allocation18], 1 }
0x1c5e   :  { %9522 = vsyncpa [#allocation4], 1 }
0x1c5f   :  { %9523 = vsyncpa [#allocation22], 1 }

</bundles_post_ra>
